<compile_context>
chip_gen: v5e
topology: v5e:2x2
jax: 0.10.0
libtpu: 0.0.40
codegen_flags: <defaults>
</compile_context>

<pallas_src>
import jax
import jax.numpy as jnp
from jax import lax
from jax.experimental import pallas as pl
from jax.experimental.pallas import tpu as pltpu


def _round_up(n, m):
    return ((n + m - 1) // m) * m


def _cdiv(a, b):
    return -(-a // b)


def onesiv_kernel(
    zx_ref, xe_ref,
    # t_net params
    tw1_ref, tb1_ref, tw2_ref, tb2_ref, tw3_ref, tb3_ref, tw4_ref, tb4_ref,
    # y_net params
    yw1_ref, yb1_ref, yw2_ref, yb2_ref, yw3_ref, yb3_ref, yw4_ref, yb4_ref,
    # merged output: column 0 = pred_t, column 1 = pred_yt
    out_ref,
):
    f32, bf16 = jnp.float32, jnp.bfloat16
    relu = lambda v: jnp.maximum(v, 0.0)

    # ---- t_net: Linear->ReLU (x3) -> Linear (dropout = identity) ----
    zx = zx_ref[...]                                            # (TB, z+x) bf16
    h = relu(jnp.dot(zx, tw1_ref[...], preferred_element_type=f32) + tb1_ref[...])
    h = relu(jnp.dot(h.astype(bf16), tw2_ref[...], preferred_element_type=f32)
             + tb2_ref[...])
    h = relu(jnp.dot(h.astype(bf16), tw3_ref[...], preferred_element_type=f32)
             + tb3_ref[...])
    # 32 -> 1 output layer on the VPU: multiply + lane reduce (f32).
    pred_t = jnp.sum(h * tw4_ref[...], axis=-1, keepdims=True) + tb4_ref[...]

    # ---- y_net on concat([pred_t, x], axis=1) ----
    # xe holds [0, x] in bf16; insert pred_t into lane 0 with a select so the
    # whole first layer becomes a single K=(1+x_dim) MXU matmul.
    xe = xe_ref[...]                                            # (TB, 1+x) bf16
    col = lax.broadcasted_iota(jnp.int32, xe.shape, 1)
    yt = jnp.where(col == 0, pred_t.astype(bf16), xe)
    h = relu(jnp.dot(yt, yw1_ref[...], preferred_element_type=f32) + yb1_ref[...])
    h = relu(jnp.dot(h.astype(bf16), yw2_ref[...], preferred_element_type=f32)
             + yb2_ref[...])
    h = relu(jnp.dot(h.astype(bf16), yw3_ref[...], preferred_element_type=f32)
             + yb3_ref[...])
    pred_yt = jnp.sum(h * yw4_ref[...], axis=-1, keepdims=True) + yb4_ref[...]

    # Single lane-merged store (avoids two last-dim-1 masked stores).
    ocol = lax.broadcasted_iota(jnp.int32, out_ref.shape, 1)
    out_ref[...] = jnp.where(ocol == 0, pred_t, pred_yt)


def make_params(key, z_dim, x_dim, t_dim, dtype=jnp.float32):
    """Deterministic synthetic parameters (same shapes as the torch module)."""
    t_in = z_dim + x_dim
    y_in = t_dim + x_dim
    dims_t = [t_in, 1280, 320, 32, 1]
    dims_y = [y_in, 1280, 320, 32, 1]

    def mlp(key, dims):
        ws, bs = [], []
        for i in range(len(dims) - 1):
            key, kw, kb = jax.random.split(key, 3)
            scale = 1.0 / jnp.sqrt(jnp.float32(dims[i]))
            ws.append(jax.random.uniform(kw, (dims[i], dims[i + 1]),
                                         dtype, -scale, scale))
            bs.append(jax.random.uniform(kb, (1, dims[i + 1]),
                                         dtype, -scale, scale))
        return key, ws, bs

    key, tw, tb = mlp(key, dims_t)
    key, yw, yb = mlp(key, dims_y)
    return (tw, tb), (yw, yb)


def onesiv_forward(z, x, t, params):
    # NOTE: `t` is unused in the torch forward pass as well.
    del t
    (tw, tb), (yw, yb) = params
    B, z_dim = z.shape
    x_dim = x.shape[1]
    bf16 = jnp.bfloat16

    # Resident weights: big matrices in bf16 (f32 accumulation in-kernel),
    # biases and the 32->1 VPU weights in f32.
    tw1 = tw[0].astype(bf16)                      # (z+x, 1280)
    tw2 = tw[1].astype(bf16)                      # (1280, 320)
    tw3 = tw[2].astype(bf16)                      # (320, 32)
    tw4 = tw[3].reshape(1, -1)                    # (1, 32)   f32, VPU path
    yw1 = yw[0].astype(bf16)                      # (1+x, 1280)
    yw2 = yw[1].astype(bf16)
    yw3 = yw[2].astype(bf16)
    yw4 = yw[3].reshape(1, -1)                    # (1, 32)   f32

    weights = (tw1, tb[0], tw2, tb[1], tw3, tb[2], tw4, tb[3],
               yw1, yb[0], yw2, yb[1], yw3, yb[2], yw4, yb[3])

    # Batch inputs, pre-cast to bf16:
    #   zx = [z, x]  -> t_net layer 1 (single fused matmul)
    #   xe = [0, x]  -> y_net layer 1 (pred_t inserted into lane 0 in-kernel)
    zx = jnp.concatenate([z, x], axis=1).astype(bf16)
    xe = jnp.concatenate([jnp.zeros((B, 1), z.dtype), x], axis=1).astype(bf16)

    # Batch tiling: >=2 grid steps when possible (v7x megacore), TB capped at
    # 1024 (fits v7x's 64 MiB VMEM), minimal padding waste, TB multiple of 16
    # (bf16 sublane packing).
    TB_MAX = 1024
    n_tiles = max(2, _cdiv(B, TB_MAX))
    TB = min(_round_up(_cdiv(B, n_tiles), 16), _round_up(B, 16))
    grid_n = _cdiv(B, TB)
    B_pad = grid_n * TB
    if B_pad != B:
        pad = B_pad - B
        zx = jnp.pad(zx, ((0, pad), (0, 0)))
        xe = jnp.pad(xe, ((0, pad), (0, 0)))

    def batch_spec(feat):
        return pl.BlockSpec((TB, feat), lambda i: (i, 0))

    def resident_spec(arr):
        # Full-array block with constant index -> DMA'd once, stays resident.
        # TODO(synk): pipeline_mode=pl.Buffered(1) would drop ~1.8 MB of
        # double-buffering on these; skipped since VMEM headroom is ample.
        return pl.BlockSpec(arr.shape, lambda i: (0, 0))

    in_specs = ([batch_spec(z_dim + x_dim), batch_spec(1 + x_dim)]
                + [resident_spec(w) for w in weights])
    out_specs = pl.BlockSpec((TB, 2), lambda i: (i, 0))

    flops = 2 * B_pad * (
        (z_dim + x_dim) * 1280 + 1280 * 320 + 320 * 32 + 32        # t_net
        + (1 + x_dim) * 1280 + 1280 * 320 + 320 * 32 + 32)         # y_net
    bytes_accessed = (
        sum(int(w.size) * w.dtype.itemsize for w in weights)
        + int(zx.size + xe.size) * 2
        + B_pad * 2 * 4)

    out = pl.pallas_call(
        onesiv_kernel,
        out_shape=jax.ShapeDtypeStruct((B_pad, 2), jnp.float32),
        grid=(grid_n,),
        in_specs=in_specs,
        out_specs=out_specs,
        compiler_params=pltpu.CompilerParams(
            dimension_semantics=("parallel",),
            vmem_limit_bytes=48 * 1024 * 1024,
        ),
        cost_estimate=pl.CostEstimate(
            flops=flops, transcendentals=0, bytes_accessed=bytes_accessed),
    )(zx, xe, *weights)

    return out[:B, 0:1], out[:B, 1:2]


def onesiv_reference_mixed(z, x, params):
    """Pure-JAX mirror of the kernel's dtype policy (bf16 matmuls, f32 acc)."""
    (tw, tb), (yw, yb) = params
    bf16, f32 = jnp.bfloat16, jnp.float32
    relu = lambda v: jnp.maximum(v, 0.0)

    def dot_bf16(a, w):
        return jnp.dot(a.astype(bf16), w.astype(bf16),
                       preferred_element_type=f32)

    # t_net
    zx = jnp.concatenate([z, x], axis=1)
    h = relu(dot_bf16(zx, tw[0]) + tb[0])
    h = relu(dot_bf16(h, tw[1]) + tb[1])
    h = relu(dot_bf16(h, tw[2]) + tb[2])
    pred_t = jnp.sum(h * tw[3].reshape(1, -1), axis=-1, keepdims=True) + tb[3]

    # y_net
    yt = jnp.concatenate([pred_t, x], axis=1)
    h = relu(dot_bf16(yt, yw[0]) + yb[0])
    h = relu(dot_bf16(h, yw[1]) + yb[1])
    h = relu(dot_bf16(h, yw[2]) + yb[2])
    pred_yt = jnp.sum(h * yw[3].reshape(1, -1), axis=-1, keepdims=True) + yb[3]
    return pred_t, pred_yt


def onesiv_reference_f32(z, x, params):
    """Full fp32 reference matching the original PyTorch module exactly."""
    (tw, tb), (yw, yb) = params

    def mlp(inp, ws, bs):
        h = inp
        for i in range(3):
            h = jnp.maximum(h @ ws[i] + bs[i], 0.0)
        return h @ ws[3] + bs[3]

    pred_t = mlp(jnp.concatenate([z, x], axis=1), tw, tb)
    pred_yt = mlp(jnp.concatenate([pred_t, x], axis=1), yw, yb)
    return pred_t, pred_yt


if __name__ == "__main__":
    z_dim, x_dim, t_dim = 8, 8, 1   # t_dim must be 1: y_net input is cat(pred_t, x)
    dropout = 0.1                   # identity at inference

    key = jax.random.PRNGKey(0)
    kz, kx, kt, kp = jax.random.split(key, 4)
    params = make_params(kp, z_dim, x_dim, t_dim)

    # B=8 exercises the single-tile path; B=1300 exercises multi-tile (grid=2)
    # plus batch padding (1300 -> 1312).
    for B in (8, 1300):
        kzb = jax.random.fold_in(kz, B)
        kxb = jax.random.fold_in(kx, B)
        ktb = jax.random.fold_in(kt, B)
        z = jax.random.normal(kzb, (B, z_dim), jnp.float32)
        x = jax.random.normal(kxb, (B, x_dim), jnp.float32)
        t = jax.random.normal(ktb, (B, t_dim), jnp.float32)

        pred_t, pred_yt = onesiv_forward(z, x, t, params)
        jax.block_until_ready((pred_t, pred_yt))
        assert pred_t.shape == (B, 1) and pred_yt.shape == (B, 1)

        # Tight check against a pure-JAX mirror of the kernel's arithmetic.
        ref_t, ref_yt = onesiv_reference_mixed(z, x, params)
        assert jnp.allclose(pred_t, ref_t, atol=2e-3, rtol=2e-3), \
            f"pred_t mismatch vs mixed ref (B={B})"
        assert jnp.allclose(pred_yt, ref_yt, atol=2e-3, rtol=2e-3), \
            f"pred_yt mismatch vs mixed ref (B={B})"

        # Loose semantic check against the original fp32 module math (bf16
        # weights introduce ~1% relative differences by design).
        f32_t, f32_yt = onesiv_reference_f32(z, x, params)
        assert jnp.allclose(pred_t, f32_t, atol=0.1, rtol=0.1), \
            f"pred_t mismatch vs f32 ref (B={B})"
        assert jnp.allclose(pred_yt, f32_yt, atol=0.1, rtol=0.1), \
            f"pred_yt mismatch vs f32 ref (B={B})"

    print("KERNEL_OK")
</pallas_src>

<mosaic_0001>
module attributes {stable_mosaic.version = 11 : i64} {
  func.func @onesiv_kernel(%arg0: i32, %arg1: memref<16x16xbf16, #tpu.memory_space<vmem>>, %arg2: memref<16x9xbf16, #tpu.memory_space<vmem>>, %arg3: memref<16x1280xbf16, #tpu.memory_space<vmem>>, %arg4: memref<1x1280xf32, #tpu.memory_space<vmem>>, %arg5: memref<1280x320xbf16, #tpu.memory_space<vmem>>, %arg6: memref<1x320xf32, #tpu.memory_space<vmem>>, %arg7: memref<320x32xbf16, #tpu.memory_space<vmem>>, %arg8: memref<1x32xf32, #tpu.memory_space<vmem>>, %arg9: memref<1x32xf32, #tpu.memory_space<vmem>>, %arg10: memref<1x1xf32, #tpu.memory_space<vmem>>, %arg11: memref<9x1280xbf16, #tpu.memory_space<vmem>>, %arg12: memref<1x1280xf32, #tpu.memory_space<vmem>>, %arg13: memref<1280x320xbf16, #tpu.memory_space<vmem>>, %arg14: memref<1x320xf32, #tpu.memory_space<vmem>>, %arg15: memref<320x32xbf16, #tpu.memory_space<vmem>>, %arg16: memref<1x32xf32, #tpu.memory_space<vmem>>, %arg17: memref<1x32xf32, #tpu.memory_space<vmem>>, %arg18: memref<1x1xf32, #tpu.memory_space<vmem>>, %arg19: memref<16x2xf32, #tpu.memory_space<vmem>>) attributes {dimension_semantics = [#tpu.dimension_semantics<parallel>], iteration_bounds = array<i64: 1>, scalar_prefetch = 0 : i64, scratch_operands = 0 : i64, tpu.core_type = #tpu.core_type<tc>, window_params = [{transform_indices = @transform_0, window_bounds = array<i64: 16, 16>}, {transform_indices = @transform_1, window_bounds = array<i64: 16, 9>}, {pipeline_mode = #tpu.pipeline_mode<synchronous>, transform_indices = @transform_2, window_bounds = array<i64: 16, 1280>}, {pipeline_mode = #tpu.pipeline_mode<synchronous>, transform_indices = @transform_3, window_bounds = array<i64: 1, 1280>}, {pipeline_mode = #tpu.pipeline_mode<synchronous>, transform_indices = @transform_4, window_bounds = array<i64: 1280, 320>}, {pipeline_mode = #tpu.pipeline_mode<synchronous>, transform_indices = @transform_5, window_bounds = array<i64: 1, 320>}, {pipeline_mode = #tpu.pipeline_mode<synchronous>, transform_indices = @transform_6, window_bounds = array<i64: 320, 32>}, {pipeline_mode = #tpu.pipeline_mode<synchronous>, transform_indices = @transform_7, window_bounds = array<i64: 1, 32>}, {pipeline_mode = #tpu.pipeline_mode<synchronous>, transform_indices = @transform_8, window_bounds = array<i64: 1, 32>}, {pipeline_mode = #tpu.pipeline_mode<synchronous>, transform_indices = @transform_9, window_bounds = array<i64: 1, 1>}, {pipeline_mode = #tpu.pipeline_mode<synchronous>, transform_indices = @transform_10, window_bounds = array<i64: 9, 1280>}, {pipeline_mode = #tpu.pipeline_mode<synchronous>, transform_indices = @transform_11, window_bounds = array<i64: 1, 1280>}, {pipeline_mode = #tpu.pipeline_mode<synchronous>, transform_indices = @transform_12, window_bounds = array<i64: 1280, 320>}, {pipeline_mode = #tpu.pipeline_mode<synchronous>, transform_indices = @transform_13, window_bounds = array<i64: 1, 320>}, {pipeline_mode = #tpu.pipeline_mode<synchronous>, transform_indices = @transform_14, window_bounds = array<i64: 320, 32>}, {pipeline_mode = #tpu.pipeline_mode<synchronous>, transform_indices = @transform_15, window_bounds = array<i64: 1, 32>}, {pipeline_mode = #tpu.pipeline_mode<synchronous>, transform_indices = @transform_16, window_bounds = array<i64: 1, 32>}, {pipeline_mode = #tpu.pipeline_mode<synchronous>, transform_indices = @transform_17, window_bounds = array<i64: 1, 1>}, {transform_indices = @transform_18, window_bounds = array<i64: 16, 2>}]} {
    %c0 = arith.constant 0 : index
    %c0_0 = arith.constant 0 : index
    %0 = vector.load %arg1[%c0, %c0_0] : memref<16x16xbf16, #tpu.memory_space<vmem>>, vector<16x16xbf16>
    %c0_1 = arith.constant 0 : index
    %c0_2 = arith.constant 0 : index
    %1 = vector.load %arg3[%c0_1, %c0_2] : memref<16x1280xbf16, #tpu.memory_space<vmem>>, vector<16x1280xbf16>
    %cst = arith.constant dense<0.000000e+00> : vector<16x1280xf32>
    %2 = tpu.matmul %0, %1, %cst {dimension_numbers = #tpu.dot_dimension_numbers<[1], [0], [0], [1], [0, 0, 1, 1], [], []>} : vector<16x16xbf16>, vector<16x1280xbf16>, vector<16x1280xf32> -> vector<16x1280xf32>
    %c0_3 = arith.constant 0 : index
    %c0_4 = arith.constant 0 : index
    %3 = vector.load %arg4[%c0_3, %c0_4] : memref<1x1280xf32, #tpu.memory_space<vmem>>, vector<1x1280xf32>
    %4 = vector.broadcast %3 : vector<1x1280xf32> to vector<16x1280xf32>
    %5 = arith.addf %2, %4 : vector<16x1280xf32>
    %cst_5 = arith.constant 0.000000e+00 : f32
    %6 = vector.broadcast %cst_5 : f32 to vector<16x1280xf32>
    %7 = arith.maximumf %5, %6 : vector<16x1280xf32>
    %8 = arith.truncf %7 : vector<16x1280xf32> to vector<16x1280xbf16>
    %c0_6 = arith.constant 0 : index
    %c0_7 = arith.constant 0 : index
    %9 = vector.load %arg5[%c0_6, %c0_7] : memref<1280x320xbf16, #tpu.memory_space<vmem>>, vector<1280x320xbf16>
    %cst_8 = arith.constant dense<0.000000e+00> : vector<16x320xf32>
    %10 = tpu.matmul %8, %9, %cst_8 {dimension_numbers = #tpu.dot_dimension_numbers<[1], [0], [0], [1], [0, 0, 1, 1], [], []>} : vector<16x1280xbf16>, vector<1280x320xbf16>, vector<16x320xf32> -> vector<16x320xf32>
    %c0_9 = arith.constant 0 : index
    %c0_10 = arith.constant 0 : index
    %11 = vector.load %arg6[%c0_9, %c0_10] : memref<1x320xf32, #tpu.memory_space<vmem>>, vector<1x320xf32>
    %12 = vector.broadcast %11 : vector<1x320xf32> to vector<16x320xf32>
    %13 = arith.addf %10, %12 : vector<16x320xf32>
    %cst_11 = arith.constant 0.000000e+00 : f32
    %14 = vector.broadcast %cst_11 : f32 to vector<16x320xf32>
    %15 = arith.maximumf %13, %14 : vector<16x320xf32>
    %16 = arith.truncf %15 : vector<16x320xf32> to vector<16x320xbf16>
    %c0_12 = arith.constant 0 : index
    %c0_13 = arith.constant 0 : index
    %17 = vector.load %arg7[%c0_12, %c0_13] : memref<320x32xbf16, #tpu.memory_space<vmem>>, vector<320x32xbf16>
    %cst_14 = arith.constant dense<0.000000e+00> : vector<16x32xf32>
    %18 = tpu.matmul %16, %17, %cst_14 {dimension_numbers = #tpu.dot_dimension_numbers<[1], [0], [0], [1], [0, 0, 1, 1], [], []>} : vector<16x320xbf16>, vector<320x32xbf16>, vector<16x32xf32> -> vector<16x32xf32>
    %c0_15 = arith.constant 0 : index
    %c0_16 = arith.constant 0 : index
    %19 = vector.load %arg8[%c0_15, %c0_16] : memref<1x32xf32, #tpu.memory_space<vmem>>, vector<1x32xf32>
    %20 = vector.broadcast %19 : vector<1x32xf32> to vector<16x32xf32>
    %21 = arith.addf %18, %20 : vector<16x32xf32>
    %cst_17 = arith.constant 0.000000e+00 : f32
    %22 = vector.broadcast %cst_17 : f32 to vector<16x32xf32>
    %23 = arith.maximumf %21, %22 : vector<16x32xf32>
    %c0_18 = arith.constant 0 : index
    %c0_19 = arith.constant 0 : index
    %24 = vector.load %arg9[%c0_18, %c0_19] : memref<1x32xf32, #tpu.memory_space<vmem>>, vector<1x32xf32>
    %25 = vector.broadcast %24 : vector<1x32xf32> to vector<16x32xf32>
    %26 = arith.mulf %23, %25 : vector<16x32xf32>
    %cst_20 = arith.constant dense<0.000000e+00> : vector<16xf32>
    %27 = vector.multi_reduction <add>, %26, %cst_20 [1] : vector<16x32xf32> to vector<16xf32>
    %28 = vector.shape_cast %27 : vector<16xf32> to vector<16x1xf32>
    %c0_21 = arith.constant 0 : index
    %c0_22 = arith.constant 0 : index
    %29 = vector.load %arg10[%c0_21, %c0_22] : memref<1x1xf32, #tpu.memory_space<vmem>>, vector<1x1xf32>
    %30 = vector.broadcast %29 : vector<1x1xf32> to vector<16x1xf32>
    %31 = arith.addf %28, %30 : vector<16x1xf32>
    %c0_23 = arith.constant 0 : index
    %c0_24 = arith.constant 0 : index
    %32 = vector.load %arg2[%c0_23, %c0_24] : memref<16x9xbf16, #tpu.memory_space<vmem>>, vector<16x9xbf16>
    %33 = tpu.iota {dimensions = array<i32: 1>} : vector<16x9xi32>
    %c0_i32 = arith.constant 0 : i32
    %34 = vector.broadcast %c0_i32 : i32 to vector<16x9xi32>
    %35 = arith.cmpi eq, %33, %34 : vector<16x9xi32>
    %36 = arith.truncf %31 : vector<16x1xf32> to vector<16x1xbf16>
    %37 = vector.shape_cast %36 : vector<16x1xbf16> to vector<16x1xbf16>
    %38 = vector.broadcast %37 : vector<16x1xbf16> to vector<16x9xbf16>
    %39 = arith.select %35, %38, %32 : vector<16x9xi1>, vector<16x9xbf16>
    %c0_25 = arith.constant 0 : index
    %c0_26 = arith.constant 0 : index
    %40 = vector.load %arg11[%c0_25, %c0_26] : memref<9x1280xbf16, #tpu.memory_space<vmem>>, vector<9x1280xbf16>
    %cst_27 = arith.constant dense<0.000000e+00> : vector<16x1280xf32>
    %41 = tpu.matmul %39, %40, %cst_27 {dimension_numbers = #tpu.dot_dimension_numbers<[1], [0], [0], [1], [0, 0, 1, 1], [], []>} : vector<16x9xbf16>, vector<9x1280xbf16>, vector<16x1280xf32> -> vector<16x1280xf32>
    %c0_28 = arith.constant 0 : index
    %c0_29 = arith.constant 0 : index
    %42 = vector.load %arg12[%c0_28, %c0_29] : memref<1x1280xf32, #tpu.memory_space<vmem>>, vector<1x1280xf32>
    %43 = vector.broadcast %42 : vector<1x1280xf32> to vector<16x1280xf32>
    %44 = arith.addf %41, %43 : vector<16x1280xf32>
    %cst_30 = arith.constant 0.000000e+00 : f32
    %45 = vector.broadcast %cst_30 : f32 to vector<16x1280xf32>
    %46 = arith.maximumf %44, %45 : vector<16x1280xf32>
    %47 = arith.truncf %46 : vector<16x1280xf32> to vector<16x1280xbf16>
    %c0_31 = arith.constant 0 : index
    %c0_32 = arith.constant 0 : index
    %48 = vector.load %arg13[%c0_31, %c0_32] : memref<1280x320xbf16, #tpu.memory_space<vmem>>, vector<1280x320xbf16>
    %cst_33 = arith.constant dense<0.000000e+00> : vector<16x320xf32>
    %49 = tpu.matmul %47, %48, %cst_33 {dimension_numbers = #tpu.dot_dimension_numbers<[1], [0], [0], [1], [0, 0, 1, 1], [], []>} : vector<16x1280xbf16>, vector<1280x320xbf16>, vector<16x320xf32> -> vector<16x320xf32>
    %c0_34 = arith.constant 0 : index
    %c0_35 = arith.constant 0 : index
    %50 = vector.load %arg14[%c0_34, %c0_35] : memref<1x320xf32, #tpu.memory_space<vmem>>, vector<1x320xf32>
    %51 = vector.broadcast %50 : vector<1x320xf32> to vector<16x320xf32>
    %52 = arith.addf %49, %51 : vector<16x320xf32>
    %cst_36 = arith.constant 0.000000e+00 : f32
    %53 = vector.broadcast %cst_36 : f32 to vector<16x320xf32>
    %54 = arith.maximumf %52, %53 : vector<16x320xf32>
    %55 = arith.truncf %54 : vector<16x320xf32> to vector<16x320xbf16>
    %c0_37 = arith.constant 0 : index
    %c0_38 = arith.constant 0 : index
    %56 = vector.load %arg15[%c0_37, %c0_38] : memref<320x32xbf16, #tpu.memory_space<vmem>>, vector<320x32xbf16>
    %cst_39 = arith.constant dense<0.000000e+00> : vector<16x32xf32>
    %57 = tpu.matmul %55, %56, %cst_39 {dimension_numbers = #tpu.dot_dimension_numbers<[1], [0], [0], [1], [0, 0, 1, 1], [], []>} : vector<16x320xbf16>, vector<320x32xbf16>, vector<16x32xf32> -> vector<16x32xf32>
    %c0_40 = arith.constant 0 : index
    %c0_41 = arith.constant 0 : index
    %58 = vector.load %arg16[%c0_40, %c0_41] : memref<1x32xf32, #tpu.memory_space<vmem>>, vector<1x32xf32>
    %59 = vector.broadcast %58 : vector<1x32xf32> to vector<16x32xf32>
    %60 = arith.addf %57, %59 : vector<16x32xf32>
    %cst_42 = arith.constant 0.000000e+00 : f32
    %61 = vector.broadcast %cst_42 : f32 to vector<16x32xf32>
    %62 = arith.maximumf %60, %61 : vector<16x32xf32>
    %c0_43 = arith.constant 0 : index
    %c0_44 = arith.constant 0 : index
    %63 = vector.load %arg17[%c0_43, %c0_44] : memref<1x32xf32, #tpu.memory_space<vmem>>, vector<1x32xf32>
    %64 = vector.broadcast %63 : vector<1x32xf32> to vector<16x32xf32>
    %65 = arith.mulf %62, %64 : vector<16x32xf32>
    %cst_45 = arith.constant dense<0.000000e+00> : vector<16xf32>
    %66 = vector.multi_reduction <add>, %65, %cst_45 [1] : vector<16x32xf32> to vector<16xf32>
    %67 = vector.shape_cast %66 : vector<16xf32> to vector<16x1xf32>
    %c0_46 = arith.constant 0 : index
    %c0_47 = arith.constant 0 : index
    %68 = vector.load %arg18[%c0_46, %c0_47] : memref<1x1xf32, #tpu.memory_space<vmem>>, vector<1x1xf32>
    %69 = vector.broadcast %68 : vector<1x1xf32> to vector<16x1xf32>
    %70 = arith.addf %67, %69 : vector<16x1xf32>
    %71 = tpu.iota {dimensions = array<i32: 1>} : vector<16x2xi32>
    %c0_i32_48 = arith.constant 0 : i32
    %72 = vector.broadcast %c0_i32_48 : i32 to vector<16x2xi32>
    %73 = arith.cmpi eq, %71, %72 : vector<16x2xi32>
    %74 = vector.shape_cast %31 : vector<16x1xf32> to vector<16x1xf32>
    %75 = vector.broadcast %74 : vector<16x1xf32> to vector<16x2xf32>
    %76 = vector.shape_cast %70 : vector<16x1xf32> to vector<16x1xf32>
    %77 = vector.broadcast %76 : vector<16x1xf32> to vector<16x2xf32>
    %78 = arith.select %73, %75, %77 : vector<16x2xi1>, vector<16x2xf32>
    %c0_49 = arith.constant 0 : index
    %c0_50 = arith.constant 0 : index
    %79 = vector.load %arg19[%c0_49, %c0_50] : memref<16x2xf32, #tpu.memory_space<vmem>>, vector<16x2xf32>
    tpu.vector_store %arg19[%c0_49, %c0_50], %78 {strides = array<i32>} : memref<16x2xf32, #tpu.memory_space<vmem>>, vector<16x2xf32>,
    return
  }
  func.func @transform_0(%arg0: i32) -> (i32, i32) {
    %c0_i32 = arith.constant 0 : i32
    %c0_i32_0 = arith.constant 0 : i32
    return %arg0, %c0_i32 : i32, i32
  }
  func.func @transform_1(%arg0: i32) -> (i32, i32) {
    %c0_i32 = arith.constant 0 : i32
    %c0_i32_0 = arith.constant 0 : i32
    return %arg0, %c0_i32 : i32, i32
  }
  func.func @transform_2(%arg0: i32) -> (i32, i32) {
    %c0_i32 = arith.constant 0 : i32
    %c0_i32_0 = arith.constant 0 : i32
    %c0_i32_1 = arith.constant 0 : i32
    return %c0_i32, %c0_i32_0 : i32, i32
  }
  func.func @transform_3(%arg0: i32) -> (i32, i32) {
    %c0_i32 = arith.constant 0 : i32
    %c0_i32_0 = arith.constant 0 : i32
    %c0_i32_1 = arith.constant 0 : i32
    return %c0_i32, %c0_i32_0 : i32, i32
  }
  func.func @transform_4(%arg0: i32) -> (i32, i32) {
    %c0_i32 = arith.constant 0 : i32
    %c0_i32_0 = arith.constant 0 : i32
    %c0_i32_1 = arith.constant 0 : i32
    return %c0_i32, %c0_i32_0 : i32, i32
  }
  func.func @transform_5(%arg0: i32) -> (i32, i32) {
    %c0_i32 = arith.constant 0 : i32
    %c0_i32_0 = arith.constant 0 : i32
    %c0_i32_1 = arith.constant 0 : i32
    return %c0_i32, %c0_i32_0 : i32, i32
  }
  func.func @transform_6(%arg0: i32) -> (i32, i32) {
    %c0_i32 = arith.constant 0 : i32
    %c0_i32_0 = arith.constant 0 : i32
    %c0_i32_1 = arith.constant 0 : i32
    return %c0_i32, %c0_i32_0 : i32, i32
  }
  func.func @transform_7(%arg0: i32) -> (i32, i32) {
    %c0_i32 = arith.constant 0 : i32
    %c0_i32_0 = arith.constant 0 : i32
    %c0_i32_1 = arith.constant 0 : i32
    return %c0_i32, %c0_i32_0 : i32, i32
  }
  func.func @transform_8(%arg0: i32) -> (i32, i32) {
    %c0_i32 = arith.constant 0 : i32
    %c0_i32_0 = arith.constant 0 : i32
    %c0_i32_1 = arith.constant 0 : i32
    return %c0_i32, %c0_i32_0 : i32, i32
  }
  func.func @transform_9(%arg0: i32) -> (i32, i32) {
    %c0_i32 = arith.constant 0 : i32
    %c0_i32_0 = arith.constant 0 : i32
    %c0_i32_1 = arith.constant 0 : i32
    return %c0_i32, %c0_i32_0 : i32, i32
  }
  func.func @transform_10(%arg0: i32) -> (i32, i32) {
    %c0_i32 = arith.constant 0 : i32
    %c0_i32_0 = arith.constant 0 : i32
    %c0_i32_1 = arith.constant 0 : i32
    return %c0_i32, %c0_i32_0 : i32, i32
  }
  func.func @transform_11(%arg0: i32) -> (i32, i32) {
    %c0_i32 = arith.constant 0 : i32
    %c0_i32_0 = arith.constant 0 : i32
    %c0_i32_1 = arith.constant 0 : i32
    return %c0_i32, %c0_i32_0 : i32, i32
  }
  func.func @transform_12(%arg0: i32) -> (i32, i32) {
    %c0_i32 = arith.constant 0 : i32
    %c0_i32_0 = arith.constant 0 : i32
    %c0_i32_1 = arith.constant 0 : i32
    return %c0_i32, %c0_i32_0 : i32, i32
  }
  func.func @transform_13(%arg0: i32) -> (i32, i32) {
    %c0_i32 = arith.constant 0 : i32
    %c0_i32_0 = arith.constant 0 : i32
    %c0_i32_1 = arith.constant 0 : i32
    return %c0_i32, %c0_i32_0 : i32, i32
  }
  func.func @transform_14(%arg0: i32) -> (i32, i32) {
    %c0_i32 = arith.constant 0 : i32
    %c0_i32_0 = arith.constant 0 : i32
    %c0_i32_1 = arith.constant 0 : i32
    return %c0_i32, %c0_i32_0 : i32, i32
  }
  func.func @transform_15(%arg0: i32) -> (i32, i32) {
    %c0_i32 = arith.constant 0 : i32
    %c0_i32_0 = arith.constant 0 : i32
    %c0_i32_1 = arith.constant 0 : i32
    return %c0_i32, %c0_i32_0 : i32, i32
  }
  func.func @transform_16(%arg0: i32) -> (i32, i32) {
    %c0_i32 = arith.constant 0 : i32
    %c0_i32_0 = arith.constant 0 : i32
    %c0_i32_1 = arith.constant 0 : i32
    return %c0_i32, %c0_i32_0 : i32, i32
  }
  func.func @transform_17(%arg0: i32) -> (i32, i32) {
    %c0_i32 = arith.constant 0 : i32
    %c0_i32_0 = arith.constant 0 : i32
    %c0_i32_1 = arith.constant 0 : i32
    return %c0_i32, %c0_i32_0 : i32, i32
  }
  func.func @transform_18(%arg0: i32) -> (i32, i32) {
    %c0_i32 = arith.constant 0 : i32
    %c0_i32_0 = arith.constant 0 : i32
    return %arg0, %c0_i32 : i32, i32
  }
}

</mosaic_0001>

<bundles_post_ra>
// kernel: tpu_custom_call.1
= control target key start
LH: loop header
LB: loop body
LE: loop exit
PB: predicated region body
PF: predicated region fallthrough
CT: control target
= control target key end

     0   :  { %vm155_vm0 = vcmask 130048   ;;  %vm2530_vm1 = vcmask 523264   ;;  %vm2584_vm2 = vcmask 261120   ;;  %vm2708_vm3 = vcmask 1043456   ;;  %s11443_s2 = inlined_call_operand.vmem [shape: bf16[16,1280], index: 2, kind: input, shape index: {}]   ;;  %s11444_s0 = inlined_call_operand.vmem [shape: bf16[16,16], index: 0, kind: input, shape index: {}]   ;;  %s11445_s4 = inlined_call_operand.vmem [shape: bf16[1280,320], index: 4, kind: input, shape index: {}]   ;;  %s11446_s3 = inlined_call_operand.vmem [shape: f32[1,1280], index: 3, kind: input, shape index: {}]   ;;  %s11447_s5 = inlined_call_operand.vmem [shape: f32[1,320], index: 5, kind: input, shape index: {}]   ;;  %s11448_s6 = inlined_call_operand.vmem [shape: bf16[320,32], index: 6, kind: input, shape index: {}]   ;;  %s11449_s7 = inlined_call_operand.vmem [shape: f32[1,32], index: 7, kind: input, shape index: {}]   ;;  %s11450_s8 = inlined_call_operand.vmem [shape: f32[1,32], index: 8, kind: input, shape index: {}]   ;;  %s11451_s9 = inlined_call_operand.<no memory space> [shape: f32[1,1], index: 9, kind: input, shape index: {}]   ;;  %s11452_s10 = inlined_call_operand.vmem [shape: bf16[9,1280], index: 10, kind: input, shape index: {}]   ;;  %s11453_s1 = inlined_call_operand.vmem [shape: bf16[16,9], index: 1, kind: input, shape index: {}]   ;;  %s11454_s12 = inlined_call_operand.vmem [shape: bf16[1280,320], index: 12, kind: input, shape index: {}]   ;;  %s11455_s11 = inlined_call_operand.vmem [shape: f32[1,1280], index: 11, kind: input, shape index: {}]   ;;  %s11456_s13 = inlined_call_operand.vmem [shape: f32[1,320], index: 13, kind: input, shape index: {}]   ;;  %s11457_s14 = inlined_call_operand.vmem [shape: bf16[320,32], index: 14, kind: input, shape index: {}]   ;;  %s11458_s15 = inlined_call_operand.vmem [shape: f32[1,32], index: 15, kind: input, shape index: {}]   ;;  %s11459_s16 = inlined_call_operand.vmem [shape: f32[1,32], index: 16, kind: input, shape index: {}]   ;;  %s11460_s17 = inlined_call_operand.<no memory space> [shape: f32[1,1], index: 17, kind: input, shape index: {}]   ;;  %s11461_s18 = inlined_call_operand.vmem [shape: f32[16,2], index: 18, kind: output, shape index: {}]  }
   0x1   :  { %11464 = sst [smem:[#allocation4_spill]] %s11443_s2  ;;  %vm2709_vm4 = vcmask 1044480   ;;  %vm2704_vm7 = vcmask 72704   ;;  %vm5200_vm8 = vcmask 15360  }
   0x2   :  { %11465 = sst [smem:[#allocation5_spill]] %s11444_s0 }
   0x3   :  { %11466 = sst [smem:[#allocation6_spill]] %s11445_s4 }
   0x4   :  { %s11467_s29 = sld [smem:[#allocation4_spill]] }
   0x5   :  { %s11468_s19 = sld [smem:[#allocation5_spill]] }
   0x6   :  { %s11469_s2 = sld [smem:[#allocation6_spill]] }
   0xa   :  { %v5213_v0 = vld [vmem:[%s11467_s29] sm:$0xf]  ;;  %v7399_v1 = vld [vmem:[%s11467_s29 + $0x24] sm:$0xf0]  ;;  %v7394_v2 = vld [vmem:[%s11467_s29 + $0x4] sm:$0xf] }
   0xb   :  { %v5214_v3 = vor.u32 %v7399_v1, %v5213_v0  ;;  %v5215_v4 = vld [vmem:[%s11467_s29 + $0x28] sm:$0xf0]  ;;  %v5221_v5 = vld [vmem:[%s11467_s29 + $0x8] sm:$0xf]  ;;  %v7400_v6 = vld [vmem:[%s11467_s29 + $0x2c] sm:$0xf0] }
   0xc   :  { %v5218_v7 = vor.u32 %v7394_v2, %v5215_v4  ;;  %v5222_v8 = vor.u32 %v7400_v6, %v5221_v5  ;;  %v7395_v9 = vld [vmem:[%s11467_s29 + $0xc] sm:$0xf]  ;;  %v5223_v10 = vld [vmem:[%s11467_s29 + $0x30] sm:$0xf0]  ;;  %v8071_v11 = vld [vmem:[%s11468_s19] sm:$0xff] }
   0xd   :  { %166 = vmatpush.bf16.msra.mxu0 %v5214_v3  ;;  %v5226_v12 = vor.u32 %v7395_v9, %v5223_v10  ;;  %v5229_v13 = vld [vmem:[%s11467_s29 + $0x10] sm:$0xf]  ;;  %v7401_v14 = vld [vmem:[%s11467_s29 + $0x34] sm:$0xf0]  ;;  %v7396_v15 = vld [vmem:[%s11467_s29 + $0x14] sm:$0xf] }
   0xe   :  { %180 = vmatpush.bf16.msra.mxu1 %v5218_v7  ;;  %194 = vmatpush.bf16.msra.mxu2 %v5222_v8  ;;  %v5230_v16 = vor.u32 %v7401_v14, %v5229_v13  ;;  %v5231_v17 = vld [vmem:[%s11467_s29 + $0x38] sm:$0xf0]  ;;  %v5237_v18 = vld [vmem:[%s11467_s29 + $0x18] sm:$0xf]  ;;  %v7402_v19 = vld [vmem:[%s11467_s29 + $0x3c] sm:$0xf0] }
   0xf   :  { %208 = vmatpush.bf16.msra.mxu3 %v5226_v12  ;;  %v5234_v20 = vor.u32 %v7396_v15, %v5231_v17  ;;  %v5238_v21 = vor.u32 %v7402_v19, %v5237_v18  ;;  %v7397_v22 = vld [vmem:[%s11467_s29 + $0x1c] sm:$0xf]  ;;  %v5239_v23 = vld [vmem:[%s11467_s29 + $0x40] sm:$0xf0]  ;;  %v5245_v24 = vld [vmem:[%s11467_s29 + $0x20] sm:$0xf] }
  0x10   :  { %5251 = vmatmul.msk.bf16.vlgmr.msra.gmra.mxu0 %vm155_vm0, %v8071_v11  ;;  %v5242_v25 = vor.u32 %v7397_v22, %v5239_v23  ;;  %v7403_v26 = vld [vmem:[%s11467_s29 + $0x44] sm:$0xf0]  ;;  %v7398_v27 = vld [vmem:[%s11467_s29 + $0x24] sm:$0xf]  ;;  %v5247_v28 = vld [vmem:[%s11467_s29 + $0x48] sm:$0xf0] }
  0x11   :  { %5252 = vmatmul.msk.bf16.vlgmr.msra.gmra.mxu1 %vm155_vm0, %v8071_v11  ;;  %5253 = vmatmul.msk.bf16.vlgmr.msra.gmra.mxu2 %vm155_vm0, %v8071_v11  ;;  %v5246_v29 = vor.u32 %v7403_v26, %v5245_v24  ;;  %v5250_v30 = vor.u32 %v7398_v27, %v5247_v28  ;;  %v5347_v31 = vld [vmem:[%s11469_s2 + $0xa8] sm:$0xf]  ;;  %v7426_v32 = vld [vmem:[%s11469_s2 + $0xb0] sm:$0xf0]  ;;  %v5335_v36 = vld [vmem:[%s11469_s2 + $0x90] sm:$0xf] }
  0x12   :  { %v5443_v33 = vld [vmem:[%s11469_s2 + $0x168] sm:$0xf]  ;;  %5254 = vmatmul.msk.bf16.vlgmr.msra.gmra.mxu3 %vm155_vm0, %v8071_v11  ;;  %222 = vmatpush.bf16.msrb.mxu0 %v5230_v16  ;;  %v5348_v34 = vor.u32 %v7426_v32, %v5347_v31  ;;  %v7450_v35 = vld [vmem:[%s11469_s2 + $0x170] sm:$0xf0]  ;;  %v7423_v37 = vld [vmem:[%s11469_s2 + $0x98] sm:$0xf0] }
  0x13   :  { %236 = vmatpush.bf16.msrb.mxu1 %v5234_v20  ;;  %250 = vmatpush.bf16.msrb.mxu2 %v5238_v21  ;;  %v5444_v38 = vor.u32 %v7450_v35, %v5443_v33  ;;  %v5431_v39 = vld [vmem:[%s11469_s2 + $0x150] sm:$0xf]  ;;  %v7447_v40 = vld [vmem:[%s11469_s2 + $0x158] sm:$0xf0]  ;;  %v5336_v41 = vor.u32 %v7423_v37, %v5335_v36  ;;  %v5323_v43 = vld [vmem:[%s11469_s2 + $0x78] sm:$0xf] }
  0x14   :  { %264 = vmatpush.bf16.msrb.mxu3 %v5242_v25  ;;  %v5432_v42 = vor.u32 %v7447_v40, %v5431_v39  ;;  %v7420_v44 = vld [vmem:[%s11469_s2 + $0x80] sm:$0xf0]  ;;  %v5419_v45 = vld [vmem:[%s11469_s2 + $0x138] sm:$0xf]  ;;  %v5539_v49 = vld [vmem:[%s11469_s2 + $0x228] sm:$0xf] }
  0x15   :  { %v7444_v46 = vld [vmem:[%s11469_s2 + $0x140] sm:$0xf0]  ;;  %v5324_v47 = vor.u32 %v7420_v44, %v5323_v43  ;;  %v7474_v50 = vld [vmem:[%s11469_s2 + $0x230] sm:$0xf0]  ;;  %v5635_v51 = vld [vmem:[%s11469_s2 + $0x2e8] sm:$0xf] }
  0x16   :  { %278 = vmatpush.bf16.msra.mxu0 %v5246_v29  ;;  %v5420_v48 = vor.u32 %v7444_v46, %v5419_v45  ;;  %v7498_v52 = vld [vmem:[%s11469_s2 + $0x2f0] sm:$0xf0]  ;;  %v5311_v53 = vld [vmem:[%s11469_s2 + $0x60] sm:$0xf]  ;;  %v7417_v54 = vld [vmem:[%s11469_s2 + $0x68] sm:$0xf0]  ;;  %v5540_v57 = vor.u32 %v7474_v50, %v5539_v49 }
  0x17   :  { %292 = vmatpush.bf16.msra.mxu1 %v5250_v30  ;;  %1937 = vmatpush.bf16.msra.mxu2 %v5348_v34  ;;  %v5407_v55 = vld [vmem:[%s11469_s2 + $0x120] sm:$0xf]  ;;  %v7441_v56 = vld [vmem:[%s11469_s2 + $0x128] sm:$0xf0]  ;;  %v5636_v58 = vor.u32 %v7498_v52, %v5635_v51  ;;  %v5527_v59 = vld [vmem:[%s11469_s2 + $0x210] sm:$0xf]  ;;  %v5312_v62 = vor.u32 %v7417_v54, %v5311_v53 }
  0x18   :  { %1951 = vmatpush.bf16.msra.mxu3 %v5444_v38  ;;  %v7471_v60 = vld [vmem:[%s11469_s2 + $0x218] sm:$0xf0]  ;;  %v5623_v61 = vld [vmem:[%s11469_s2 + $0x2d0] sm:$0xf]  ;;  %v5408_v0 = vor.u32 %v7441_v56, %v5407_v55  ;;  %v5299_v1 = vld [vmem:[%s11469_s2 + $0x48] sm:$0xf] }
  0x19   :  { %v7495_v63 = vld [vmem:[%s11469_s2 + $0x2d8] sm:$0xf0]  ;;  %v7414_v2 = vld [vmem:[%s11469_s2 + $0x50] sm:$0xf0]  ;;  %v5395_v3 = vld [vmem:[%s11469_s2 + $0x108] sm:$0xf]  ;;  %v5528_v5 = vor.u32 %v7471_v60, %v5527_v59 }
  0x1a   :  { %v7438_v4 = vld [vmem:[%s11469_s2 + $0x110] sm:$0xf0]  ;;  %v5624_v6 = vor.u32 %v7495_v63, %v5623_v61  ;;  %v5515_v7 = vld [vmem:[%s11469_s2 + $0x1f8] sm:$0xf]  ;;  %v7468_v8 = vld [vmem:[%s11469_s2 + $0x200] sm:$0xf0]  ;;  %v5300_v10 = vor.u32 %v7414_v2, %v5299_v1 }
  0x1b   :  { %1938 = vmatpush.bf16.msra.mxu2 %v5336_v41  ;;  %v5611_v9 = vld [vmem:[%s11469_s2 + $0x2b8] sm:$0xf]  ;;  %v7492_v12 = vld [vmem:[%s11469_s2 + $0x2c0] sm:$0xf0]  ;;  %v5396_v13 = vor.u32 %v7438_v4, %v5395_v3  ;;  %v5287_v14 = vld [vmem:[%s11469_s2 + $0x30] sm:$0xf]  ;;  %v5516_v18 = vor.u32 %v7468_v8, %v5515_v7 }
  0x1c   :  { %1952 = vmatpush.bf16.msra.mxu3 %v5432_v42  ;;  %v7411_v15 = vld [vmem:[%s11469_s2 + $0x38] sm:$0xf0]  ;;  %v5383_v16 = vld [vmem:[%s11469_s2 + $0xf0] sm:$0xf]  ;;  %v5612_v19 = vor.u32 %v7492_v12, %v5611_v9  ;;  %v5503_v20 = vld [vmem:[%s11469_s2 + $0x1e0] sm:$0xf] }
  0x1d   :  { %v7435_v17 = vld [vmem:[%s11469_s2 + $0xf8] sm:$0xf0]  ;;  %v7465_v21 = vld [vmem:[%s11469_s2 + $0x1e8] sm:$0xf0]  ;;  %v5599_v22 = vld [vmem:[%s11469_s2 + $0x2a0] sm:$0xf]  ;;  %v5288_v23 = vor.u32 %v7411_v15, %v5287_v14 }
  0x1e   :  { %v7489_v24 = vld [vmem:[%s11469_s2 + $0x2a8] sm:$0xf0]  ;;  %v5384_v25 = vor.u32 %v7435_v17, %v5383_v16  ;;  %v5275_v26 = vld [vmem:[%s11469_s2 + $0x18] sm:$0xf]  ;;  %v7408_v27 = vld [vmem:[%s11469_s2 + $0x20] sm:$0xf0]  ;;  %v5504_v30 = vor.u32 %v7465_v21, %v5503_v20 }
  0x1f   :  { %1939 = vmatpush.bf16.msra.mxu2 %v5324_v47  ;;  %v5371_v28 = vld [vmem:[%s11469_s2 + $0xd8] sm:$0xf]  ;;  %v7432_v29 = vld [vmem:[%s11469_s2 + $0xe0] sm:$0xf0]  ;;  %v5491_v31 = vld [vmem:[%s11469_s2 + $0x1c8] sm:$0xf]  ;;  %v5600_v32 = vor.u32 %v7489_v24, %v5599_v22  ;;  %v5276_v36 = vor.u32 %v7408_v27, %v5275_v26 }
  0x20   :  { %1953 = vmatpush.bf16.msra.mxu3 %v5420_v48  ;;  %5255 = vmatmul.msk.bf16.vlgmr.msrb.gmra.mxu0 %vm155_vm0, %v8071_v11  ;;  %v7462_v33 = vld [vmem:[%s11469_s2 + $0x1d0] sm:$0xf0]  ;;  %v5587_v34 = vld [vmem:[%s11469_s2 + $0x288] sm:$0xf]  ;;  %v5372_v37 = vor.u32 %v7432_v29, %v5371_v28  ;;  %v5263_v38 = vld [vmem:[%s11469_s2] sm:$0xf] }
  0x21   :  { %5256 = vmatmul.msk.bf16.vlgmr.msrb.gmra.mxu1 %vm155_vm0, %v8071_v11  ;;  %5257 = vmatmul.msk.bf16.vlgmr.msrb.gmra.mxu2 %vm155_vm0, %v8071_v11  ;;  %v7486_v35 = vld [vmem:[%s11469_s2 + $0x290] sm:$0xf0]  ;;  %v7405_v39 = vld [vmem:[%s11469_s2 + $0x8] sm:$0xf0]  ;;  %v5359_v40 = vld [vmem:[%s11469_s2 + $0xc0] sm:$0xf]  ;;  %v5492_v44 = vor.u32 %v7462_v33, %v5491_v31 }
  0x22   :  { %5258 = vmatmul.msk.bf16.vlgmr.msrb.gmra.mxu3 %vm155_vm0, %v8071_v11  ;;  %1965 = vmatpush.bf16.msrb.mxu0 %v5540_v57  ;;  %v7429_v41 = vld [vmem:[%s11469_s2 + $0xc8] sm:$0xf0]  ;;  %v5731_v42 = vld [vmem:[%s11469_s2 + $0x3a8] sm:$0xf]  ;;  %v7522_v43 = vld [vmem:[%s11469_s2 + $0x3b0] sm:$0xf0]  ;;  %v5588_v47 = vor.u32 %v7486_v35, %v5587_v34  ;;  %v5264_v50 = vor.u32 %v7405_v39, %v5263_v38 }
  0x23   :  { %1979 = vmatpush.bf16.msrb.mxu1 %v5636_v58  ;;  %1940 = vmatpush.bf16.msra.mxu2 %v5312_v62  ;;  %v5827_v45 = vld [vmem:[%s11469_s2 + $0x468] sm:$0xf]  ;;  %v7546_v46 = vld [vmem:[%s11469_s2 + $0x470] sm:$0xf0]  ;;  %v5479_v48 = vld [vmem:[%s11469_s2 + $0x1b0] sm:$0xf]  ;;  %v5360_v53 = vor.u32 %v7429_v41, %v5359_v40  ;;  %v5732_v54 = vor.u32 %v7522_v43, %v5731_v42 }
  0x24   :  { %1954 = vmatpush.bf16.msra.mxu3 %v5408_v0  ;;  %v7459_v49 = vld [vmem:[%s11469_s2 + $0x1b8] sm:$0xf0]  ;;  %v5575_v51 = vld [vmem:[%s11469_s2 + $0x270] sm:$0xf]  ;;  %v5828_v55 = vor.u32 %v7546_v46, %v5827_v45  ;;  %v5467_v61 = vld [vmem:[%s11469_s2 + $0x198] sm:$0xf] }
  0x25   :  { %v7483_v52 = vld [vmem:[%s11469_s2 + $0x278] sm:$0xf0]  ;;  %v5719_v56 = vld [vmem:[%s11469_s2 + $0x390] sm:$0xf]  ;;  %v5480_v58 = vor.u32 %v7459_v49, %v5479_v48  ;;  %v7456_v62 = vld [vmem:[%s11469_s2 + $0x1a0] sm:$0xf0] }
  0x26   :  { %1966 = vmatpush.bf16.msrb.mxu0 %v5528_v5  ;;  %v7519_v57 = vld [vmem:[%s11469_s2 + $0x398] sm:$0xf0]  ;;  %v5815_v59 = vld [vmem:[%s11469_s2 + $0x450] sm:$0xf]  ;;  %v5563_v63 = vld [vmem:[%s11469_s2 + $0x258] sm:$0xf]  ;;  %v5468_v5 = vor.u32 %v7456_v62, %v5467_v61 }
  0x27   :  { %1980 = vmatpush.bf16.msrb.mxu1 %v5624_v6  ;;  %1941 = vmatpush.bf16.msra.mxu2 %v5300_v10  ;;  %v7543_v60 = vld [vmem:[%s11469_s2 + $0x458] sm:$0xf0]  ;;  %v7480_v0 = vld [vmem:[%s11469_s2 + $0x260] sm:$0xf0]  ;;  %v5720_v1 = vor.u32 %v7519_v57, %v5719_v56  ;;  %v5707_v3 = vld [vmem:[%s11469_s2 + $0x378] sm:$0xf] }
  0x28   :  { %1955 = vmatpush.bf16.msra.mxu3 %v5396_v13  ;;  %v5816_v2 = vor.u32 %v7543_v60, %v5815_v59  ;;  %v7516_v4 = vld [vmem:[%s11469_s2 + $0x380] sm:$0xf0]  ;;  %v5455_v6 = vld [vmem:[%s11469_s2 + $0x180] sm:$0xf]  ;;  %v5803_v7 = vld [vmem:[%s11469_s2 + $0x438] sm:$0xf]  ;;  %v5564_v9 = vor.u32 %v7480_v0, %v5563_v63 }
  0x29   :  { %v7540_v8 = vld [vmem:[%s11469_s2 + $0x440] sm:$0xf0]  ;;  %v7453_v10 = vld [vmem:[%s11469_s2 + $0x188] sm:$0xf0]  ;;  %v5551_v12 = vld [vmem:[%s11469_s2 + $0x240] sm:$0xf]  ;;  %v5708_v17 = vor.u32 %v7516_v4, %v5707_v3 }
  0x2a   :  { %1967 = vmatpush.bf16.msrb.mxu0 %v5516_v18  ;;  %v7477_v13 = vld [vmem:[%s11469_s2 + $0x248] sm:$0xf0]  ;;  %v5923_v14 = vld [vmem:[%s11469_s2 + $0x528] sm:$0xf]  ;;  %v7570_v15 = vld [vmem:[%s11469_s2 + $0x530] sm:$0xf0]  ;;  %v5456_v22 = vor.u32 %v7453_v10, %v5455_v6 }
  0x2b   :  { %1981 = vmatpush.bf16.msrb.mxu1 %v5612_v19  ;;  %1942 = vmatpush.bf16.msra.mxu2 %v5288_v23  ;;  %v6019_v16 = vld [vmem:[%s11469_s2 + $0x5e8] sm:$0xf]  ;;  %v7594_v18 = vld [vmem:[%s11469_s2 + $0x5f0] sm:$0xf0]  ;;  %v5804_v19 = vor.u32 %v7540_v8, %v5803_v7  ;;  %v5695_v20 = vld [vmem:[%s11469_s2 + $0x360] sm:$0xf]  ;;  %v5924_v26 = vor.u32 %v7570_v15, %v5923_v14 }
  0x2c   :  { %1956 = vmatpush.bf16.msra.mxu3 %v5384_v25  ;;  %v7513_v21 = vld [vmem:[%s11469_s2 + $0x368] sm:$0xf0]  ;;  %v5791_v23 = vld [vmem:[%s11469_s2 + $0x420] sm:$0xf]  ;;  %v5552_v25 = vor.u32 %v7477_v13, %v5551_v12  ;;  %v6020_v27 = vor.u32 %v7594_v18, %v6019_v16  ;;  %v5911_v28 = vld [vmem:[%s11469_s2 + $0x510] sm:$0xf] }
  0x2d   :  { %v7537_v24 = vld [vmem:[%s11469_s2 + $0x428] sm:$0xf0]  ;;  %v7567_v29 = vld [vmem:[%s11469_s2 + $0x518] sm:$0xf0]  ;;  %v6007_v31 = vld [vmem:[%s11469_s2 + $0x5d0] sm:$0xf] }
  0x2e   :  { %1968 = vmatpush.bf16.msrb.mxu0 %v5504_v30  ;;  %v5696_v30 = vor.u32 %v7513_v21, %v5695_v20  ;;  %v5792_v33 = vor.u32 %v7537_v24, %v5791_v23  ;;  %v5912_v34 = vor.u32 %v7567_v29, %v5911_v28  ;;  %v5995_v38 = vld [vmem:[%s11469_s2 + $0x5b8] sm:$0xf]  ;;  %v7588_v40 = vld [vmem:[%s11469_s2 + $0x5c0] sm:$0xf0]  ;;  %v5683_v42 = vld [vmem:[%s11469_s2 + $0x348] sm:$0xf] }
  0x2f   :  { %1982 = vmatpush.bf16.msrb.mxu1 %v5600_v32  ;;  %1943 = vmatpush.bf16.msra.mxu2 %v5276_v36  ;;  %v7591_v32 = vld [vmem:[%s11469_s2 + $0x5d8] sm:$0xf0]  ;;  %v5899_v36 = vld [vmem:[%s11469_s2 + $0x4f8] sm:$0xf]  ;;  %v5996_v41 = vor.u32 %v7588_v40, %v5995_v38  ;;  %v7510_v43 = vld [vmem:[%s11469_s2 + $0x350] sm:$0xf0] }
  0x30   :  { %5259 = vmatmul.msk.bf16.vlgmr.msra.gmra.mxu0 %vm155_vm0, %v8071_v11  ;;  %1957 = vmatpush.bf16.msra.mxu3 %v5372_v37  ;;  %v6008_v35 = vor.u32 %v7591_v32, %v6007_v31  ;;  %v7564_v37 = vld [vmem:[%s11469_s2 + $0x500] sm:$0xf0]  ;;  %v5684_v45 = vor.u32 %v7510_v43, %v5683_v42  ;;  %v7534_v46 = vld [vmem:[%s11469_s2 + $0x410] sm:$0xf0]  ;;  %v5887_v48 = vld [vmem:[%s11469_s2 + $0x4e0] sm:$0xf] }
  0x31   :  { %5260 = vmatmul.msk.bf16.vlgmr.msra.gmra.mxu1 %vm155_vm0, %v8071_v11  ;;  %v5576_v11 = vor.u32 %v7483_v52, %v5575_v51  ;;  %v5900_v39 = vor.u32 %v7564_v37, %v5899_v36  ;;  %v7561_v49 = vld [vmem:[%s11469_s2 + $0x4e8] sm:$0xf0]  ;;  %v5983_v51 = vld [vmem:[%s11469_s2 + $0x5a0] sm:$0xf]  ;;  %v5767_v56 = vld [vmem:[%s11469_s2 + $0x3f0] sm:$0xf] }
  0x32   :  { %1969 = vmatpush.bf16.msrb.mxu0 %v5492_v44  ;;  %v5779_v44 = vld [vmem:[%s11469_s2 + $0x408] sm:$0xf]  ;;  %v7585_v52 = vld [vmem:[%s11469_s2 + $0x5a8] sm:$0xf0]  ;;  %v7582_v63 = vld [vmem:[%s11469_s2 + $0x590] sm:$0xf0] }
  0x33   :  { %1983 = vmatpush.bf16.msrb.mxu1 %v5588_v47  ;;  %1944 = vmatpush.bf16.msra.mxu2 %v5264_v50  ;;  %v5780_v47 = vor.u32 %v7534_v46, %v5779_v44  ;;  %v5888_v50 = vor.u32 %v7561_v49, %v5887_v48  ;;  %v5875_v60 = vld [vmem:[%s11469_s2 + $0x4c8] sm:$0xf]  ;;  %v5755_v3 = vld [vmem:[%s11469_s2 + $0x3d8] sm:$0xf]  ;;  %v5863_v7 = vld [vmem:[%s11469_s2 + $0x4b0] sm:$0xf] }
  0x34   :  { %1958 = vmatpush.bf16.msra.mxu3 %v5360_v53  ;;  %v5984_v53 = vor.u32 %v7585_v52, %v5983_v51  ;;  %v5971_v61 = vld [vmem:[%s11469_s2 + $0x588] sm:$0xf]  ;;  %v7555_v8 = vld [vmem:[%s11469_s2 + $0x4b8] sm:$0xf0]  ;;  %v5647_v14 = vld [vmem:[%s11469_s2 + $0x300] sm:$0xf] }
  0x35   :  { %v5972_v0 = vor.u32 %v7582_v63, %v5971_v61  ;;  %v5864_v10 = vor.u32 %v7555_v8, %v5863_v7  ;;  %v7579_v12 = vld [vmem:[%s11469_s2 + $0x578] sm:$0xf0]  ;;  %v7501_v15 = vld [vmem:[%s11469_s2 + $0x308] sm:$0xf0]  ;;  %v5743_v16 = vld [vmem:[%s11469_s2 + $0x3c0] sm:$0xf] }
  0x36   :  { %1970 = vmatpush.bf16.msrb.mxu0 %v5480_v58  ;;  %v7531_v58 = vld [vmem:[%s11469_s2 + $0x3f8] sm:$0xf0]  ;;  %v7525_v18 = vld [vmem:[%s11469_s2 + $0x3c8] sm:$0xf0]  ;;  %v5851_v20 = vld [vmem:[%s11469_s2 + $0x498] sm:$0xf] }
  0x37   :  { %1993 = vmatpush.bf16.msrb.mxu2 %v5732_v54  ;;  %1984 = vmatpush.bf16.msrb.mxu1 %v5576_v11  ;;  %v5671_v54 = vld [vmem:[%s11469_s2 + $0x330] sm:$0xf]  ;;  %v5768_v59 = vor.u32 %v7531_v58, %v5767_v56  ;;  %v7558_v11 = vld [vmem:[%s11469_s2 + $0x4d0] sm:$0xf0]  ;;  %v7552_v21 = vld [vmem:[%s11469_s2 + $0x4a0] sm:$0xf0] }
  0x38   :  { %2007 = vmatpush.bf16.msrb.mxu3 %v5828_v55  ;;  %v7507_v55 = vld [vmem:[%s11469_s2 + $0x338] sm:$0xf0]  ;;  %v5876_v62 = vor.u32 %v7558_v11, %v5875_v60  ;;  %v7576_v23 = vld [vmem:[%s11469_s2 + $0x560] sm:$0xf0]  ;;  %v5852_v24 = vor.u32 %v7552_v21, %v5851_v20  ;;  %v5935_v29 = vld [vmem:[%s11469_s2 + $0x540] sm:$0xf] }
  0x39   :  { %v5672_v57 = vor.u32 %v7507_v55, %v5671_v54  ;;  %v8516_v32 = vld [vmem:[%s11446_s3] sm:$0xff]  ;;  %v6115_v46 = vld [vmem:[%s11469_s2 + $0x6a8] sm:$0xf]  ;;  %v6103_v60 = vld [vmem:[%s11469_s2 + $0x690] sm:$0xf] }
  0x3a   :  { %1971 = vmatpush.bf16.msrb.mxu0 %v5468_v5  ;;  %v7528_v5 = vld [vmem:[%s11469_s2 + $0x3e0] sm:$0xf0]  ;;  %v81_v36 = vperm.slane %v8516_v32, 1  ;;  %v82_v40 = vperm.slane %v8516_v32, 2  ;;  %v83_v43 = vperm.slane %v8516_v32, 3 }
  0x3b   :  { %1994 = vmatpush.bf16.msrb.mxu2 %v5720_v1  ;;  %1985 = vmatpush.bf16.msrb.mxu1 %v5564_v9  ;;  %v5659_v1 = vld [vmem:[%s11469_s2 + $0x318] sm:$0xf]  ;;  %v5756_v6 = vor.u32 %v7528_v5, %v5755_v3  ;;  %v5959_v9 = vld [vmem:[%s11469_s2 + $0x570] sm:$0xf]  ;;  %v6211_v49 = vld [vmem:[%s11469_s2 + $0x768] sm:$0xf] }
  0x3c   :  { %2008 = vmatpush.bf16.msrb.mxu3 %v5816_v2  ;;  %v7504_v2 = vld [vmem:[%s11469_s2 + $0x320] sm:$0xf0]  ;;  %v5960_v13 = vor.u32 %v7579_v12, %v5959_v9  ;;  %v7615_v11 = vld [vmem:[%s11469_s2 + $0x698] sm:$0xf0]  ;;  %v7449_v8 = vld [vmem:[%s11469_s2 + $0x16c] sm:$0xf] }
  0x3d   :  { %v5660_v4 = vor.u32 %v7504_v2, %v5659_v1  ;;  %v7639_v63 = vld [vmem:[%s11469_s2 + $0x758] sm:$0xf0]  ;;  %v7425_v1 = vld [vmem:[%s11469_s2 + $0xac] sm:$0xf]  ;;  %v5349_v2 = vld [vmem:[%s11469_s2 + $0xb4] sm:$0xf0]  ;;  %v6104_v7 = vor.u32 %v7615_v11, %v6103_v60 }
  0x3e   :  { %1972 = vmatpush.bf16.msrb.mxu0 %v5456_v22  ;;  %v5947_v22 = vld [vmem:[%s11469_s2 + $0x558] sm:$0xf]  ;;  %v7636_v21 = vld [vmem:[%s11469_s2 + $0x740] sm:$0xf0]  ;;  %v6163_v11 = vld [vmem:[%s11469_s2 + $0x708] sm:$0xf] }
  0x3f   :  { %1995 = vmatpush.bf16.msrb.mxu2 %v5708_v17  ;;  %1986 = vmatpush.bf16.msrb.mxu1 %v5552_v25  ;;  %v5648_v17 = vor.u32 %v7501_v15, %v5647_v14  ;;  %v5948_v25 = vor.u32 %v7576_v23, %v5947_v22  ;;  %v5445_v9 = vld [vmem:[%s11469_s2 + $0x174] sm:$0xf0]  ;;  %v5352_v23 = vor.u32 %v7425_v1, %v5349_v2 }
  0x40   :  { %2009 = vmatpush.bf16.msrb.mxu3 %v5804_v19  ;;  %v5744_v19 = vor.u32 %v7525_v18, %v5743_v16  ;;  %v6091_v16 = vld [vmem:[%s11469_s2 + $0x678] sm:$0xf] }
  0x41   :  { %v6187_v20 = vld [vmem:[%s11469_s2 + $0x738] sm:$0xf] }
  0x42   :  { %2021 = vmatpush.bf16.msra.mxu0 %v5924_v26  ;;  %v5839_v26 = vld [vmem:[%s11469_s2 + $0x480] sm:$0xf] }
  0x43   :  { %2035 = vmatpush.bf16.msra.mxu1 %v6020_v27  ;;  %1996 = vmatpush.bf16.msrb.mxu2 %v5696_v30  ;;  %v7549_v27 = vld [vmem:[%s11469_s2 + $0x488] sm:$0xf0] }
  0x44   :  { %2010 = vmatpush.bf16.msrb.mxu3 %v5792_v33  ;;  %v5840_v28 = vor.u32 %v7549_v27, %v5839_v26  ;;  %v7573_v30 = vld [vmem:[%s11469_s2 + $0x548] sm:$0xf0]  ;;  %v7422_v27 = vld [vmem:[%s11469_s2 + $0x94] sm:$0xf] }
  0x45   :  { %v5936_v31 = vor.u32 %v7573_v30, %v5935_v29  ;;  %v7446_v29 = vld [vmem:[%s11469_s2 + $0x154] sm:$0xf] }
  0x46   :  { %2022 = vmatpush.bf16.msra.mxu0 %v5912_v34 }
  0x47   :  { %2036 = vmatpush.bf16.msra.mxu1 %v6008_v35  ;;  %1997 = vmatpush.bf16.msrb.mxu2 %v5684_v45  ;;  %v80_v35 = vperm.slane %v8516_v32, 0 }
  0x48   :  { %2011 = vmatpush.bf16.msrb.mxu3 %v5780_v47  ;;  %v7618_v47 = vld [vmem:[%s11469_s2 + $0x6b0] sm:$0xf0] }
  0x49   :  { %v6116_v56 = vor.u32 %v7618_v47, %v6115_v46 }
  0x4a   :  { %2023 = vmatpush.bf16.msra.mxu0 %v5900_v39 }
  0x4b   :  { %2037 = vmatpush.bf16.msra.mxu1 %v5996_v41  ;;  %1998 = vmatpush.bf16.msrb.mxu2 %v5672_v57 }
  0x4c   :  { %2012 = vmatpush.bf16.msrb.mxu3 %v5768_v59 }
  0x4e   :  { %2024 = vmatpush.bf16.msra.mxu0 %v5888_v50  ;;  %v7642_v50 = vld [vmem:[%s11469_s2 + $0x770] sm:$0xf0] }
  0x4f   :  { %2038 = vmatpush.bf16.msra.mxu1 %v5984_v53  ;;  %1999 = vmatpush.bf16.msrb.mxu2 %v5660_v4  ;;  %v6212_v59 = vor.u32 %v7642_v50, %v6211_v49  ;;  %v7443_v49 = vld [vmem:[%s11469_s2 + $0x13c] sm:$0xf]  ;;  %v5421_v50 = vld [vmem:[%s11469_s2 + $0x144] sm:$0xf0] }
  0x50   :  { %2013 = vmatpush.bf16.msrb.mxu3 %v5756_v6 }
  0x52   :  { %2025 = vmatpush.bf16.msra.mxu0 %v5876_v62  ;;  %v6199_v62 = vld [vmem:[%s11469_s2 + $0x750] sm:$0xf] }
  0x53   :  { %2039 = vmatpush.bf16.msra.mxu1 %v5972_v0  ;;  %2000 = vmatpush.bf16.msrb.mxu2 %v5648_v17  ;;  %v6200_v15 = vor.u32 %v7639_v63, %v6199_v62  ;;  %v7612_v17 = vld [vmem:[%s11469_s2 + $0x680] sm:$0xf0] }
  0x54   :  { %2014 = vmatpush.bf16.msrb.mxu3 %v5744_v19  ;;  %v85_v19 = vperm.slane %v8516_v32, 5  ;;  %v6092_v26 = vor.u32 %v7612_v17, %v6091_v16  ;;  %v6151_v16 = vld [vmem:[%s11469_s2 + $0x6f0] sm:$0xf]  ;;  %v7627_v17 = vld [vmem:[%s11469_s2 + $0x6f8] sm:$0xf0] }
  0x56   :  { %2026 = vmatpush.bf16.msra.mxu0 %v5864_v10 }
  0x57   :  { %2040 = vmatpush.bf16.msra.mxu1 %v5960_v13  ;;  %v84_v13 = vperm.slane %v8516_v32, 4 }
  0x5a   :  { %2027 = vmatpush.bf16.msra.mxu0 %v5852_v24 }
  0x5b   :  { %2041 = vmatpush.bf16.msra.mxu1 %v5948_v25  ;;  %v5448_v25 = vor.u32 %v7449_v8, %v5445_v9 }
  0x5e   :  { %2028 = vmatpush.bf16.msra.mxu0 %v5840_v28  ;;  %v5337_v28 = vld [vmem:[%s11469_s2 + $0x9c] sm:$0xf0] }
  0x5f   :  { %2042 = vmatpush.bf16.msra.mxu1 %v5936_v31 }
  0x8d   :  { %v168_v33 = vpop.f32.mrf.mxu0 }
  0x8e   :  { %v182_v34 = vpop.f32.mrf.mxu1  ;;  %v169_v37 = vadd.f32 %v168_v33, %v80_v35  ;;  %v6188_v33 = vor.u32 %v7636_v21, %v6187_v20  ;;  %v7413_v20 = vld [vmem:[%s11469_s2 + $0x4c] sm:$0xf]  ;;  %v5301_v21 = vld [vmem:[%s11469_s2 + $0x54] sm:$0xf0] }
  0x8f   :  { %v183_v39 = vadd.f32 %v182_v34, %v81_v36  ;;  %v5433_v34 = vld [vmem:[%s11469_s2 + $0x15c] sm:$0xf0] }
  0x90   :  { %v299_v51 = vmax.f32 %v169_v37, 0.0  ;;  %v5436_v46 = vor.u32 %v7446_v29, %v5433_v34  ;;  %v7437_v29 = vld [vmem:[%s11469_s2 + $0x10c] sm:$0xf] }
  0x91   :  { %v300_v53 = vmax.f32 %v183_v39, 0.0  ;;  %v7633_v39 = vld [vmem:[%s11469_s2 + $0x728] sm:$0xf0] }
  0x94   :  { %v196_v38 = vpop.f32.mrf.mxu2 }
  0x95   :  { %v210_v41 = vpop.f32.mrf.mxu3  ;;  %v170_v42 = vpop.f32.mrf.mxu0  ;;  %v197_v54 = vadd.f32 %v196_v38, %v82_v40  ;;  %v6175_v38 = vld [vmem:[%s11469_s2 + $0x720] sm:$0xf] }
  0x96   :  { %v171_v44 = vadd.f32 %v170_v42, %v80_v35  ;;  %v184_v45 = vpop.f32.mrf.mxu1  ;;  %v211_v57 = vadd.f32 %v210_v41, %v83_v43  ;;  %v6079_v35 = vld [vmem:[%s11469_s2 + $0x660] sm:$0xf]  ;;  %v5340_v42 = vor.u32 %v7422_v27, %v5337_v28 }
  0x97   :  { %v185_v48 = vadd.f32 %v184_v45, %v81_v36  ;;  %v301_v3 = vmax.f32 %v197_v54, 0.0  ;;  %v7609_v36 = vld [vmem:[%s11469_s2 + $0x668] sm:$0xf0] }
  0x98   :  { %v309_v52 = vmax.f32 %v171_v44, 0.0  ;;  %v302_v10 = vmax.f32 %v211_v57, 0.0  ;;  %v6080_v47 = vor.u32 %v7609_v36, %v6079_v35  ;;  %v7606_v57 = vld [vmem:[%s11469_s2 + $0x650] sm:$0xf0] }
  0x99   :  { %v310_v55 = vmax.f32 %v185_v48, 0.0  ;;  %v5325_v48 = vld [vmem:[%s11469_s2 + $0x84] sm:$0xf0] }
  0x9a   :  { %v8534_v58 = vpack.c.bf16 %v309_v52, %v299_v51  ;;  %v87_v52 = vperm.slane %v8516_v32, 7 }
  0x9b   :  { %v8542_v61 = vpack.c.bf16 %v310_v55, %v300_v53  ;;  %v6176_v55 = vor.u32 %v7633_v39, %v6175_v38  ;;  %v6043_v38 = vld [vmem:[%s11469_s2 + $0x618] sm:$0xf]  ;;  %v7600_v39 = vld [vmem:[%s11469_s2 + $0x620] sm:$0xf0] }
  0x9c   :  { %v198_v0 = vpop.f32.mrf.mxu2  ;;  %1945 = vmatmul.bf16.vlgmr.msra.gmra.mxu2 %v8534_v58 }
  0x9d   :  { %v199_v4 = vadd.f32 %v198_v0, %v82_v40  ;;  %v212_v5 = vpop.f32.mrf.mxu3  ;;  %1959 = vmatmul.bf16.vlgmr.msra.gmra.mxu3 %v8542_v61  ;;  %2049 = vmatpush.bf16.msra.mxu2 %v6116_v56  ;;  %v224_v6 = vpop.f32.mrf.mxu0  ;;  %v86_v40 = vperm.slane %v8516_v32, 6  ;;  %v6067_v56 = vld [vmem:[%s11469_s2 + $0x648] sm:$0xf]  ;;  %v7630_v32 = vld [vmem:[%s11469_s2 + $0x710] sm:$0xf0] }
  0x9e   :  { %v213_v12 = vadd.f32 %v212_v5, %v83_v43  ;;  %2063 = vmatpush.bf16.msra.mxu3 %v6212_v59  ;;  %v238_v14 = vpop.f32.mrf.mxu1  ;;  %v225_v31 = vadd.f32 %v224_v6, %v84_v13  ;;  %v7419_v43 = vld [vmem:[%s11469_s2 + $0x7c] sm:$0xf]  ;;  %v7416_v0 = vld [vmem:[%s11469_s2 + $0x64] sm:$0xf]  ;;  %v6068_v8 = vor.u32 %v7606_v57, %v6067_v56  ;;  %v6164_v9 = vor.u32 %v7630_v32, %v6163_v11  ;;  %v6031_v56 = vld [vmem:[%s11469_s2 + $0x600] sm:$0xf] }
  0x9f   :  { %v311_v18 = vmax.f32 %v199_v4, 0.0  ;;  %v239_v37 = vadd.f32 %v238_v14, %v85_v19  ;;  %v5328_v63 = vor.u32 %v7419_v43, %v5325_v48  ;;  %v5313_v4 = vld [vmem:[%s11469_s2 + $0x6c] sm:$0xf0]  ;;  %v7440_v5 = vld [vmem:[%s11469_s2 + $0x124] sm:$0xf]  ;;  %v6044_v48 = vor.u32 %v7600_v39, %v6043_v38 }
  0xa0   :  { %v312_v22 = vmax.f32 %v213_v12, 0.0  ;;  %v303_v51 = vmax.f32 %v225_v31, 0.0  ;;  %v6055_v12 = vld [vmem:[%s11469_s2 + $0x630] sm:$0xf]  ;;  %v5397_v31 = vld [vmem:[%s11469_s2 + $0x114] sm:$0xf0] }
  0xa1   :  { %v8578_v24 = vpack.c.bf16 %v311_v18, %v301_v3  ;;  %2050 = vmatpush.bf16.msra.mxu2 %v6104_v7  ;;  %v304_v59 = vmax.f32 %v239_v37, 0.0  ;;  %v5424_v3 = vor.u32 %v7443_v49, %v5421_v50  ;;  %v6152_v37 = vor.u32 %v7627_v17, %v6151_v16  ;;  %v7624_v43 = vld [vmem:[%s11469_s2 + $0x6e0] sm:$0xf0]  ;;  %v7410_v49 = vld [vmem:[%s11469_s2 + $0x34] sm:$0xf] }
  0xa2   :  { %v8589_v30 = vpack.c.bf16 %v312_v22, %v302_v10  ;;  %2064 = vmatpush.bf16.msra.mxu3 %v6200_v15  ;;  %v5409_v10 = vld [vmem:[%s11469_s2 + $0x12c] sm:$0xf0]  ;;  %v8659_v15 = vld [vmem:[%s11446_s3 + $0x8] sm:$0x3]  ;;  %v5289_v50 = vld [vmem:[%s11469_s2 + $0x3c] sm:$0xf0] }
  0xa3   :  { %1973 = vmatmul.bf16.vlgmr.msrb.gmra.mxu0 %v8578_v24  ;;  %v5412_v27 = vor.u32 %v7440_v5, %v5409_v10  ;;  %v88_v35 = vperm.slane %v8659_v15, 0  ;;  %v7597_v57 = vld [vmem:[%s11469_s2 + $0x608] sm:$0xf0]  ;;  %v5277_v5 = vld [vmem:[%s11469_s2 + $0x24] sm:$0xf0] }
  0xa4   :  { %1987 = vmatmul.bf16.vlgmr.msrb.gmra.mxu1 %v8589_v30  ;;  %2077 = vmatpush.bf16.msrb.mxu0 %v5352_v23  ;;  %v252_v41 = vpop.f32.mrf.mxu2  ;;  %v7621_v11 = vld [vmem:[%s11469_s2 + $0x6c8] sm:$0xf0]  ;;  %v7470_v16 = vld [vmem:[%s11469_s2 + $0x214] sm:$0xf] }
  0xa5   :  { %2091 = vmatpush.bf16.msrb.mxu1 %v5448_v25  ;;  %v266_v44 = vpop.f32.mrf.mxu3  ;;  %2051 = vmatpush.bf16.msra.mxu2 %v6092_v26  ;;  %v226_v45 = vpop.f32.mrf.mxu0  ;;  %v253_v1 = vadd.f32 %v252_v41, %v86_v40  ;;  %v89_v41 = vperm.slane %v8659_v15, 1  ;;  %v7473_v32 = vld [vmem:[%s11469_s2 + $0x22c] sm:$0xf]  ;;  %v5373_v15 = vld [vmem:[%s11469_s2 + $0xe4] sm:$0xf0] }
  0xa6   :  { %2065 = vmatpush.bf16.msra.mxu3 %v6188_v33  ;;  %v227_v53 = vadd.f32 %v226_v45, %v84_v13  ;;  %v240_v54 = vpop.f32.mrf.mxu1  ;;  %v267_v6 = vadd.f32 %v266_v44, %v87_v52  ;;  %v7603_v13 = vld [vmem:[%s11469_s2 + $0x638] sm:$0xf0]  ;;  %v5304_v45 = vor.u32 %v7413_v20, %v5301_v21  ;;  %v5529_v21 = vld [vmem:[%s11469_s2 + $0x21c] sm:$0xf0] }
  0xa7   :  { %v241_v60 = vadd.f32 %v240_v54, %v85_v19  ;;  %v5316_v19 = vor.u32 %v7416_v0, %v5313_v4  ;;  %v305_v22 = vmax.f32 %v253_v1, 0.0  ;;  %v6056_v28 = vor.u32 %v7603_v13, %v6055_v12  ;;  %v7497_v0 = vld [vmem:[%s11469_s2 + $0x2ec] sm:$0xf]  ;;  %v5637_v1 = vld [vmem:[%s11469_s2 + $0x2f4] sm:$0xf0] }
  0xa8   :  { %v313_v62 = vmax.f32 %v227_v53, 0.0  ;;  %2078 = vmatpush.bf16.msrb.mxu0 %v5340_v42  ;;  %v306_v33 = vmax.f32 %v267_v6, 0.0  ;;  %v6139_v42 = vld [vmem:[%s11469_s2 + $0x6d8] sm:$0xf]  ;;  %v7407_v4 = vld [vmem:[%s11469_s2 + $0x1c] sm:$0xf]  ;;  %v6032_v12 = vor.u32 %v7597_v57, %v6031_v56  ;;  %v5640_v20 = vor.u32 %v7497_v0, %v5637_v1 }
  0xa9   :  { %v314_v2 = vmax.f32 %v241_v60, 0.0  ;;  %2092 = vmatpush.bf16.msrb.mxu1 %v5436_v46  ;;  %2052 = vmatpush.bf16.msra.mxu2 %v6080_v47  ;;  %v5400_v47 = vor.u32 %v7437_v29, %v5397_v31  ;;  %v6140_v54 = vor.u32 %v7624_v43, %v6139_v42  ;;  %v6127_v60 = vld [vmem:[%s11469_s2 + $0x6c0] sm:$0xf]  ;;  %v7431_v6 = vld [vmem:[%s11469_s2 + $0xdc] sm:$0xf]  ;;  %v5532_v39 = vor.u32 %v7470_v16, %v5529_v21 }
  0xaa   :  { %v8643_v7 = vpack.c.bf16 %v313_v62, %v303_v51  ;;  %2066 = vmatpush.bf16.msra.mxu3 %v6176_v55  ;;  %v7434_v51 = vld [vmem:[%s11469_s2 + $0xf4] sm:$0xf]  ;;  %v5385_v55 = vld [vmem:[%s11469_s2 + $0xfc] sm:$0xf0]  ;;  %v5292_v62 = vor.u32 %v7410_v49, %v5289_v50  ;;  %v6128_v13 = vor.u32 %v7621_v11, %v6127_v60  ;;  %v5376_v29 = vor.u32 %v7431_v6, %v5373_v15  ;;  %v5265_v31 = vld [vmem:[%s11469_s2 + $0xc] sm:$0xf0] }
  0xab   :  { %v8654_v14 = vpack.c.bf16 %v314_v2, %v304_v59  ;;  %v5829_v42 = vld [vmem:[%s11469_s2 + $0x474] sm:$0xf0]  ;;  %v7467_v43 = vld [vmem:[%s11469_s2 + $0x1fc] sm:$0xf]  ;;  %v7542_v57 = vld [vmem:[%s11469_s2 + $0x454] sm:$0xf] }
  0xac   :  { %2079 = vmatpush.bf16.msrb.mxu0 %v5328_v63  ;;  %v254_v18 = vpop.f32.mrf.mxu2  ;;  %2001 = vmatmul.bf16.vlgmr.msrb.gmra.mxu2 %v8643_v7  ;;  %v5541_v63 = vld [vmem:[%s11469_s2 + $0x234] sm:$0xf0]  ;;  %v7464_v60 = vld [vmem:[%s11469_s2 + $0x1e4] sm:$0xf]  ;;  %v5505_v11 = vld [vmem:[%s11469_s2 + $0x1ec] sm:$0xf0] }
  0xad   :  { %2093 = vmatpush.bf16.msrb.mxu1 %v5424_v3  ;;  %v255_v23 = vadd.f32 %v254_v18, %v86_v40  ;;  %v268_v25 = vpop.f32.mrf.mxu3  ;;  %2015 = vmatmul.bf16.vlgmr.msrb.gmra.mxu3 %v8654_v14  ;;  %v280_v26 = vpop.f32.mrf.mxu0  ;;  %v5388_v3 = vor.u32 %v7434_v51, %v5385_v55  ;;  %v7515_v1 = vld [vmem:[%s11469_s2 + $0x37c] sm:$0xf]  ;;  %v5805_v6 = vld [vmem:[%s11469_s2 + $0x444] sm:$0xf0]  ;;  %v7512_v16 = vld [vmem:[%s11469_s2 + $0x364] sm:$0xf] }
  0xae   :  { %v269_v34 = vadd.f32 %v268_v25, %v87_v52  ;;  %2053 = vmatpush.bf16.msra.mxu2 %v6068_v8  ;;  %2067 = vmatpush.bf16.msra.mxu3 %v6164_v9  ;;  %v294_v36 = vpop.f32.mrf.mxu1  ;;  %v281_v53 = vadd.f32 %v280_v26, %v88_v35  ;;  %v5280_v25 = vor.u32 %v7407_v4, %v5277_v5  ;;  %v5625_v26 = vld [vmem:[%s11469_s2 + $0x2dc] sm:$0xf0]  ;;  %v7539_v5 = vld [vmem:[%s11469_s2 + $0x43c] sm:$0xf]  ;;  %v5793_v21 = vld [vmem:[%s11469_s2 + $0x42c] sm:$0xf0] }
  0xaf   :  { %v315_v40 = vmax.f32 %v255_v23, 0.0  ;;  %v295_v59 = vadd.f32 %v294_v36, %v89_v41  ;;  %v7521_v36 = vld [vmem:[%s11469_s2 + $0x3ac] sm:$0xf]  ;;  %v5808_v15 = vor.u32 %v7539_v5, %v5805_v6 }
  0xb0   :  { %v316_v44 = vmax.f32 %v269_v34, 0.0  ;;  %2080 = vmatpush.bf16.msrb.mxu0 %v5316_v19  ;;  %v307_v8 = vmax.f32 %v281_v53, 0.0  ;;  %v5544_v19 = vor.u32 %v7473_v32, %v5541_v63  ;;  %v7518_v53 = vld [vmem:[%s11469_s2 + $0x394] sm:$0xf]  ;;  %v7488_v32 = vld [vmem:[%s11469_s2 + $0x2a4] sm:$0xf] }
  0xb1   :  { %v8695_v46 = vpack.c.bf16 %v315_v40, %v305_v22  ;;  %2094 = vmatpush.bf16.msrb.mxu1 %v5412_v27  ;;  %v308_v17 = vmax.f32 %v295_v59, 0.0  ;;  %v7494_v22 = vld [vmem:[%s11469_s2 + $0x2d4] sm:$0xf]  ;;  %v7404_v27 = vld [vmem:[%s11469_s2 + $0x4] sm:$0xf] }
  0xb2   :  { %v8706_v52 = vpack.c.bf16 %v316_v44, %v306_v33  ;;  %2054 = vmatpush.bf16.msra.mxu2 %v6056_v28  ;;  %2068 = vmatpush.bf16.msra.mxu3 %v6152_v37  ;;  %v7428_v33 = vld [vmem:[%s11469_s2 + $0xc4] sm:$0xf]  ;;  %v5733_v37 = vld [vmem:[%s11469_s2 + $0x3b4] sm:$0xf0]  ;;  %v5628_v40 = vor.u32 %v7494_v22, %v5625_v26  ;;  %v5268_v44 = vor.u32 %v7404_v27, %v5265_v31  ;;  %v5817_v59 = vld [vmem:[%s11469_s2 + $0x45c] sm:$0xf0] }
  0xb3   :  { %2029 = vmatmul.bf16.vlgmr.msra.gmra.mxu0 %v8695_v46  ;;  %v5736_v50 = vor.u32 %v7521_v36, %v5733_v37  ;;  %v5820_v0 = vor.u32 %v7542_v57, %v5817_v59  ;;  %v7458_v22 = vld [vmem:[%s11469_s2 + $0x1b4] sm:$0xf]  ;;  %v5577_v26 = vld [vmem:[%s11469_s2 + $0x27c] sm:$0xf0]  ;;  %v5685_v31 = vld [vmem:[%s11469_s2 + $0x354] sm:$0xf0] }
  0xb4   :  { %2043 = vmatmul.bf16.vlgmr.msra.gmra.mxu1 %v8706_v52  ;;  %2081 = vmatpush.bf16.msrb.mxu0 %v5304_v45  ;;  %v5517_v45 = vld [vmem:[%s11469_s2 + $0x204] sm:$0xf0]  ;;  %v7533_v36 = vld [vmem:[%s11469_s2 + $0x40c] sm:$0xf]  ;;  %v5781_v37 = vld [vmem:[%s11469_s2 + $0x414] sm:$0xf0] }
  0xb5   :  { %2095 = vmatpush.bf16.msrb.mxu1 %v5400_v47  ;;  %v282_v2 = vpop.f32.mrf.mxu0  ;;  %v7491_v47 = vld [vmem:[%s11469_s2 + $0x2bc] sm:$0xf]  ;;  %v5520_v55 = vor.u32 %v7467_v43, %v5517_v45  ;;  %v7506_v45 = vld [vmem:[%s11469_s2 + $0x334] sm:$0xf]  ;;  %v7569_v57 = vld [vmem:[%s11469_s2 + $0x52c] sm:$0xf] }
  0xb6   :  { %2055 = vmatpush.bf16.msra.mxu2 %v6044_v48  ;;  %2069 = vmatpush.bf16.msra.mxu3 %v6140_v54  ;;  %v283_v9 = vadd.f32 %v282_v2, %v88_v35  ;;  %v296_v10 = vpop.f32.mrf.mxu1  ;;  %v5361_v35 = vld [vmem:[%s11469_s2 + $0xcc] sm:$0xf0]  ;;  %v5613_v48 = vld [vmem:[%s11469_s2 + $0x2c4] sm:$0xf0]  ;;  %v5721_v54 = vld [vmem:[%s11469_s2 + $0x39c] sm:$0xf0] }
  0xb7   :  { %v297_v18 = vadd.f32 %v296_v10, %v89_v41  ;;  %v7545_v41 = vld [vmem:[%s11469_s2 + $0x46c] sm:$0xf]  ;;  %v5364_v49 = vor.u32 %v7428_v33, %v5361_v35  ;;  %v5616_v56 = vor.u32 %v7491_v47, %v5613_v48  ;;  %v5724_v63 = vor.u32 %v7518_v53, %v5721_v54  ;;  %v5709_v2 = vld [vmem:[%s11469_s2 + $0x384] sm:$0xf0]  ;;  %v5673_v47 = vld [vmem:[%s11469_s2 + $0x33c] sm:$0xf0] }
  0xb8   :  { %v317_v23 = vmax.f32 %v283_v9, 0.0  ;;  %2082 = vmatpush.bf16.msrb.mxu0 %v5292_v62  ;;  %v5832_v51 = vor.u32 %v7545_v41, %v5829_v42  ;;  %v5601_v62 = vld [vmem:[%s11469_s2 + $0x2ac] sm:$0xf0]  ;;  %v5493_v9 = vld [vmem:[%s11469_s2 + $0x1d4] sm:$0xf0]  ;;  %v5676_v59 = vor.u32 %v7506_v45, %v5673_v47 }
  0xb9   :  { %2096 = vmatpush.bf16.msrb.mxu1 %v5388_v3  ;;  %v318_v28 = vmax.f32 %v297_v18, 0.0  ;;  %v5508_v3 = vor.u32 %v7464_v60, %v5505_v11  ;;  %v5604_v4 = vor.u32 %v7488_v32, %v5601_v62  ;;  %v7485_v10 = vld [vmem:[%s11469_s2 + $0x28c] sm:$0xf]  ;;  %v7479_v41 = vld [vmem:[%s11469_s2 + $0x25c] sm:$0xf] }
  0xba   :  { %v8770_v34 = vpack.c.bf16 %v317_v23, %v307_v8  ;;  %2056 = vmatpush.bf16.msra.mxu2 %v6032_v12  ;;  %2070 = vmatpush.bf16.msra.mxu3 %v6128_v13  ;;  %v7461_v8 = vld [vmem:[%s11469_s2 + $0x1cc] sm:$0xf]  ;;  %v5589_v12 = vld [vmem:[%s11469_s2 + $0x294] sm:$0xf0]  ;;  %v5712_v13 = vor.u32 %v7515_v1, %v5709_v2  ;;  %v5481_v23 = vld [vmem:[%s11469_s2 + $0x1bc] sm:$0xf0] }
  0xbb   :  { %v8781_v38 = vpack.c.bf16 %v318_v28, %v308_v17  ;;  %v5697_v17 = vld [vmem:[%s11469_s2 + $0x36c] sm:$0xf0]  ;;  %v5496_v18 = vor.u32 %v7461_v8, %v5493_v9  ;;  %v5484_v33 = vor.u32 %v7458_v22, %v5481_v23  ;;  %v5565_v42 = vld [vmem:[%s11469_s2 + $0x264] sm:$0xf0]  ;;  %v7530_v48 = vld [vmem:[%s11469_s2 + $0x3f4] sm:$0xf] }
  0xbc   :  { %2083 = vmatpush.bf16.msrb.mxu0 %v5280_v25  ;;  %v7482_v25 = vld [vmem:[%s11469_s2 + $0x274] sm:$0xf]  ;;  %v5700_v27 = vor.u32 %v7512_v16, %v5697_v17  ;;  %v7452_v53 = vld [vmem:[%s11469_s2 + $0x184] sm:$0xf]  ;;  %v5457_v54 = vld [vmem:[%s11469_s2 + $0x18c] sm:$0xf0] }
  0xbd   :  { %2097 = vmatpush.bf16.msrb.mxu1 %v5376_v29  ;;  %2057 = vmatmul.bf16.vlgmr.msra.gmra.mxu2 %v8770_v34  ;;  %v7509_v29 = vld [vmem:[%s11469_s2 + $0x34c] sm:$0xf]  ;;  %v5580_v35 = vor.u32 %v7482_v25, %v5577_v26  ;;  %v5925_v60 = vld [vmem:[%s11469_s2 + $0x534] sm:$0xf0]  ;;  %v5460_v1 = vor.u32 %v7452_v53, %v5457_v54  ;;  %v7566_v8 = vld [vmem:[%s11469_s2 + $0x514] sm:$0xf] }
  0xbe   :  { %2105 = vmatpush.bf16.msrb.mxu2 %v5544_v19  ;;  %2119 = vmatpush.bf16.msrb.mxu3 %v5640_v20  ;;  %v5592_v19 = vor.u32 %v7485_v10, %v5589_v12  ;;  %v7536_v20 = vld [vmem:[%s11469_s2 + $0x424] sm:$0xf]  ;;  %v5688_v43 = vor.u32 %v7509_v29, %v5685_v31  ;;  %v7593_v11 = vld [vmem:[%s11469_s2 + $0x5ec] sm:$0xf]  ;;  %v6021_v32 = vld [vmem:[%s11469_s2 + $0x5f4] sm:$0xf0]  ;;  %v5928_v5 = vor.u32 %v7569_v57, %v5925_v60 }
  0xbf   :  { %2071 = vmatmul.bf16.vlgmr.msra.gmra.mxu3 %v8781_v38  ;;  %v5796_v28 = vor.u32 %v7536_v20, %v5793_v21  ;;  %v6024_v6 = vor.u32 %v7593_v11, %v6021_v32  ;;  %v5913_v10 = vld [vmem:[%s11469_s2 + $0x51c] sm:$0xf0]  ;;  %v7590_v12 = vld [vmem:[%s11469_s2 + $0x5d4] sm:$0xf]  ;;  %v7500_v16 = vld [vmem:[%s11469_s2 + $0x304] sm:$0xf] }
  0xc0   :  { %2084 = vmatpush.bf16.msrb.mxu0 %v5268_v44  ;;  %v5784_v44 = vor.u32 %v7533_v36, %v5781_v37  ;;  %v5649_v17 = vld [vmem:[%s11469_s2 + $0x30c] sm:$0xf0]  ;;  %v7617_v20 = vld [vmem:[%s11469_s2 + $0x6ac] sm:$0xf]  ;;  %v6117_v21 = vld [vmem:[%s11469_s2 + $0x6b4] sm:$0xf0]  ;;  %v5916_v22 = vor.u32 %v7566_v8, %v5913_v10 }
  0xc1   :  { %2098 = vmatpush.bf16.msrb.mxu1 %v5364_v49  ;;  %v7641_v25 = vld [vmem:[%s11469_s2 + $0x76c] sm:$0xf]  ;;  %v6213_v26 = vld [vmem:[%s11469_s2 + $0x774] sm:$0xf0]  ;;  %v5901_v29 = vld [vmem:[%s11469_s2 + $0x504] sm:$0xf0] }
  0xc2   :  { %2106 = vmatpush.bf16.msrb.mxu2 %v5532_v39  ;;  %2120 = vmatpush.bf16.msrb.mxu3 %v5628_v40  ;;  %v7455_v39 = vld [vmem:[%s11469_s2 + $0x19c] sm:$0xf]  ;;  %v5469_v40 = vld [vmem:[%s11469_s2 + $0x1a4] sm:$0xf0]  ;;  %v6216_v37 = vor.u32 %v7641_v25, %v6213_v26  ;;  %v7560_v45 = vld [vmem:[%s11469_s2 + $0x4e4] sm:$0xf] }
  0xc3   :  { %2085 = vmatmul.bf16.vlgmr.msrb.gmra.mxu0 %v8534_v58  ;;  %v5472_v49 = vor.u32 %v7455_v39, %v5469_v40  ;;  %v5997_v36 = vld [vmem:[%s11469_s2 + $0x5c4] sm:$0xf0]  ;;  %v7614_v39 = vld [vmem:[%s11469_s2 + $0x694] sm:$0xf]  ;;  %v6105_v40 = vld [vmem:[%s11469_s2 + $0x69c] sm:$0xf0] }
  0xc4   :  { %2133 = vmatpush.bf16.msra.mxu0 %v5736_v50  ;;  %2099 = vmatmul.bf16.vlgmr.msrb.gmra.mxu1 %v8542_v61  ;;  %v5568_v50 = vor.u32 %v7479_v41, %v5565_v42  ;;  %v7638_v42 = vld [vmem:[%s11469_s2 + $0x754] sm:$0xf]  ;;  %v5889_v47 = vld [vmem:[%s11469_s2 + $0x4ec] sm:$0xf0]  ;;  %v7611_v53 = vld [vmem:[%s11469_s2 + $0x67c] sm:$0xf] }
  0xc5   :  { %2147 = vmatpush.bf16.msra.mxu1 %v5832_v51  ;;  %v5769_v51 = vld [vmem:[%s11469_s2 + $0x3fc] sm:$0xf0]  ;;  %v6093_v54 = vld [vmem:[%s11469_s2 + $0x684] sm:$0xf0]  ;;  %v7557_v60 = vld [vmem:[%s11469_s2 + $0x4cc] sm:$0xf] }
  0xc6   :  { %2107 = vmatpush.bf16.msrb.mxu2 %v5520_v55  ;;  %2121 = vmatpush.bf16.msrb.mxu3 %v5616_v56  ;;  %v7476_v55 = vld [vmem:[%s11469_s2 + $0x244] sm:$0xf]  ;;  %v5553_v56 = vld [vmem:[%s11469_s2 + $0x24c] sm:$0xf0]  ;;  %v5772_v62 = vor.u32 %v7530_v48, %v5769_v51  ;;  %v6108_v48 = vor.u32 %v7614_v39, %v6105_v40  ;;  %v6189_v57 = vld [vmem:[%s11469_s2 + $0x744] sm:$0xf0]  ;;  %v6096_v32 = vor.u32 %v7611_v53, %v6093_v54 }
  0xc7   :  { %v5556_v2 = vor.u32 %v7476_v55, %v5553_v56  ;;  %v5892_v55 = vor.u32 %v7560_v45, %v5889_v47  ;;  %v7635_v56 = vld [vmem:[%s11469_s2 + $0x73c] sm:$0xf]  ;;  %v5877_v11 = vld [vmem:[%s11469_s2 + $0x4d4] sm:$0xf0]  ;;  %v7554_v8 = vld [vmem:[%s11469_s2 + $0x4b4] sm:$0xf] }
  0xc8   :  { %2134 = vmatpush.bf16.msra.mxu0 %v5724_v63  ;;  %v7503_v63 = vld [vmem:[%s11469_s2 + $0x31c] sm:$0xf]  ;;  %v5841_v40 = vld [vmem:[%s11469_s2 + $0x48c] sm:$0xf0] }
  0xc9   :  { %2148 = vmatpush.bf16.msra.mxu1 %v5820_v0  ;;  %v5661_v0 = vld [vmem:[%s11469_s2 + $0x324] sm:$0xf0]  ;;  %v7575_v26 = vld [vmem:[%s11469_s2 + $0x55c] sm:$0xf]  ;;  %v5451_v47 = vld [vmem:[%s11469_s2 + $0x170] sm:$0xf] }
  0xca   :  { %2108 = vmatpush.bf16.msrb.mxu2 %v5508_v3  ;;  %2122 = vmatpush.bf16.msrb.mxu3 %v5604_v4  ;;  %v7527_v3 = vld [vmem:[%s11469_s2 + $0x3dc] sm:$0xf]  ;;  %v5757_v4 = vld [vmem:[%s11469_s2 + $0x3e4] sm:$0xf0]  ;;  %v5664_v9 = vor.u32 %v7503_v63, %v5661_v0  ;;  %v5973_v63 = vld [vmem:[%s11469_s2 + $0x594] sm:$0xf0]  ;;  %v6192_v0 = vor.u32 %v7635_v56, %v6189_v57 }
  0xcb   :  { %v7427_v45 = vld [vmem:[%s11469_s2 + $0xb8] sm:$0xf0] }
  0xcc   :  { %2135 = vmatpush.bf16.msra.mxu0 %v5712_v13  ;;  %v6009_v13 = vld [vmem:[%s11469_s2 + $0x5dc] sm:$0xf0]  ;;  %v7623_v54 = vld [vmem:[%s11469_s2 + $0x6dc] sm:$0xf] }
  0xcd   :  { %2149 = vmatpush.bf16.msra.mxu1 %v5808_v15  ;;  %v5760_v15 = vor.u32 %v7527_v3, %v5757_v4  ;;  %v6012_v23 = vor.u32 %v7590_v12, %v6009_v13  ;;  %v5880_v3 = vor.u32 %v7557_v60, %v5877_v11  ;;  %v7632_v4 = vld [vmem:[%s11469_s2 + $0x724] sm:$0xf]  ;;  %v7578_v12 = vld [vmem:[%s11469_s2 + $0x574] sm:$0xf]  ;;  %v5961_v13 = vld [vmem:[%s11469_s2 + $0x57c] sm:$0xf0] }
  0xce   :  { %2109 = vmatpush.bf16.msrb.mxu2 %v5496_v18  ;;  %2123 = vmatpush.bf16.msrb.mxu3 %v5592_v19  ;;  %v7524_v18 = vld [vmem:[%s11469_s2 + $0x3c4] sm:$0xf]  ;;  %v5745_v19 = vld [vmem:[%s11469_s2 + $0x3cc] sm:$0xf0] }
  0xcf   :  { %v5748_v31 = vor.u32 %v7524_v18, %v5745_v19  ;;  %v7629_v19 = vld [vmem:[%s11469_s2 + $0x70c] sm:$0xf] }
  0xd0   :  { %2136 = vmatpush.bf16.msra.mxu0 %v5700_v27  ;;  %v5652_v27 = vor.u32 %v7500_v16, %v5649_v17  ;;  %v7605_v16 = vld [vmem:[%s11469_s2 + $0x64c] sm:$0xf]  ;;  %v6069_v17 = vld [vmem:[%s11469_s2 + $0x654] sm:$0xf0] }
  0xd1   :  { %2150 = vmatpush.bf16.msra.mxu1 %v5796_v28  ;;  %v7563_v28 = vld [vmem:[%s11469_s2 + $0x4fc] sm:$0xf]  ;;  %v6072_v25 = vor.u32 %v7605_v16, %v6069_v17  ;;  %v7421_v16 = vld [vmem:[%s11469_s2 + $0x88] sm:$0xf0] }
  0xd2   :  { %2110 = vmatpush.bf16.msrb.mxu2 %v5484_v33  ;;  %2124 = vmatpush.bf16.msrb.mxu3 %v5580_v35  ;;  %v6120_v33 = vor.u32 %v7617_v20, %v6117_v21  ;;  %v7587_v35 = vld [vmem:[%s11469_s2 + $0x5bc] sm:$0xf]  ;;  %v5904_v41 = vor.u32 %v7563_v28, %v5901_v29  ;;  %v6165_v20 = vld [vmem:[%s11469_s2 + $0x714] sm:$0xf0]  ;;  %v5964_v21 = vor.u32 %v7578_v12, %v5961_v13  ;;  %v7602_v29 = vld [vmem:[%s11469_s2 + $0x634] sm:$0xf] }
  0xd3   :  { %v6168_v28 = vor.u32 %v7629_v19, %v6165_v20  ;;  %v5427_v19 = vld [vmem:[%s11469_s2 + $0x140] sm:$0xf]  ;;  %v7445_v20 = vld [vmem:[%s11469_s2 + $0x148] sm:$0xf0] }
  0xd4   :  { %2137 = vmatpush.bf16.msra.mxu0 %v5688_v43  ;;  %v6201_v43 = vld [vmem:[%s11469_s2 + $0x75c] sm:$0xf0] }
  0xd5   :  { %2151 = vmatpush.bf16.msra.mxu1 %v5784_v44  ;;  %v6000_v44 = vor.u32 %v7587_v35, %v5997_v36  ;;  %v6204_v51 = vor.u32 %v7638_v42, %v6201_v43  ;;  %v7626_v35 = vld [vmem:[%s11469_s2 + $0x6f4] sm:$0xf]  ;;  %v6153_v36 = vld [vmem:[%s11469_s2 + $0x6fc] sm:$0xf0]  ;;  %v5937_v42 = vld [vmem:[%s11469_s2 + $0x54c] sm:$0xf0] }
  0xd6   :  { %2111 = vmatpush.bf16.msrb.mxu2 %v5472_v49  ;;  %2125 = vmatpush.bf16.msrb.mxu3 %v5568_v50  ;;  %v7584_v49 = vld [vmem:[%s11469_s2 + $0x5a4] sm:$0xf]  ;;  %v5985_v50 = vld [vmem:[%s11469_s2 + $0x5ac] sm:$0xf0] }
  0xd8   :  { %2138 = vmatpush.bf16.msra.mxu0 %v5676_v59  ;;  %v5988_v59 = vor.u32 %v7584_v49, %v5985_v50  ;;  %v7451_v49 = vld [vmem:[%s11469_s2 + $0x178] sm:$0xf0] }
  0xd9   :  { %2152 = vmatpush.bf16.msra.mxu1 %v5772_v62  ;;  %v7581_v62 = vld [vmem:[%s11469_s2 + $0x58c] sm:$0xf]  ;;  %v7599_v50 = vld [vmem:[%s11469_s2 + $0x61c] sm:$0xf]  ;;  %v5452_v60 = vor.u32 %v7451_v49, %v5451_v47  ;;  %v5403_v49 = vld [vmem:[%s11469_s2 + $0x110] sm:$0xf] }
  0xda   :  { %2112 = vmatpush.bf16.msrb.mxu2 %v5460_v1  ;;  %2126 = vmatpush.bf16.msrb.mxu3 %v5556_v2  ;;  %v7608_v1 = vld [vmem:[%s11469_s2 + $0x664] sm:$0xf]  ;;  %v6081_v2 = vld [vmem:[%s11469_s2 + $0x66c] sm:$0xf0]  ;;  %v7415_v47 = vld [vmem:[%s11469_s2 + $0x58] sm:$0xf0] }
  0xdb   :  { %v6084_v10 = vor.u32 %v7608_v1, %v6081_v2  ;;  %v7596_v1 = vld [vmem:[%s11469_s2 + $0x604] sm:$0xf]  ;;  %v6033_v2 = vld [vmem:[%s11469_s2 + $0x60c] sm:$0xf0] }
  0xdc   :  { %2139 = vmatpush.bf16.msra.mxu0 %v5664_v9  ;;  %v5865_v9 = vld [vmem:[%s11469_s2 + $0x4bc] sm:$0xf0]  ;;  %v6036_v13 = vor.u32 %v7596_v1, %v6033_v2  ;;  %v5499_v1 = vld [vmem:[%s11469_s2 + $0x1d0] sm:$0xf]  ;;  %v7463_v2 = vld [vmem:[%s11469_s2 + $0x1d8] sm:$0xf0] }
  0xdd   :  { %2153 = vmatpush.bf16.msra.mxu1 %v5760_v15  ;;  %2113 = vmatmul.bf16.vlgmr.msrb.gmra.mxu2 %v8578_v24  ;;  %v5868_v18 = vor.u32 %v7554_v8, %v5865_v9  ;;  %v5643_v9 = vld [vmem:[%s11469_s2 + $0x2f0] sm:$0xf] }
  0xde   :  { %2161 = vmatpush.bf16.msra.mxu2 %v5928_v5  ;;  %2175 = vmatpush.bf16.msra.mxu3 %v6024_v6  ;;  %v6177_v5 = vld [vmem:[%s11469_s2 + $0x72c] sm:$0xf0]  ;;  %v5976_v6 = vor.u32 %v7581_v62, %v5973_v63  ;;  %v5439_v62 = vld [vmem:[%s11469_s2 + $0x158] sm:$0xf]  ;;  %v7448_v63 = vld [vmem:[%s11469_s2 + $0x160] sm:$0xf0] }
  0xdf   :  { %2127 = vmatmul.bf16.vlgmr.msrb.gmra.mxu3 %v8589_v30  ;;  %v6180_v15 = vor.u32 %v7632_v4, %v6177_v5  ;;  %v6129_v4 = vld [vmem:[%s11469_s2 + $0x6cc] sm:$0xf0]  ;;  %v5440_v12 = vor.u32 %v7448_v63, %v5439_v62  ;;  %v5391_v62 = vld [vmem:[%s11469_s2 + $0xf8] sm:$0xf]  ;;  %v7436_v63 = vld [vmem:[%s11469_s2 + $0x100] sm:$0xf0] }
  0xe0   :  { %2140 = vmatpush.bf16.msra.mxu0 %v5652_v27  ;;  %v5949_v27 = vld [vmem:[%s11469_s2 + $0x564] sm:$0xf0]  ;;  %v5547_v5 = vld [vmem:[%s11469_s2 + $0x230] sm:$0xf] }
  0xe1   :  { %2154 = vmatpush.bf16.msra.mxu1 %v5748_v31  ;;  %v6057_v31 = vld [vmem:[%s11469_s2 + $0x63c] sm:$0xf0]  ;;  %v5952_v39 = vor.u32 %v7575_v26, %v5949_v27  ;;  %v5631_v26 = vld [vmem:[%s11469_s2 + $0x2d8] sm:$0xf]  ;;  %v7496_v27 = vld [vmem:[%s11469_s2 + $0x2e0] sm:$0xf0] }
  0xe2   :  { %2162 = vmatpush.bf16.msra.mxu2 %v5916_v22  ;;  %2176 = vmatpush.bf16.msra.mxu3 %v6012_v23  ;;  %v7551_v22 = vld [vmem:[%s11469_s2 + $0x49c] sm:$0xf]  ;;  %v5853_v23 = vld [vmem:[%s11469_s2 + $0x4a4] sm:$0xf0]  ;;  %v6060_v43 = vor.u32 %v7602_v29, %v6057_v31  ;;  %v7418_v31 = vld [vmem:[%s11469_s2 + $0x70] sm:$0xf0] }
  0xe3   :  { %2141 = vmatmul.bf16.vlgmr.msra.gmra.mxu0 %v8643_v7  ;;  %v5319_v29 = vld [vmem:[%s11469_s2 + $0x68] sm:$0xf] }
  0xe4   :  { %2189 = vmatpush.bf16.msrb.mxu0 %v6120_v33  ;;  %2155 = vmatmul.bf16.vlgmr.msra.gmra.mxu1 %v8654_v14  ;;  %v5856_v33 = vor.u32 %v7551_v22, %v5853_v23  ;;  %v5535_v22 = vld [vmem:[%s11469_s2 + $0x218] sm:$0xf]  ;;  %v7472_v23 = vld [vmem:[%s11469_s2 + $0x220] sm:$0xf0] }
  0xe5   :  { %2203 = vmatpush.bf16.msrb.mxu1 %v6216_v37  ;;  %v7548_v37 = vld [vmem:[%s11469_s2 + $0x484] sm:$0xf] }
  0xe6   :  { %2163 = vmatpush.bf16.msra.mxu2 %v5904_v41  ;;  %2177 = vmatpush.bf16.msra.mxu3 %v6000_v44  ;;  %v7572_v41 = vld [vmem:[%s11469_s2 + $0x544] sm:$0xf]  ;;  %v5355_v44 = vld [vmem:[%s11469_s2 + $0xb0] sm:$0xf]  ;;  %v5844_v53 = vor.u32 %v7548_v37, %v5841_v40  ;;  %v5632_v37 = vor.u32 %v7496_v27, %v5631_v26  ;;  %v7469_v40 = vld [vmem:[%s11469_s2 + $0x208] sm:$0xf0] }
  0xe7   :  { %v5940_v56 = vor.u32 %v7572_v41, %v5937_v42  ;;  %v5356_v57 = vor.u32 %v7427_v45, %v5355_v44  ;;  %v5320_v41 = vor.u32 %v7418_v31, %v5319_v29  ;;  %v5619_v42 = vld [vmem:[%s11469_s2 + $0x2c0] sm:$0xf]  ;;  %v5307_v45 = vld [vmem:[%s11469_s2 + $0x50] sm:$0xf]  ;;  %v7430_v26 = vld [vmem:[%s11469_s2 + $0xd0] sm:$0xf0] }
  0xe8   :  { %2190 = vmatpush.bf16.msrb.mxu0 %v6108_v48  ;;  %v6156_v48 = vor.u32 %v7626_v35, %v6153_v36  ;;  %v5415_v35 = vld [vmem:[%s11469_s2 + $0x128] sm:$0xf]  ;;  %v7442_v36 = vld [vmem:[%s11469_s2 + $0x130] sm:$0xf0]  ;;  %v7523_v29 = vld [vmem:[%s11469_s2 + $0x3b8] sm:$0xf0] }
  0xe9   :  { %2204 = vmatpush.bf16.msrb.mxu1 %v6204_v51  ;;  %v6045_v51 = vld [vmem:[%s11469_s2 + $0x624] sm:$0xf0]  ;;  %v5416_v44 = vor.u32 %v7442_v36, %v5415_v35  ;;  %v5835_v31 = vld [vmem:[%s11469_s2 + $0x470] sm:$0xf]  ;;  %v7547_v35 = vld [vmem:[%s11469_s2 + $0x478] sm:$0xf0] }
  0xea   :  { %2164 = vmatpush.bf16.msra.mxu2 %v5892_v55  ;;  %2178 = vmatpush.bf16.msra.mxu3 %v5988_v59  ;;  %v6141_v55 = vld [vmem:[%s11469_s2 + $0x6e4] sm:$0xf0]  ;;  %v5343_v59 = vld [vmem:[%s11469_s2 + $0x98] sm:$0xf]  ;;  %v6048_v11 = vor.u32 %v7599_v50, %v6045_v51  ;;  %v7439_v50 = vld [vmem:[%s11469_s2 + $0x118] sm:$0xf0] }
  0xeb   :  { %v5475_v36 = vld [vmem:[%s11469_s2 + $0x1a0] sm:$0xf] }
  0xec   :  { %2191 = vmatpush.bf16.msrb.mxu0 %v6096_v32  ;;  %v7424_v32 = vld [vmem:[%s11469_s2 + $0xa0] sm:$0xf0] }
  0xed   :  { %2205 = vmatpush.bf16.msrb.mxu1 %v6192_v0  ;;  %v6144_v0 = vor.u32 %v7623_v54, %v6141_v55  ;;  %v5344_v8 = vor.u32 %v7424_v32, %v5343_v59  ;;  %v7466_v54 = vld [vmem:[%s11469_s2 + $0x1f0] sm:$0xf0]  ;;  %v5308_v55 = vor.u32 %v7415_v47, %v5307_v45  ;;  %v5404_v59 = vor.u32 %v7439_v50, %v5403_v49  ;;  %v5823_v49 = vld [vmem:[%s11469_s2 + $0x458] sm:$0xf]  ;;  %v7544_v50 = vld [vmem:[%s11469_s2 + $0x460] sm:$0xf0] }
  0xee   :  { %2165 = vmatpush.bf16.msra.mxu2 %v5880_v3  ;;  %2179 = vmatpush.bf16.msra.mxu3 %v5976_v6  ;;  %v7620_v3 = vld [vmem:[%s11469_s2 + $0x6c4] sm:$0xf]  ;;  %v7475_v6 = vld [vmem:[%s11469_s2 + $0x238] sm:$0xf0]  ;;  %v5836_v45 = vor.u32 %v7547_v35, %v5835_v31  ;;  %v7562_v35 = vld [vmem:[%s11469_s2 + $0x4f0] sm:$0xf0] }
  0xef   :  { %v6132_v17 = vor.u32 %v7620_v3, %v6129_v4  ;;  %v5595_v4 = vld [vmem:[%s11469_s2 + $0x290] sm:$0xf] }
  0xf0   :  { %2192 = vmatpush.bf16.msrb.mxu0 %v6084_v10  ;;  %v7499_v10 = vld [vmem:[%s11469_s2 + $0x2f8] sm:$0xf0] }
  0xf1   :  { %2206 = vmatpush.bf16.msrb.mxu1 %v6180_v15  ;;  %v5331_v15 = vld [vmem:[%s11469_s2 + $0x80] sm:$0xf] }
  0xf2   :  { %2166 = vmatpush.bf16.msra.mxu2 %v5868_v18  ;;  %2180 = vmatpush.bf16.msra.mxu3 %v5964_v21  ;;  %v5548_v18 = vor.u32 %v7475_v6, %v5547_v5  ;;  %v5644_v21 = vor.u32 %v7499_v10, %v5643_v9  ;;  %v7487_v5 = vld [vmem:[%s11469_s2 + $0x298] sm:$0xf0]  ;;  %v5392_v6 = vor.u32 %v7436_v63, %v5391_v62  ;;  %v7409_v9 = vld [vmem:[%s11469_s2 + $0x28] sm:$0xf0] }
  0xf3   :  { %v5500_v10 = vor.u32 %v7463_v2, %v5499_v1  ;;  %v5824_v62 = vor.u32 %v7544_v50, %v5823_v49  ;;  %v7517_v1 = vld [vmem:[%s11469_s2 + $0x388] sm:$0xf0]  ;;  %v5883_v50 = vld [vmem:[%s11469_s2 + $0x4d0] sm:$0xf] }
  0xf4   :  { %2193 = vmatpush.bf16.msrb.mxu0 %v6072_v25  ;;  %v5332_v25 = vor.u32 %v7421_v16, %v5331_v15  ;;  %v5596_v15 = vor.u32 %v7487_v5, %v5595_v4  ;;  %v5487_v16 = vld [vmem:[%s11469_s2 + $0x1b8] sm:$0xf]  ;;  %v5811_v4 = vld [vmem:[%s11469_s2 + $0x440] sm:$0xf]  ;;  %v7541_v5 = vld [vmem:[%s11469_s2 + $0x448] sm:$0xf0] }
  0xf5   :  { %2207 = vmatpush.bf16.msrb.mxu1 %v6168_v28  ;;  %v5428_v28 = vor.u32 %v7445_v20, %v5427_v19  ;;  %v5583_v19 = vld [vmem:[%s11469_s2 + $0x278] sm:$0xf]  ;;  %v7484_v20 = vld [vmem:[%s11469_s2 + $0x280] sm:$0xf0] }
  0xf6   :  { %2167 = vmatpush.bf16.msra.mxu2 %v5856_v33  ;;  %2181 = vmatpush.bf16.msra.mxu3 %v5952_v39  ;;  %v5536_v33 = vor.u32 %v7472_v23, %v5535_v22  ;;  %v5523_v39 = vld [vmem:[%s11469_s2 + $0x200] sm:$0xf]  ;;  %v7406_v23 = vld [vmem:[%s11469_s2 + $0x10] sm:$0xf0] }
  0xf8   :  { %2194 = vmatpush.bf16.msrb.mxu0 %v6060_v43  ;;  %v7493_v43 = vld [vmem:[%s11469_s2 + $0x2c8] sm:$0xf0] }
  0xf9   :  { %2208 = vmatpush.bf16.msrb.mxu1 %v6156_v48  ;;  %v5524_v48 = vor.u32 %v7469_v40, %v5523_v39  ;;  %v5620_v51 = vor.u32 %v7493_v43, %v5619_v42  ;;  %v5571_v40 = vld [vmem:[%s11469_s2 + $0x260] sm:$0xf] }
  0xfa   :  { %2168 = vmatpush.bf16.msra.mxu2 %v5844_v53  ;;  %2182 = vmatpush.bf16.msra.mxu3 %v5940_v56  ;;  %v5511_v53 = vld [vmem:[%s11469_s2 + $0x1e8] sm:$0xf] }
  0xfb   :  { %v5607_v56 = vld [vmem:[%s11469_s2 + $0x2a8] sm:$0xf]  ;;  %v5512_v32 = vor.u32 %v7466_v54, %v5511_v53  ;;  %v7454_v54 = vld [vmem:[%s11469_s2 + $0x190] sm:$0xf0] }
  0xfc   :  { %2195 = vmatpush.bf16.msrb.mxu0 %v6048_v11  ;;  %v7412_v11 = vld [vmem:[%s11469_s2 + $0x40] sm:$0xf0]  ;;  %v5463_v53 = vld [vmem:[%s11469_s2 + $0x188] sm:$0xf] }
  0xfd   :  { %2209 = vmatpush.bf16.msrb.mxu1 %v6144_v0  ;;  %2169 = vmatmul.bf16.vlgmr.msra.gmra.mxu2 %v8695_v46  ;;  %v5464_v63 = vor.u32 %v7454_v54, %v5463_v53  ;;  %v9476_v53 = vld [vmem:[%s11447_s5] sm:$0x7] }
  0xfe   :  { %2217 = vmatpush.bf16.msrb.mxu2 %v5356_v57  ;;  %2231 = vmatpush.bf16.msrb.mxu3 %v5452_v60  ;;  %v7490_v57 = vld [vmem:[%s11469_s2 + $0x2b0] sm:$0xf0]  ;;  %v5295_v60 = vld [vmem:[%s11469_s2 + $0x38] sm:$0xf] }
  0xff   :  { %2183 = vmatmul.bf16.vlgmr.msra.gmra.mxu3 %v8706_v52  ;;  %v5608_v0 = vor.u32 %v7490_v57, %v5607_v56  ;;  %v5296_v3 = vor.u32 %v7412_v11, %v5295_v60  ;;  %v7478_v56 = vld [vmem:[%s11469_s2 + $0x250] sm:$0xf0]  ;;  %v5931_v57 = vld [vmem:[%s11469_s2 + $0x530] sm:$0xf] }
 0x100   :  { %2196 = vmatpush.bf16.msrb.mxu0 %v6036_v13  ;;  %v7433_v13 = vld [vmem:[%s11469_s2 + $0xe8] sm:$0xf0]  ;;  %v6027_v11 = vld [vmem:[%s11469_s2 + $0x5f0] sm:$0xf] }
 0x101   :  { %2210 = vmatpush.bf16.msrb.mxu1 %v6132_v17  ;;  %v7460_v17 = vld [vmem:[%s11469_s2 + $0x1c0] sm:$0xf0] }
 0x102   :  { %2218 = vmatpush.bf16.msrb.mxu2 %v5344_v8  ;;  %2232 = vmatpush.bf16.msrb.mxu3 %v5440_v12  ;;  %v5283_v8 = vld [vmem:[%s11469_s2 + $0x20] sm:$0xf]  ;;  %v5488_v27 = vor.u32 %v7460_v17, %v5487_v16  ;;  %v5799_v17 = vld [vmem:[%s11469_s2 + $0x428] sm:$0xf] }
 0x103   :  { %2197 = vmatmul.bf16.vlgmr.msrb.gmra.mxu0 %v8770_v34  ;;  %v5379_v12 = vld [vmem:[%s11469_s2 + $0xe0] sm:$0xf] }
 0x104   :  { %2245 = vmatpush.bf16.msra.mxu0 %v5548_v18  ;;  %2211 = vmatmul.bf16.vlgmr.msrb.gmra.mxu1 %v8781_v38  ;;  %v5284_v18 = vor.u32 %v7409_v9, %v5283_v8  ;;  %v5380_v22 = vor.u32 %v7433_v13, %v5379_v12  ;;  %v5919_v8 = vld [vmem:[%s11469_s2 + $0x518] sm:$0xf]  ;;  %v7592_v12 = vld [vmem:[%s11469_s2 + $0x5e0] sm:$0xf0]  ;;  %v5703_v13 = vld [vmem:[%s11469_s2 + $0x368] sm:$0xf] }
 0x105   :  { %2259 = vmatpush.bf16.msra.mxu1 %v5644_v21  ;;  %v5271_v21 = vld [vmem:[%s11469_s2 + $0x8] sm:$0xf] }
 0x106   :  { %2219 = vmatpush.bf16.msrb.mxu2 %v5332_v25  ;;  %2233 = vmatpush.bf16.msrb.mxu3 %v5428_v28  ;;  %v5367_v25 = vld [vmem:[%s11469_s2 + $0xc8] sm:$0xf]  ;;  %v5739_v28 = vld [vmem:[%s11469_s2 + $0x3b0] sm:$0xf]  ;;  %v5272_v39 = vor.u32 %v7406_v23, %v5271_v21  ;;  %v7565_v21 = vld [vmem:[%s11469_s2 + $0x508] sm:$0xf0] }
 0x107   :  { %v5368_v42 = vor.u32 %v7430_v26, %v5367_v25  ;;  %v5740_v43 = vor.u32 %v7523_v29, %v5739_v28  ;;  %v6003_v23 = vld [vmem:[%s11469_s2 + $0x5c0] sm:$0xf]  ;;  %v7589_v25 = vld [vmem:[%s11469_s2 + $0x5c8] sm:$0xf0]  ;;  %v5787_v29 = vld [vmem:[%s11469_s2 + $0x410] sm:$0xf] }
 0x108   :  { %2246 = vmatpush.bf16.msra.mxu0 %v5536_v33  ;;  %v5584_v33 = vor.u32 %v7484_v20, %v5583_v19  ;;  %v5907_v20 = vld [vmem:[%s11469_s2 + $0x500] sm:$0xf]  ;;  %v6004_v31 = vor.u32 %v7589_v25, %v6003_v23  ;;  %v7553_v23 = vld [vmem:[%s11469_s2 + $0x4a8] sm:$0xf0] }
 0x109   :  { %2260 = vmatpush.bf16.msra.mxu1 %v5632_v37  ;;  %v7457_v37 = vld [vmem:[%s11469_s2 + $0x1a8] sm:$0xf0]  ;;  %v5908_v28 = vor.u32 %v7565_v21, %v5907_v20  ;;  %v7643_v21 = vld [vmem:[%s11469_s2 + $0x778] sm:$0xf0] }
 0x10a   :  { %2220 = vmatpush.bf16.msrb.mxu2 %v5320_v41  ;;  %2234 = vmatpush.bf16.msrb.mxu3 %v5416_v44  ;;  %v7481_v41 = vld [vmem:[%s11469_s2 + $0x268] sm:$0xf0]  ;;  %v5727_v44 = vld [vmem:[%s11469_s2 + $0x398] sm:$0xf]  ;;  %v5476_v47 = vor.u32 %v7457_v37, %v5475_v36  ;;  %v5991_v37 = vld [vmem:[%s11469_s2 + $0x5a8] sm:$0xf] }
 0x10c   :  { %2247 = vmatpush.bf16.msra.mxu0 %v5524_v48  ;;  %v7520_v48 = vld [vmem:[%s11469_s2 + $0x3a0] sm:$0xf0] }
 0x10d   :  { %2261 = vmatpush.bf16.msra.mxu1 %v5620_v51  ;;  %v5572_v51 = vor.u32 %v7481_v41, %v5571_v40  ;;  %v5728_v60 = vor.u32 %v7520_v48, %v5727_v44  ;;  %v7532_v48 = vld [vmem:[%s11469_s2 + $0x400] sm:$0xf0] }
 0x10e   :  { %2221 = vmatpush.bf16.msrb.mxu2 %v5308_v55  ;;  %2235 = vmatpush.bf16.msrb.mxu3 %v5404_v59  ;;  %v5559_v55 = vld [vmem:[%s11469_s2 + $0x248] sm:$0xf]  ;;  %v7571_v59 = vld [vmem:[%s11469_s2 + $0x538] sm:$0xf0] }
 0x10f   :  { %v5560_v2 = vor.u32 %v7478_v56, %v5559_v55  ;;  %v5979_v55 = vld [vmem:[%s11469_s2 + $0x590] sm:$0xf]  ;;  %v7583_v56 = vld [vmem:[%s11469_s2 + $0x598] sm:$0xf0] }
 0x110   :  { %2248 = vmatpush.bf16.msra.mxu0 %v5512_v32  ;;  %v7595_v32 = vld [vmem:[%s11469_s2 + $0x5f8] sm:$0xf0] }
 0x111   :  { %2262 = vmatpush.bf16.msra.mxu1 %v5608_v0  ;;  %v5715_v0 = vld [vmem:[%s11469_s2 + $0x380] sm:$0xf] }
 0x112   :  { %2222 = vmatpush.bf16.msrb.mxu2 %v5296_v3  ;;  %2236 = vmatpush.bf16.msrb.mxu3 %v5392_v6  ;;  %v5932_v3 = vor.u32 %v7571_v59, %v5931_v57  ;;  %v6028_v6 = vor.u32 %v7595_v32, %v6027_v11  ;;  %v5716_v9 = vor.u32 %v7517_v1, %v5715_v0  ;;  %v5667_v59 = vld [vmem:[%s11469_s2 + $0x320] sm:$0xf]  ;;  %v651_v0 = vperm.slane %v9476_v53, 0 }
 0x113   :  { %v5980_v1 = vor.u32 %v7583_v56, %v5979_v55  ;;  %v6099_v56 = vld [vmem:[%s11469_s2 + $0x680] sm:$0xf] }
 0x114   :  { %2249 = vmatpush.bf16.msra.mxu0 %v5500_v10  ;;  %v6015_v10 = vld [vmem:[%s11469_s2 + $0x5d8] sm:$0xf] }
 0x115   :  { %2263 = vmatpush.bf16.msra.mxu1 %v5596_v15  ;;  %v7514_v15 = vld [vmem:[%s11469_s2 + $0x370] sm:$0xf0]  ;;  %v6016_v19 = vor.u32 %v7592_v12, %v6015_v10  ;;  %v5751_v12 = vld [vmem:[%s11469_s2 + $0x3c8] sm:$0xf] }
 0x116   :  { %2223 = vmatpush.bf16.msrb.mxu2 %v5284_v18  ;;  %2237 = vmatpush.bf16.msrb.mxu3 %v5380_v22  ;;  %v7538_v18 = vld [vmem:[%s11469_s2 + $0x430] sm:$0xf0]  ;;  %v5704_v22 = vor.u32 %v7514_v15, %v5703_v13 }
 0x117   :  { %v5800_v26 = vor.u32 %v7538_v18, %v5799_v17  ;;  %v7502_v10 = vld [vmem:[%s11469_s2 + $0x310] sm:$0xf0]  ;;  %v6123_v17 = vld [vmem:[%s11469_s2 + $0x6b0] sm:$0xf]  ;;  %v7619_v18 = vld [vmem:[%s11469_s2 + $0x6b8] sm:$0xf0] }
 0x118   :  { %2250 = vmatpush.bf16.msra.mxu0 %v5488_v27  ;;  %v5691_v27 = vld [vmem:[%s11469_s2 + $0x350] sm:$0xf] }
 0x119   :  { %2264 = vmatpush.bf16.msra.mxu1 %v5584_v33  ;;  %v5895_v33 = vld [vmem:[%s11469_s2 + $0x4e8] sm:$0xf] }
 0x11a   :  { %2224 = vmatpush.bf16.msrb.mxu2 %v5272_v39  ;;  %2238 = vmatpush.bf16.msrb.mxu3 %v5368_v42  ;;  %v7586_v39 = vld [vmem:[%s11469_s2 + $0x5b0] sm:$0xf0]  ;;  %v5679_v42 = vld [vmem:[%s11469_s2 + $0x338] sm:$0xf] }
 0x11b   :  { %v5992_v49 = vor.u32 %v7586_v39, %v5991_v37 }
 0x11c   :  { %2251 = vmatpush.bf16.msra.mxu0 %v5476_v47  ;;  %v5775_v47 = vld [vmem:[%s11469_s2 + $0x3f8] sm:$0xf] }
 0x11d   :  { %2265 = vmatpush.bf16.msra.mxu1 %v5572_v51  ;;  %2225 = vmatmul.bf16.vlgmr.msrb.gmra.mxu2 %v8534_v58  ;;  %v7568_v58 = vld [vmem:[%s11469_s2 + $0x520] sm:$0xf0]  ;;  %v7559_v51 = vld [vmem:[%s11469_s2 + $0x4d8] sm:$0xf0]  ;;  %v5776_v57 = vor.u32 %v7532_v48, %v5775_v47  ;;  %v7574_v47 = vld [vmem:[%s11469_s2 + $0x550] sm:$0xf0] }
 0x11e   :  { %2273 = vmatpush.bf16.msra.mxu2 %v5740_v43  ;;  %2287 = vmatpush.bf16.msra.mxu3 %v5836_v45  ;;  %v5920_v16 = vor.u32 %v7568_v58, %v5919_v8  ;;  %v7508_v43 = vld [vmem:[%s11469_s2 + $0x340] sm:$0xf0]  ;;  %v5896_v45 = vor.u32 %v7562_v35, %v5895_v33  ;;  %v5884_v32 = vor.u32 %v7559_v51, %v5883_v50  ;;  %v5655_v8 = vld [vmem:[%s11469_s2 + $0x308] sm:$0xf]  ;;  %v6111_v33 = vld [vmem:[%s11469_s2 + $0x698] sm:$0xf] }
 0x11f   :  { %2239 = vmatmul.bf16.vlgmr.msrb.gmra.mxu3 %v8542_v61  ;;  %v5812_v61 = vor.u32 %v7541_v5, %v5811_v4  ;;  %v1946_v40 = vpop.f32.mrf.mxu2  ;;  %v5680_v54 = vor.u32 %v7508_v43, %v5679_v42  ;;  %v5967_v5 = vld [vmem:[%s11469_s2 + $0x578] sm:$0xf]  ;;  %v5656_v25 = vor.u32 %v7502_v10, %v5655_v8  ;;  %v7616_v35 = vld [vmem:[%s11469_s2 + $0x6a0] sm:$0xf0]  ;;  %v7550_v42 = vld [vmem:[%s11469_s2 + $0x490] sm:$0xf0] }
 0x120   :  { %2252 = vmatpush.bf16.msra.mxu0 %v5464_v63  ;;  %v9459_v44 = vpop.f32.mrf.mxu3  ;;  %v9490_v11 = vpop.f32.mrf.mxu0  ;;  %v7529_v63 = vld [vmem:[%s11469_s2 + $0x3e8] sm:$0xf0] }
 0x121   :  { %2266 = vmatpush.bf16.msra.mxu1 %v5560_v2  ;;  %v5871_v2 = vld [vmem:[%s11469_s2 + $0x4b8] sm:$0xf]  ;;  %v9523_v13 = vpop.f32.mrf.mxu1 }
 0x122   :  { %2274 = vmatpush.bf16.msra.mxu2 %v5728_v60  ;;  %2288 = vmatpush.bf16.msra.mxu3 %v5824_v62  ;;  %v7505_v60 = vld [vmem:[%s11469_s2 + $0x328] sm:$0xf0]  ;;  %v5763_v62 = vld [vmem:[%s11469_s2 + $0x3e0] sm:$0xf] }
 0x123   :  { %2253 = vmatmul.bf16.vlgmr.msra.gmra.mxu0 %v8578_v24  ;;  %v7511_v24 = vld [vmem:[%s11469_s2 + $0x358] sm:$0xf0]  ;;  %v5668_v4 = vor.u32 %v7505_v60, %v5667_v59 }
 0x124   :  { %2301 = vmatpush.bf16.msrb.mxu0 %v5932_v3  ;;  %2267 = vmatmul.bf16.vlgmr.msra.gmra.mxu1 %v8589_v30  ;;  %v7535_v30 = vld [vmem:[%s11469_s2 + $0x418] sm:$0xf0]  ;;  %v5692_v36 = vor.u32 %v7511_v24, %v5691_v27  ;;  %v7556_v3 = vld [vmem:[%s11469_s2 + $0x4c0] sm:$0xf0]  ;;  %v7577_v27 = vld [vmem:[%s11469_s2 + $0x568] sm:$0xf0] }
 0x125   :  { %2315 = vmatpush.bf16.msrb.mxu1 %v6028_v6  ;;  %v5788_v41 = vor.u32 %v7535_v30, %v5787_v29  ;;  %v7580_v6 = vld [vmem:[%s11469_s2 + $0x580] sm:$0xf0]  ;;  %v1947_v29 = vadd.f32 %v1946_v40, %v651_v0 }
 0x126   :  { %2275 = vmatpush.bf16.msra.mxu2 %v5716_v9  ;;  %2289 = vmatpush.bf16.msra.mxu3 %v5812_v61  ;;  %v5764_v9 = vor.u32 %v7529_v63, %v5763_v62  ;;  %v7526_v61 = vld [vmem:[%s11469_s2 + $0x3d0] sm:$0xf0]  ;;  %v5968_v20 = vor.u32 %v7580_v6, %v5967_v5  ;;  %v7640_v40 = vld [vmem:[%s11469_s2 + $0x760] sm:$0xf0]  ;;  %v7637_v62 = vld [vmem:[%s11469_s2 + $0x748] sm:$0xf0] }
 0x127   :  { %v1948_v58 = vpop.f32.mrf.mxu2  ;;  %v5752_v24 = vor.u32 %v7526_v61, %v5751_v12  ;;  %v1961_v50 = vadd.f32 %v9459_v44, %v1947_v29  ;;  %v7651_v44 = vld [vmem:[%s11448_s6 + $0x38] sm:$0xff]  ;;  %v7634_v5 = vld [vmem:[%s11469_s2 + $0x730] sm:$0xf0]  ;;  %v6075_v12 = vld [vmem:[%s11469_s2 + $0x650] sm:$0xf] }
 0x128   :  { %2302 = vmatpush.bf16.msrb.mxu0 %v5920_v16  ;;  %v1962_v15 = vpop.f32.mrf.mxu3  ;;  %v5872_v16 = vor.u32 %v7556_v3, %v5871_v2  ;;  %v1949_v37 = vadd.f32 %v1948_v58, %v651_v0  ;;  %v1976_v43 = vpop.f32.mrf.mxu0  ;;  %v6087_v2 = vld [vmem:[%s11469_s2 + $0x668] sm:$0xf]  ;;  %v7610_v3 = vld [vmem:[%s11469_s2 + $0x670] sm:$0xf0]  ;;  %v7607_v61 = vld [vmem:[%s11469_s2 + $0x658] sm:$0xf0] }
 0x129   :  { %2316 = vmatpush.bf16.msrb.mxu1 %v6016_v19  ;;  %v6219_v19 = vld [vmem:[%s11469_s2 + $0x770] sm:$0xf]  ;;  %v1990_v63 = vpop.f32.mrf.mxu1  ;;  %v6088_v8 = vor.u32 %v7610_v3, %v6087_v2  ;;  %v7659_v2 = vld [vmem:[%s11448_s6 + $0x78] sm:$0xff]  ;;  %v7644_v3 = vld [vmem:[%s11448_s6] sm:$0xff] }
 0x12a   :  { %2276 = vmatpush.bf16.msra.mxu2 %v5704_v22  ;;  %2290 = vmatpush.bf16.msra.mxu3 %v5800_v26  ;;  %v5859_v22 = vld [vmem:[%s11469_s2 + $0x4a0] sm:$0xf]  ;;  %v6220_v30 = vor.u32 %v7643_v21, %v6219_v19  ;;  %v1963_v59 = vadd.f32 %v1962_v15, %v1949_v37  ;;  %v6076_v19 = vor.u32 %v7607_v61, %v6075_v12  ;;  %v7654_v12 = vld [vmem:[%s11448_s6 + $0x50] sm:$0xff] }
 0x12b   :  { %v5955_v26 = vld [vmem:[%s11469_s2 + $0x560] sm:$0xf] }
 0x12c   :  { %2303 = vmatpush.bf16.msrb.mxu0 %v5908_v28  ;;  %v6124_v28 = vor.u32 %v7619_v18, %v6123_v17  ;;  %v5956_v39 = vor.u32 %v7577_v27, %v5955_v26  ;;  %v6159_v26 = vld [vmem:[%s11469_s2 + $0x6f8] sm:$0xf]  ;;  %v7628_v27 = vld [vmem:[%s11469_s2 + $0x700] sm:$0xf0]  ;;  %v6147_v37 = vld [vmem:[%s11469_s2 + $0x6e0] sm:$0xf] }
 0x12d   :  { %2317 = vmatpush.bf16.msrb.mxu1 %v6004_v31  ;;  %v5860_v31 = vor.u32 %v7553_v23, %v5859_v22  ;;  %v6063_v22 = vld [vmem:[%s11469_s2 + $0x638] sm:$0xf]  ;;  %v7604_v23 = vld [vmem:[%s11469_s2 + $0x640] sm:$0xf0] }
 0x12e   :  { %2277 = vmatpush.bf16.msra.mxu2 %v5692_v36  ;;  %2291 = vmatpush.bf16.msra.mxu3 %v5788_v41  ;;  %v6207_v36 = vld [vmem:[%s11469_s2 + $0x758] sm:$0xf]  ;;  %v5847_v41 = vld [vmem:[%s11469_s2 + $0x488] sm:$0xf]  ;;  %v6064_v29 = vor.u32 %v7604_v23, %v6063_v22 }
 0x12f   :  { %v2002_v48 = vpop.f32.mrf.mxu2  ;;  %v5848_v55 = vor.u32 %v7550_v42, %v5847_v41 }
 0x130   :  { %2304 = vmatpush.bf16.msrb.mxu0 %v5896_v45  ;;  %v5943_v45 = vld [vmem:[%s11469_s2 + $0x548] sm:$0xf]  ;;  %v2016_v51 = vpop.f32.mrf.mxu3 }
 0x131   :  { %2318 = vmatpush.bf16.msrb.mxu1 %v5992_v49  ;;  %v6112_v49 = vor.u32 %v7616_v35, %v6111_v33  ;;  %v5944_v60 = vor.u32 %v7574_v47, %v5943_v45  ;;  %v6051_v33 = vld [vmem:[%s11469_s2 + $0x620] sm:$0xf]  ;;  %v7601_v35 = vld [vmem:[%s11469_s2 + $0x628] sm:$0xf0] }
 0x132   :  { %2278 = vmatpush.bf16.msra.mxu2 %v5680_v54  ;;  %2292 = vmatpush.bf16.msra.mxu3 %v5776_v57  ;;  %v6208_v54 = vor.u32 %v7640_v40, %v6207_v36  ;;  %v7613_v57 = vld [vmem:[%s11469_s2 + $0x688] sm:$0xf0]  ;;  %v7647_v36 = vld [vmem:[%s11448_s6 + $0x18] sm:$0xff]  ;;  %v6052_v45 = vor.u32 %v7601_v35, %v6051_v33 }
 0x133   :  { %v6100_v0 = vor.u32 %v7613_v57, %v6099_v56 }
 0x134   :  { %2305 = vmatpush.bf16.msrb.mxu0 %v5884_v32  ;;  %v6195_v32 = vld [vmem:[%s11469_s2 + $0x740] sm:$0xf] }
 0x135   :  { %2319 = vmatpush.bf16.msrb.mxu1 %v5980_v1  ;;  %v6196_v1 = vor.u32 %v7637_v62, %v6195_v32 }
 0x136   :  { %2279 = vmatpush.bf16.msra.mxu2 %v5668_v4  ;;  %2293 = vmatpush.bf16.msra.mxu3 %v5764_v9  ;;  %v1977_v4 = vadd.f32 %v1976_v43, %v1963_v59  ;;  %v2030_v9 = vpop.f32.mrf.mxu0 }
 0x137   :  { %v2004_v6 = vpop.f32.mrf.mxu2 }
 0x138   :  { %2306 = vmatpush.bf16.msrb.mxu0 %v5872_v16  ;;  %v1991_v15 = vadd.f32 %v1990_v63, %v1977_v4  ;;  %v2018_v17 = vpop.f32.mrf.mxu3  ;;  %v7645_v63 = vld [vmem:[%s11448_s6 + $0x8] sm:$0xff] }
 0x139   :  { %2320 = vmatpush.bf16.msrb.mxu1 %v5968_v20  ;;  %v2044_v20 = vpop.f32.mrf.mxu1 }
 0x13a   :  { %2280 = vmatpush.bf16.msra.mxu2 %v5656_v25  ;;  %2294 = vmatpush.bf16.msra.mxu3 %v5752_v24  ;;  %v2005_v18 = vadd.f32 %v2004_v6, %v1991_v15  ;;  %v7648_v25 = vld [vmem:[%s11448_s6 + $0x20] sm:$0xff]  ;;  %v7657_v6 = vld [vmem:[%s11448_s6 + $0x68] sm:$0xff] }
 0x13c   :  { %2307 = vmatpush.bf16.msrb.mxu0 %v5860_v31  ;;  %v6160_v31 = vor.u32 %v7628_v27, %v6159_v26 }
 0x13d   :  { %2321 = vmatpush.bf16.msrb.mxu1 %v5956_v39  ;;  %2281 = vmatmul.bf16.vlgmr.msra.gmra.mxu2 %v8643_v7  ;;  %v1975_v7 = vadd.f32 %v9490_v11, %v1961_v50  ;;  %v6183_v11 = vld [vmem:[%s11469_s2 + $0x728] sm:$0xf]  ;;  %v7625_v39 = vld [vmem:[%s11469_s2 + $0x6e8] sm:$0xf0]  ;;  %v7646_v50 = vld [vmem:[%s11448_s6 + $0x10] sm:$0xff] }
 0x13e   :  { %2329 = vmatpush.bf16.msrb.mxu2 %v6124_v28  ;;  %2343 = vmatpush.bf16.msrb.mxu3 %v6220_v30  ;;  %v6184_v10 = vor.u32 %v7634_v5, %v6183_v11  ;;  %v2019_v28 = vadd.f32 %v2018_v17, %v2005_v18  ;;  %v2032_v41 = vpop.f32.mrf.mxu0  ;;  %v6148_v47 = vor.u32 %v7625_v39, %v6147_v37  ;;  %v7652_v18 = vld [vmem:[%s11448_s6 + $0x40] sm:$0xff] }
 0x13f   :  { %2295 = vmatmul.bf16.vlgmr.msra.gmra.mxu3 %v8654_v14  ;;  %v7650_v14 = vld [vmem:[%s11448_s6 + $0x30] sm:$0xff]  ;;  %v1989_v58 = vadd.f32 %v9523_v13, %v1975_v7  ;;  %v7631_v13 = vld [vmem:[%s11469_s2 + $0x718] sm:$0xf0] }
 0x140   :  { %2308 = vmatpush.bf16.msrb.mxu0 %v5848_v55  ;;  %v2058_v30 = vpop.f32.mrf.mxu2  ;;  %v2033_v43 = vadd.f32 %v2032_v41, %v2019_v28 }
 0x141   :  { %2322 = vmatpush.bf16.msrb.mxu1 %v5944_v60  ;;  %v2003_v16 = vadd.f32 %v2002_v48, %v1989_v58  ;;  %v6039_v48 = vld [vmem:[%s11469_s2 + $0x608] sm:$0xf]  ;;  %v2046_v56 = vpop.f32.mrf.mxu1 }
 0x142   :  { %2330 = vmatpush.bf16.msrb.mxu2 %v6112_v49  ;;  %2344 = vmatpush.bf16.msrb.mxu3 %v6208_v54  ;;  %v2072_v42 = vpop.f32.mrf.mxu3  ;;  %v7598_v49 = vld [vmem:[%s11469_s2 + $0x610] sm:$0xf0]  ;;  %v2047_v57 = vadd.f32 %v2046_v56, %v2033_v43 }
 0x143   :  { %2309 = vmatmul.bf16.vlgmr.msrb.gmra.mxu0 %v8695_v46  ;;  %v7649_v46 = vld [vmem:[%s11448_s6 + $0x28] sm:$0xff]  ;;  %v2017_v24 = vadd.f32 %v2016_v51, %v2003_v16  ;;  %v7622_v54 = vld [vmem:[%s11469_s2 + $0x6d0] sm:$0xf0]  ;;  %v6040_v59 = vor.u32 %v7598_v49, %v6039_v48 }
 0x144   :  { %2534 = vmatpush.bf16.msra.mxu0 %v7651_v44  ;;  %2323 = vmatmul.bf16.vlgmr.msrb.gmra.mxu1 %v8706_v52  ;;  %v6171_v52 = vld [vmem:[%s11469_s2 + $0x710] sm:$0xf]  ;;  %v6135_v51 = vld [vmem:[%s11469_s2 + $0x6c8] sm:$0xf] }
 0x145   :  { %v6172_v21 = vor.u32 %v7631_v13, %v6171_v52  ;;  %v2031_v40 = vadd.f32 %v2030_v9, %v2017_v24  ;;  %v6136_v32 = vor.u32 %v7622_v54, %v6135_v51  ;;  %2548 = vmatpush.bf16.msra.mxu1 %v7659_v2 }
 0x146   :  { %2331 = vmatpush.bf16.msrb.mxu2 %v6100_v0  ;;  %2345 = vmatpush.bf16.msrb.mxu3 %v6196_v1 }
 0x147   :  { %v2045_v55 = vadd.f32 %v2044_v20, %v2031_v40 }
 0x148   :  { %2535 = vmatpush.bf16.msra.mxu0 %v7650_v14  ;;  %v2060_v44 = vpop.f32.mrf.mxu2  ;;  %v7658_v14 = vld [vmem:[%s11448_s6 + $0x70] sm:$0xff] }
 0x149   :  { %v2059_v60 = vadd.f32 %v2058_v30, %v2045_v55  ;;  %v2061_v62 = vadd.f32 %v2060_v44, %v2047_v57  ;;  %2549 = vmatpush.bf16.msra.mxu1 %v7658_v14  ;;  %v2100_v58 = vpop.f32.mrf.mxu1 }
 0x14a   :  { %2332 = vmatpush.bf16.msrb.mxu2 %v6088_v8  ;;  %2346 = vmatpush.bf16.msrb.mxu3 %v6184_v10  ;;  %v2074_v0 = vpop.f32.mrf.mxu3  ;;  %v2086_v8 = vpop.f32.mrf.mxu0  ;;  %v652_v10 = vperm.slane %v9476_v53, 1 }
 0x14b   :  { %v2075_v7 = vadd.f32 %v2074_v0, %v2061_v62  ;;  %v2073_v1 = vadd.f32 %v2072_v42, %v2059_v60  ;;  %v7663_v62 = vld [vmem:[%s11448_s6 + $0x98] sm:$0xff]  ;;  %v7662_v0 = vld [vmem:[%s11448_s6 + $0x90] sm:$0xff] }
 0x14c   :  { %2536 = vmatpush.bf16.msra.mxu0 %v7649_v46  ;;  %v2087_v15 = vadd.f32 %v2086_v8, %v652_v10  ;;  %v7653_v46 = vld [vmem:[%s11448_s6 + $0x48] sm:$0xff] }
 0x14d   :  { %v2360_v4 = vmax.f32 %v2075_v7, 0.0  ;;  %v2357_v11 = vmax.f32 %v2073_v1, 0.0  ;;  %2550 = vmatpush.bf16.msra.mxu1 %v7657_v6 }
 0x14e   :  { %2333 = vmatpush.bf16.msrb.mxu2 %v6076_v19  ;;  %2347 = vmatpush.bf16.msrb.mxu3 %v6172_v21  ;;  %v2101_v17 = vadd.f32 %v2100_v58, %v2087_v15 }
 0x14f   :  { %v2363_v5 = vpack.c.bf16 %v2360_v4, %v2357_v11  ;;  %v7661_v4 = vld [vmem:[%s11448_s6 + $0x88] sm:$0xff] }
 0x150   :  { %2537 = vmatpush.bf16.msra.mxu0 %v7648_v25 }
 0x151   :  { %v2102_v61 = vpop.f32.mrf.mxu1 }
 0x152   :  { %2334 = vmatpush.bf16.msrb.mxu2 %v6064_v29  ;;  %2348 = vmatpush.bf16.msrb.mxu3 %v6160_v31  ;;  %v2088_v9 = vpop.f32.mrf.mxu0 }
 0x153   :  { %v2089_v21 = vadd.f32 %v2088_v9, %v652_v10 }
 0x154   :  { %2538 = vmatpush.bf16.msra.mxu0 %v7647_v36 }
 0x155   :  { %v2103_v25 = vadd.f32 %v2102_v61, %v2089_v21 }
 0x156   :  { %2335 = vmatpush.bf16.msrb.mxu2 %v6052_v45  ;;  %2349 = vmatpush.bf16.msrb.mxu3 %v6148_v47 }
 0x158   :  { %2539 = vmatpush.bf16.msra.mxu0 %v7646_v50 }
 0x15a   :  { %2336 = vmatpush.bf16.msrb.mxu2 %v6040_v59  ;;  %2350 = vmatpush.bf16.msrb.mxu3 %v6136_v32 }
 0x15c   :  { %2540 = vmatpush.bf16.msra.mxu0 %v7645_v63  ;;  %v653_v63 = vperm.slane %v9476_v53, 2  ;;  %v7660_v53 = vld [vmem:[%s11448_s6 + $0x80] sm:$0xff] }
 0x15d   :  { %2337 = vmatmul.bf16.vlgmr.msrb.gmra.mxu2 %v8770_v34  ;;  %2351 = vmatmul.bf16.vlgmr.msrb.gmra.mxu3 %v8781_v38  ;;  %v7656_v34 = vld [vmem:[%s11448_s6 + $0x60] sm:$0xff]  ;;  %v7655_v38 = vld [vmem:[%s11448_s6 + $0x58] sm:$0xff] }
 0x15e   :  { %2551 = vmatpush.bf16.msra.mxu1 %v7656_v34  ;;  %2566 = vmatpush.bf16.msra.mxu2 %v7663_v62 }
 0x160   :  { %2541 = vmatpush.bf16.msra.mxu0 %v7644_v3  ;;  %v2114_v52 = vpop.f32.mrf.mxu2  ;;  %v2142_v16 = vpop.f32.mrf.mxu0 }
 0x161   :  { %v2156_v19 = vpop.f32.mrf.mxu1  ;;  %v2115_v20 = vadd.f32 %v2114_v52, %v2101_v17 }
 0x162   :  { %2552 = vmatpush.bf16.msra.mxu1 %v7655_v38  ;;  %v2128_v13 = vpop.f32.mrf.mxu3  ;;  %2567 = vmatpush.bf16.msra.mxu2 %v7662_v0 }
 0x163   :  { %2542 = vmatmul.bf16.vlgmr.msra.gmra.mxu0 %v2363_v5  ;;  %v2129_v22 = vadd.f32 %v2128_v13, %v2115_v20 }
 0x165   :  { %v2143_v24 = vadd.f32 %v2142_v16, %v2129_v22 }
 0x166   :  { %2553 = vmatpush.bf16.msra.mxu1 %v7654_v12  ;;  %2568 = vmatpush.bf16.msra.mxu2 %v7661_v4 }
 0x167   :  { %v2157_v30 = vadd.f32 %v2156_v19, %v2143_v24 }
 0x168   :  { %v2116_v23 = vpop.f32.mrf.mxu2  ;;  %v2144_v27 = vpop.f32.mrf.mxu0 }
 0x169   :  { %v2117_v28 = vadd.f32 %v2116_v23, %v2103_v25  ;;  %v2158_v29 = vpop.f32.mrf.mxu1 }
 0x16a   :  { %2554 = vmatpush.bf16.msra.mxu1 %v7653_v46  ;;  %v2130_v26 = vpop.f32.mrf.mxu3  ;;  %2569 = vmatpush.bf16.msra.mxu2 %v7660_v53  ;;  %v6304_v53 = vld [vmem:[%s11452_s10] sm:$0xf] }
 0x16b   :  { %v2131_v31 = vadd.f32 %v2130_v26, %v2117_v28 }
 0x16d   :  { %v2145_v39 = vadd.f32 %v2144_v27, %v2131_v31 }
 0x16e   :  { %2555 = vmatpush.bf16.msra.mxu1 %v7652_v18 }
 0x16f   :  { %v2159_v42 = vadd.f32 %v2158_v29, %v2145_v39 }
 0x180   :  { %v2170_v33 = vpop.f32.mrf.mxu2  ;;  %v2198_v37 = vpop.f32.mrf.mxu0 }
 0x181   :  { %v2171_v35 = vadd.f32 %v2170_v33, %v2157_v30  ;;  %v2212_v40 = vpop.f32.mrf.mxu1 }
 0x182   :  { %v2184_v36 = vpop.f32.mrf.mxu3 }
 0x183   :  { %v2185_v41 = vadd.f32 %v2184_v36, %v2171_v35 }
 0x185   :  { %v2199_v45 = vadd.f32 %v2198_v37, %v2185_v41 }
 0x187   :  { %v2213_v51 = vadd.f32 %v2212_v40, %v2199_v45  ;;  %v23_v40 = vstv %s11451_s9 }
 0x188   :  { %v2172_v43 = vpop.f32.mrf.mxu2  ;;  %v2200_v50 = vpop.f32.mrf.mxu0  ;;  %24 = vst [vmem:[#allocation2] sm:$0x1] %v23_v40  ;;  %v2599_v40 = vlaneseq }
 0x189   :  { %v2173_v47 = vadd.f32 %v2172_v43, %v2159_v42  ;;  %v2214_v55 = vpop.f32.mrf.mxu1  ;;  %v2358_v57 = vmax.f32 %v2213_v51, 0.0  ;;  %v7940_v42 = vld [vmem:[%s11449_s7] ss:$0 sm:$0xff] }
 0x18a   :  { %v2186_v48 = vpop.f32.mrf.mxu3 }
 0x18b   :  { %v2187_v49 = vadd.f32 %v2186_v48, %v2173_v47 }
 0x18d   :  { %v2201_v54 = vadd.f32 %v2200_v50, %v2187_v49  ;;  %v7941_v50 = vld [vmem:[%s11450_s8] ss:$0 sm:$0xff] }
 0x18f   :  { %v2215_v56 = vadd.f32 %v2214_v55, %v2201_v54 }
 0x191   :  { %v2361_v59 = vmax.f32 %v2215_v56, 0.0 }
 0x193   :  { %v2364_v60 = vpack.c.bf16 %v2361_v59, %v2358_v57 }
 0x195   :  { %2556 = vmatmul.bf16.vlgmr.msra.gmra.mxu1 %v2364_v60 }
 0x1a0   :  { %v2226_v44 = vpop.f32.mrf.mxu2  ;;  %v2254_v7 = vpop.f32.mrf.mxu0 }
 0x1a1   :  { %v2227_v3 = vadd.f32 %v2226_v44, %v653_v63  ;;  %v2268_v14 = vpop.f32.mrf.mxu1 }
 0x1a2   :  { %v2240_v32 = vpop.f32.mrf.mxu3 }
 0x1a3   :  { %v2241_v11 = vadd.f32 %v2240_v32, %v2227_v3 }
 0x1a5   :  { %v2255_v34 = vadd.f32 %v2254_v7, %v2241_v11  ;;  %v7946_v7 = vmov 0  }
 0x1a6   :  { %7938 = vset.pattern.permute.xlu0 %v7946_v7  ;;  %7937 = vset.pattern.permute.xlu1 %v7946_v7 }
 0x1a7   :  { %v2269_v10 = vadd.f32 %v2268_v14, %v2255_v34  ;;  %7939 = vset.pattern.permute.xlu2 %v7946_v7 }
 0x1a8   :  { %v2228_v1 = vpop.f32.mrf.mxu2  ;;  %v2256_v58 = vpop.f32.mrf.mxu0 }
 0x1a9   :  { %v2229_v5 = vadd.f32 %v2228_v1, %v653_v63  ;;  %v2270_v9 = vpop.f32.mrf.mxu1  ;;  %v7942_v1 = vld [vmem:[#allocation2] ss:$0 sm:$0xff] }
 0x1aa   :  { %v2242_v2 = vpop.f32.mrf.mxu3 }
 0x1ab   :  { %v2243_v38 = vadd.f32 %v2242_v2, %v2229_v5 }
 0x1ad   :  { %v2257_v12 = vadd.f32 %v2256_v58, %v2243_v38  ;;  %v7947_v58 = vmov 65535   ;;  %v7664_v38 = vld [vmem:[%s11452_s10 + $0x4] sm:$0xf] }
 0x1ae   :  { %v2710_v34 = vsel %vm2708_vm3, 4294967295, %v7947_v58 }
 0x1af   :  { %v2271_v52 = vadd.f32 %v2270_v9, %v2257_v12  ;;  %v6306_v9 = vld [vmem:[%s11452_s10 + $0x28] sm:$0x10] }
 0x1b0   :  { %v6309_v12 = vor.u32 %v7664_v38, %v6306_v9  ;;  %v7714_v38 = vld [vmem:[%s11454_s12 + $0x140] sm:$0xf0]  ;;  %v6426_v9 = vld [vmem:[%s11454_s12 + $0x90] sm:$0xf] }
 0x1c0   :  { %v2282_v6 = vpop.f32.mrf.mxu2  ;;  %v2310_v15 = vpop.f32.mrf.mxu0 }
 0x1c1   :  { %v2283_v61 = vadd.f32 %v2282_v6, %v2269_v10  ;;  %v2324_v18 = vpop.f32.mrf.mxu1  ;;  %v7669_v6 = vld [vmem:[%s11452_s10 + $0x24] sm:$0x10]  ;;  %v9740_v10 = vsel %vm2709_vm4, %v2710_v34, 0  ;;  %v6510_v34 = vld [vmem:[%s11454_s12 + $0x138] sm:$0xf] }
 0x1c2   :  { %v2296_v8 = vpop.f32.mrf.mxu3 }
 0x1c3   :  { %v2297_v16 = vadd.f32 %v2296_v8, %v2283_v61  ;;  %v6305_v8 = vor.u32 %v7669_v6, %v6304_v53  ;;  %v6312_v61 = vld [vmem:[%s11452_s10 + $0x8] sm:$0xf] }
 0x1c4   :  { %v6438_v53 = vld [vmem:[%s11454_s12 + $0xa8] sm:$0xf] }
 0x1c5   :  { %v2311_v19 = vadd.f32 %v2310_v15, %v2297_v16  ;;  %v7670_v15 = vld [vmem:[%s11452_s10 + $0x2c] sm:$0x10]  ;;  %v6314_v16 = vld [vmem:[%s11452_s10 + $0x30] sm:$0x10] }
 0x1c7   :  { %v2325_v25 = vadd.f32 %v2324_v18, %v2311_v19 }
 0x1c8   :  { %v2284_v46 = vpop.f32.mrf.mxu2  ;;  %v2312_v23 = vpop.f32.mrf.mxu0 }
 0x1c9   :  { %v2285_v17 = vadd.f32 %v2284_v46, %v2271_v52  ;;  %v2326_v24 = vpop.f32.mrf.mxu1  ;;  %v2713_v46 = vand.u32 %v6305_v8, %v9740_v10  ;;  %v6313_v52 = vor.u32 %v7670_v15, %v6312_v61  ;;  %v7696_v8 = vld [vmem:[%s11454_s12 + $0xb0] sm:$0xf0]  ;;  %v6511_v61 = vor.u32 %v7714_v38, %v6510_v34  ;;  %v6498_v15 = vld [vmem:[%s11454_s12 + $0x120] sm:$0xf]  ;;  %v6678_v34 = vld [vmem:[%s11454_s12 + $0x288] sm:$0xf] }
 0x1ca   :  { %v2298_v13 = vpop.f32.mrf.mxu3  ;;  %v6439_v58 = vor.u32 %v7696_v8, %v6438_v53  ;;  %v7816_v8 = vld [vmem:[%s11454_s12 + $0x470] sm:$0xf0] }
 0x1cb   :  { %v2299_v20 = vadd.f32 %v2298_v13, %v2285_v17  ;;  %v7665_v13 = vld [vmem:[%s11452_s10 + $0xc] sm:$0xf]  ;;  %v2716_v17 = vand.u32 %v6309_v12, %v9740_v10  ;;  %2749 = vmatpush.bf16.msra.mxu3 %v2713_v46  ;;  %v2719_v19 = vand.u32 %v6313_v52, %v9740_v10  ;;  %v6414_v52 = vld [vmem:[%s11454_s12 + $0x78] sm:$0xf]  ;;  %v7756_v38 = vld [vmem:[%s11454_s12 + $0x290] sm:$0xf0] }
 0x1cc   :  { %v6317_v18 = vor.u32 %v7665_v13, %v6314_v16  ;;  %v7711_v46 = vld [vmem:[%s11454_s12 + $0x128] sm:$0xf0]  ;;  %v7690_v13 = vld [vmem:[%s11454_s12 + $0x80] sm:$0xf0]  ;;  %v6630_v16 = vld [vmem:[%s11454_s12 + $0x228] sm:$0xf] }
 0x1cd   :  { %v2313_v26 = vadd.f32 %v2312_v23, %v2299_v20  ;;  %2763 = vmatpush.bf16.msrb.mxu0 %v2716_v17  ;;  %2777 = vmatpush.bf16.msrb.mxu1 %v2719_v19  ;;  %v7666_v23 = vld [vmem:[%s11452_s10 + $0x14] sm:$0xf]  ;;  %v6726_v19 = vld [vmem:[%s11454_s12 + $0x2e8] sm:$0xf] }
 0x1ce   :  { %v2722_v20 = vand.u32 %v6317_v18, %v9740_v10  ;;  %v7744_v17 = vld [vmem:[%s11454_s12 + $0x230] sm:$0xf0]  ;;  %v6415_v18 = vor.u32 %v7690_v13, %v6414_v52 }
 0x1cf   :  { %v2327_v28 = vadd.f32 %v2326_v24, %v2313_v26  ;;  %v6322_v26 = vld [vmem:[%s11452_s10 + $0x38] sm:$0x10]  ;;  %v7672_v24 = vld [vmem:[%s11452_s10 + $0x3c] sm:$0x10]  ;;  %v7792_v52 = vld [vmem:[%s11454_s12 + $0x3b0] sm:$0xf0] }
 0x1d0   :  { %2791 = vmatpush.bf16.msrb.mxu2 %v2722_v20  ;;  %v7768_v20 = vld [vmem:[%s11454_s12 + $0x2f0] sm:$0xf0] }
 0x1e0   :  { %v2338_v21 = vpop.f32.mrf.mxu2  ;;  %v2352_v22 = vpop.f32.mrf.mxu3 }
 0x1e1   :  { %v2339_v27 = vadd.f32 %v2338_v21, %v2325_v25  ;;  %v2543_v41 = vpop.f32.mrf.mxu0  ;;  %v6320_v21 = vld [vmem:[%s11452_s10 + $0x10] sm:$0xf] }
 0x1e2   :  { %v2544_v45 = vadd.f32 %v7940_v42, %v2543_v41  ;;  %v7948_v41 = vmov 839922192  }
 0x1e3   :  { %v2353_v30 = vadd.f32 %v2352_v22, %v2339_v27  ;;  %v7671_v22 = vld [vmem:[%s11452_s10 + $0x34] sm:$0x10] }
 0x1e4   :  { %v6321_v25 = vor.u32 %v7671_v22, %v6320_v21  ;;  %v6328_v27 = vld [vmem:[%s11452_s10 + $0x18] sm:$0xf]  ;;  %v6499_v21 = vor.u32 %v7711_v46, %v6498_v15  ;;  %v6486_v22 = vld [vmem:[%s11454_s12 + $0x108] sm:$0xf] }
 0x1e5   :  { %v2359_v36 = vmax.f32 %v2353_v30, 0.0  ;;  %v7667_v30 = vld [vmem:[%s11452_s10 + $0x1c] sm:$0xf]  ;;  %v6822_v46 = vld [vmem:[%s11454_s12 + $0x3a8] sm:$0xf] }
 0x1e8   :  { %v2340_v29 = vpop.f32.mrf.mxu2  ;;  %v2354_v33 = vpop.f32.mrf.mxu3 }
 0x1e9   :  { %v2341_v31 = vadd.f32 %v2340_v29, %v2327_v28  ;;  %v2545_v51 = vpop.f32.mrf.mxu0  ;;  %v6325_v28 = vor.u32 %v7666_v23, %v6322_v26  ;;  %v6329_v29 = vor.u32 %v7672_v24, %v6328_v27  ;;  %v7708_v23 = vld [vmem:[%s11454_s12 + $0x110] sm:$0xf0]  ;;  %v7687_v26 = vld [vmem:[%s11454_s12 + $0x68] sm:$0xf0]  ;;  %v6631_v27 = vor.u32 %v7744_v17, %v6630_v16  ;;  %v6618_v24 = vld [vmem:[%s11454_s12 + $0x210] sm:$0xf] }
 0x1ea   :  { %v2546_v56 = vadd.f32 %v7940_v42, %v2545_v51  ;;  %v2610_v42 = vunpack.c.l.s4 %v7948_v41  ;;  %v7673_v51 = vld [vmem:[%s11452_s10 + $0x44] sm:$0x10]  ;;  %v6570_v16 = vld [vmem:[%s11454_s12 + $0x1b0] sm:$0xf]  ;;  %v6679_v17 = vor.u32 %v7756_v38, %v6678_v34  ;;  %v7086_v34 = vld [vmem:[%s11454_s12 + $0x5b8] sm:$0xf] }
 0x1eb   :  { %v2355_v35 = vadd.f32 %v2354_v33, %v2341_v31  ;;  %v6330_v31 = vld [vmem:[%s11452_s10 + $0x40] sm:$0x10]  ;;  %v2725_v33 = vand.u32 %v6321_v25, %v9740_v10  ;;  %v6402_v25 = vld [vmem:[%s11454_s12 + $0x60] sm:$0xf] }
 0x1ed   :  { %v2362_v37 = vmax.f32 %v2355_v35, 0.0  ;;  %v6333_v35 = vor.u32 %v7667_v30, %v6330_v31  ;;  %2805 = vmatpush.bf16.msrb.mxu3 %v2725_v33  ;;  %v6714_v30 = vld [vmem:[%s11454_s12 + $0x2d0] sm:$0xf]  ;;  %v7765_v31 = vld [vmem:[%s11454_s12 + $0x2d8] sm:$0xf0]  ;;  %v6487_v33 = vor.u32 %v7708_v23, %v6486_v22 }
 0x1ee   :  { %v7753_v22 = vld [vmem:[%s11454_s12 + $0x278] sm:$0xf0] }
 0x1ef   :  { %v2365_v39 = vpack.c.bf16 %v2362_v37, %v2359_v36  ;;  %v2728_v36 = vand.u32 %v6325_v28, %v9740_v10  ;;  %v2731_v37 = vand.u32 %v6329_v29, %v9740_v10  ;;  %v7741_v28 = vld [vmem:[%s11454_s12 + $0x218] sm:$0xf0]  ;;  %v6727_v29 = vor.u32 %v7768_v20, %v6726_v19 }
 0x1f0   :  { %v6619_v41 = vor.u32 %v7741_v28, %v6618_v24  ;;  %v7813_v19 = vld [vmem:[%s11454_s12 + $0x458] sm:$0xf0] }
 0x1f1   :  { %6301 = vmatmul.msk.bf16.vlgmr.msra.gmra.mxu2 %vm2530_vm1, %v2365_v39  ;;  %v2734_v39 = vand.u32 %v6333_v35, %v9740_v10  ;;  %2819 = vmatpush.bf16.msra.mxu0 %v2728_v36  ;;  %v6403_v35 = vor.u32 %v7687_v26, %v6402_v25  ;;  %v6474_v36 = vld [vmem:[%s11454_s12 + $0xf0] sm:$0xf]  ;;  %v7729_v20 = vld [vmem:[%s11454_s12 + $0x1b8] sm:$0xf0]  ;;  %v6823_v25 = vor.u32 %v7792_v52, %v6822_v46  ;;  %v6966_v46 = vld [vmem:[%s11454_s12 + $0x4c8] sm:$0xf] }
 0x1f2   :  { %2833 = vmatpush.bf16.msra.mxu1 %v2731_v37  ;;  %v7705_v37 = vld [vmem:[%s11454_s12 + $0xf8] sm:$0xf0]  ;;  %v6571_v28 = vor.u32 %v7729_v20, %v6570_v16  ;;  %v7828_v52 = vld [vmem:[%s11454_s12 + $0x4d0] sm:$0xf0]  ;;  %v6786_v16 = vld [vmem:[%s11454_s12 + $0x360] sm:$0xf] }
 0x1f3   :  { %2847 = vmatpush.bf16.msra.mxu2 %v2734_v39  ;;  %v6390_v39 = vld [vmem:[%s11454_s12 + $0x48] sm:$0xf]  ;;  %v7789_v24 = vld [vmem:[%s11454_s12 + $0x398] sm:$0xf0]  ;;  %v7855_v20 = vld [vmem:[%s11454_s12 + $0x5a8] sm:$0xf0] }
 0x212   :  { %v2557_v43 = vpop.f32.mrf.mxu1 }
 0x213   :  { %v2558_v47 = vadd.f32 %v2557_v43, %v2544_v45  ;;  %v9786_v43 = vand.u32 127, %v2599_v40  ;;  %v7684_v40 = vld [vmem:[%s11454_s12 + $0x50] sm:$0xf0] }
 0x215   :  { %vm2601_vm5 = vcmp.eq.s32.totalorder %v9786_v43, 0 }
 0x216   :  { %vm2622_vm6 = vmpackc.low %vm2601_vm5, %vm2601_vm5 }
 0x21a   :  { %v2559_v55 = vpop.f32.mrf.mxu1 }
 0x21b   :  { %v2560_v59 = vadd.f32 %v2559_v55, %v2546_v56  ;;  %v6338_v55 = vld [vmem:[%s11452_s10 + $0x48] sm:$0x10]  ;;  %v2598_v56 = vld [vmem:[%s11453_s1 + $0x4] sm:$0xf] }
 0x274   :  { %v2571_v48 = vpop.f32.mrf.mxu2 }
 0x275   :  { %v2572_v49 = vadd.f32 %v2571_v48, %v2558_v47  ;;  %v2611_v47 = vunpack.c.0.s8 %v2610_v42  ;;  %v6606_v42 = vld [vmem:[%s11454_s12 + $0x1f8] sm:$0xf] }
 0x277   :  { %v2576_v54 = vmax.f32 %v2572_v49, 0.0  ;;  %v2597_v49 = vld [vmem:[%s11453_s1] sm:$0xf] }
 0x279   :  { %v2582_v57 = vmul.f32 %v7941_v50, %v2576_v54  ;;  %v7668_v54 = vld [vmem:[%s11452_s10 + $0x24] sm:$0xf] }
 0x27b   :  { %v2585_v60 = vsel %vm2584_vm2, %v2582_v57, 0.0 }
 0x27c   :  { %v2573_v44 = vpop.f32.mrf.mxu2  ;;  %2586 = vadd.xlane.f32.xlu0 %v2585_v60 }
 0x27d   :  { %v2574_v32 = vadd.f32 %v2573_v44, %v2560_v59 }
 0x27f   :  { %v2577_v62 = vmax.f32 %v2574_v32, 0.0  ;;  %v6341_v32 = vor.u32 %v7668_v54, %v6338_v55  ;;  %v6462_v54 = vld [vmem:[%s11454_s12 + $0xd8] sm:$0xf]  ;;  %v7702_v55 = vld [vmem:[%s11454_s12 + $0xe0] sm:$0xf0] }
 0x281   :  { %v2583_v63 = vmul.f32 %v7941_v50, %v2577_v62  ;;  %v6336_v50 = vld [vmem:[%s11452_s10 + $0x20] sm:$0xf] }
 0x282   :  { %v6337_v44 = vor.u32 %v7673_v51, %v6336_v50  ;;  %v6475_v50 = vor.u32 %v7705_v37, %v6474_v36  ;;  %v6391_v51 = vor.u32 %v7684_v40, %v6390_v39  ;;  %v7750_v36 = vld [vmem:[%s11454_s12 + $0x260] sm:$0xf0]  ;;  %v6546_v39 = vld [vmem:[%s11454_s12 + $0x180] sm:$0xf] }
 0x283   :  { %v2588_v0 = vsel %vm2584_vm2, %v2583_v63, 0.0 }
 0x284   :  { %2589 = vadd.xlane.f32.xlu0 %v2588_v0 }
 0x2ef   :  { %v2587_v2 = vpop.xlane.xlu0 %2586 }
 0x2f0   :  { %v2595_v3 = vadd.f32 %v7942_v1, %v2587_v2  ;;  %v2740_v2 = vand.u32 %v6341_v32, %v9740_v10 }
 0x2f2   :  { %5180 = vperm.xlu0 %7938, %v2595_v3   ;;  %v2602_v4 = vpack.c.bf16 %v2595_v3, %v2595_v3  ;;  %v6534_v3 = vld [vmem:[%s11454_s12 + $0x168] sm:$0xf] }
 0x2f4   :  { %2606 = vperm.xlu1 %7937, %v2602_v4   ;;  %v7720_v4 = vld [vmem:[%s11454_s12 + $0x170] sm:$0xf0] }
 0x2f7   :  { %v2590_v14 = vpop.xlane.xlu0 %2589 }
 0x2f8   :  { %v2596_v11 = vadd.f32 %v7942_v1, %v2590_v14  ;;  %v2737_v1 = vand.u32 %v6337_v44, %v9740_v10  ;;  %v6535_v14 = vor.u32 %v7720_v4, %v6534_v3  ;;  %v7693_v10 = vld [vmem:[%s11454_s12 + $0x98] sm:$0xf0]  ;;  %v7735_v44 = vld [vmem:[%s11454_s12 + $0x1e8] sm:$0xf0]  ;;  %v6366_v4 = vld [vmem:[%s11454_s12 + $0x18] sm:$0xf] }
 0x2f9   :  { %v6427_v12 = vor.u32 %v7693_v10, %v6426_v9  ;;  %v7699_v3 = vld [vmem:[%s11454_s12 + $0xc8] sm:$0xf0] }
 0x2fa   :  { %v2603_v5 = vpack.c.bf16 %v2596_v11, %v2596_v11 }
 0x2fc   :  { %2615 = vperm.xlu1 %7937, %v2603_v5   ;;  %v7717_v5 = vld [vmem:[%s11454_s12 + $0x158] sm:$0xf0] }
 0x304   :  { %5185 = vperm.xlu1 %7937, %v2596_v11   ;;  %v6522_v11 = vld [vmem:[%s11454_s12 + $0x150] sm:$0xf] }
 0x305   :  { %v6523_v6 = vor.u32 %v7717_v5, %v6522_v11  ;;  %v6582_v5 = vld [vmem:[%s11454_s12 + $0x1c8] sm:$0xf] }
 0x366   :  { %v2607_v45 = vpop.permute.xlu1 %2606 }
 0x367   :  { %v2612_v48 = vperm.slane %v2607_v45, %v2611_v47  ;;  %v7738_v45 = vld [vmem:[%s11454_s12 + $0x200] sm:$0xf0] }
 0x369   :  { %v2623_v59 = vsel %vm2622_vm6, %v2612_v48, %v2597_v49  ;;  %v6702_v48 = vld [vmem:[%s11454_s12 + $0x2b8] sm:$0xf]  ;;  %v7762_v49 = vld [vmem:[%s11454_s12 + $0x2c0] sm:$0xf0] }
 0x36a   :  { %v2661_v63 = vunpack.c.l.b16 %v2623_v59  ;;  %v6607_v59 = vor.u32 %v7738_v45, %v6606_v42  ;;  %v6703_v32 = vor.u32 %v7762_v49, %v6702_v48  ;;  %v7723_v42 = vld [vmem:[%s11454_s12 + $0x188] sm:$0xf0]  ;;  %v7014_v49 = vld [vmem:[%s11454_s12 + $0x528] sm:$0xf] }
 0x36b   :  { %v7807_v48 = vld [vmem:[%s11454_s12 + $0x428] sm:$0xf0] }
 0x36e   :  { %v2616_v57 = vpop.permute.xlu1 %2615 }
 0x36f   :  { %v2621_v60 = vperm.slane %v2616_v57, %v2611_v47  ;;  %v6715_v47 = vor.u32 %v7765_v31, %v6714_v30  ;;  %v7681_v57 = vld [vmem:[%s11454_s12 + $0x38] sm:$0xf0]  ;;  %v7810_v31 = vld [vmem:[%s11454_s12 + $0x440] sm:$0xf0] }
 0x371   :  { %v2624_v62 = vsel %vm2622_vm6, %v2621_v60, %v2598_v56  ;;  %v6378_v56 = vld [vmem:[%s11454_s12 + $0x30] sm:$0xf]  ;;  %v6594_v60 = vld [vmem:[%s11454_s12 + $0x1e0] sm:$0xf] }
 0x372   :  { %v2662_v0 = vunpack.c.l.b16 %v2624_v62  ;;  %v6690_v62 = vld [vmem:[%s11454_s12 + $0x2a0] sm:$0xf]  ;;  %v6595_v11 = vor.u32 %v7735_v44, %v6594_v60 }
 0x374   :  { %v9810_v7 = vpack.c.b16 %v2662_v0, %v2661_v63  ;;  %v7759_v63 = vld [vmem:[%s11454_s12 + $0x2a8] sm:$0xf0]  ;;  %v6463_v0 = vor.u32 %v7702_v55, %v6462_v54  ;;  %v7840_v54 = vld [vmem:[%s11454_s12 + $0x530] sm:$0xf0]  ;;  %v7110_v55 = vld [vmem:[%s11454_s12 + $0x5e8] sm:$0xf] }
 0x375   :  { %v6691_v53 = vor.u32 %v7759_v63, %v6690_v62  ;;  %v7015_v44 = vor.u32 %v7840_v54, %v7014_v49  ;;  %v7837_v63 = vld [vmem:[%s11454_s12 + $0x518] sm:$0xf0]  ;;  %v7795_v54 = vld [vmem:[%s11454_s12 + $0x3c8] sm:$0xf0] }
 0x376   :  { %6342 = vmatmul.msk.bf16.vlgmr.msra.gmra.mxu3 %vm2704_vm7, %v9810_v7  ;;  %6343 = vmatmul.msk.bf16.vlgmr.msrb.gmra.mxu0 %vm2704_vm7, %v9810_v7  ;;  %v7849_v49 = vld [vmem:[%s11454_s12 + $0x578] sm:$0xf0] }
 0x377   :  { %6344 = vmatmul.msk.bf16.vlgmr.msrb.gmra.mxu1 %vm2704_vm7, %v9810_v7  ;;  %6345 = vmatmul.msk.bf16.vlgmr.msrb.gmra.mxu2 %vm2704_vm7, %v9810_v7 }
 0x378   :  { %2861 = vmatpush.bf16.msra.mxu3 %v2737_v1  ;;  %2875 = vmatpush.bf16.msrb.mxu0 %v2740_v2  ;;  %v6379_v1 = vor.u32 %v7681_v57, %v6378_v56  ;;  %v6450_v2 = vld [vmem:[%s11454_s12 + $0xc0] sm:$0xf]  ;;  %v7864_v56 = vld [vmem:[%s11454_s12 + $0x5f0] sm:$0xf0] }
 0x379   :  { %4534 = vmatpush.bf16.msrb.mxu2 %v6535_v14  ;;  %4520 = vmatpush.bf16.msrb.mxu1 %v6439_v58  ;;  %v7678_v14 = vld [vmem:[%s11454_s12 + $0x20] sm:$0xf0]  ;;  %v7732_v58 = vld [vmem:[%s11454_s12 + $0x1d0] sm:$0xf0]  ;;  %v6451_v9 = vor.u32 %v7699_v3, %v6450_v2  ;;  %v7111_v62 = vor.u32 %v7864_v56, %v7110_v55  ;;  %v6930_v55 = vld [vmem:[%s11454_s12 + $0x480] sm:$0xf] }
 0x37a   :  { %v6367_v10 = vor.u32 %v7678_v14, %v6366_v4  ;;  %v6583_v13 = vor.u32 %v7732_v58, %v6582_v5  ;;  %v6990_v4 = vld [vmem:[%s11454_s12 + $0x4f8] sm:$0xf]  ;;  %v7834_v14 = vld [vmem:[%s11454_s12 + $0x500] sm:$0xf0]  ;;  %v6978_v5 = vld [vmem:[%s11454_s12 + $0x4e0] sm:$0xf] }
 0x37b   :  { %v7786_v58 = vld [vmem:[%s11454_s12 + $0x380] sm:$0xf0] }
 0x37d   :  { %4535 = vmatpush.bf16.msrb.mxu2 %v6523_v6  ;;  %4521 = vmatpush.bf16.msrb.mxu1 %v6427_v12  ;;  %v6918_v6 = vld [vmem:[%s11454_s12 + $0x468] sm:$0xf]  ;;  %v6354_v12 = vld [vmem:[%s11454_s12] sm:$0xf] }
 0x37e   :  { %v6919_v15 = vor.u32 %v7816_v8, %v6918_v6  ;;  %v6798_v8 = vld [vmem:[%s11454_s12 + $0x378] sm:$0xf] }
 0x37f   :  { %v6799_v38 = vor.u32 %v7786_v58, %v6798_v8 }
 0x381   :  { %4536 = vmatpush.bf16.msrb.mxu2 %v6511_v61  ;;  %4522 = vmatpush.bf16.msrb.mxu1 %v6415_v18  ;;  %v7675_v61 = vld [vmem:[%s11454_s12 + $0x8] sm:$0xf0]  ;;  %v6906_v18 = vld [vmem:[%s11454_s12 + $0x450] sm:$0xf] }
 0x382   :  { %v6355_v23 = vor.u32 %v7675_v61, %v6354_v12  ;;  %v6907_v26 = vor.u32 %v7813_v19, %v6906_v18  ;;  %v6870_v12 = vld [vmem:[%s11454_s12 + $0x408] sm:$0xf]  ;;  %v7804_v61 = vld [vmem:[%s11454_s12 + $0x410] sm:$0xf0]  ;;  %v7074_v18 = vld [vmem:[%s11454_s12 + $0x5a0] sm:$0xf] }
 0x385   :  { %4537 = vmatpush.bf16.msrb.mxu2 %v6499_v21  ;;  %4523 = vmatpush.bf16.msrb.mxu1 %v6403_v35  ;;  %v6666_v21 = vld [vmem:[%s11454_s12 + $0x270] sm:$0xf]  ;;  %v6654_v35 = vld [vmem:[%s11454_s12 + $0x258] sm:$0xf] }
 0x386   :  { %6346 = vmatmul.msk.bf16.vlgmr.msrb.gmra.mxu3 %vm2704_vm7, %v9810_v7  ;;  %6347 = vmatmul.msk.bf16.vlgmr.msra.gmra.mxu0 %vm2704_vm7, %v9810_v7  ;;  %v6667_v30 = vor.u32 %v7753_v22, %v6666_v21  ;;  %v6655_v45 = vor.u32 %v7750_v36, %v6654_v35  ;;  %v7075_v21 = vor.u32 %v7855_v20, %v7074_v18  ;;  %v6858_v22 = vld [vmem:[%s11454_s12 + $0x3f0] sm:$0xf]  ;;  %v6846_v35 = vld [vmem:[%s11454_s12 + $0x3d8] sm:$0xf]  ;;  %v7798_v36 = vld [vmem:[%s11454_s12 + $0x3e0] sm:$0xf0] }
 0x387   :  { %6348 = vmatmul.msk.bf16.vlgmr.msra.gmra.mxu1 %vm2704_vm7, %v9810_v7  ;;  %6349 = vmatmul.msk.bf16.vlgmr.msra.gmra.mxu2 %vm2704_vm7, %v9810_v7  ;;  %v7695_v18 = vld [vmem:[%s11454_s12 + $0xac] sm:$0xf] }
 0x388   :  { %4548 = vmatpush.bf16.msrb.mxu3 %v6631_v27  ;;  %4562 = vmatpush.bf16.msra.mxu0 %v6727_v29  ;;  %v6810_v27 = vld [vmem:[%s11454_s12 + $0x390] sm:$0xf]  ;;  %v6558_v29 = vld [vmem:[%s11454_s12 + $0x198] sm:$0xf] }
 0x389   :  { %4538 = vmatpush.bf16.msrb.mxu2 %v6487_v33  ;;  %4524 = vmatpush.bf16.msrb.mxu1 %v6391_v51  ;;  %v7726_v33 = vld [vmem:[%s11454_s12 + $0x1a0] sm:$0xf0]  ;;  %v6811_v37 = vor.u32 %v7789_v24, %v6810_v27  ;;  %v7747_v51 = vld [vmem:[%s11454_s12 + $0x248] sm:$0xf0]  ;;  %v7825_v27 = vld [vmem:[%s11454_s12 + $0x4b8] sm:$0xf0] }
 0x38c   :  { %4549 = vmatpush.bf16.msrb.mxu3 %v6619_v41  ;;  %4563 = vmatpush.bf16.msra.mxu0 %v6715_v47  ;;  %v6559_v41 = vor.u32 %v7726_v33, %v6558_v29  ;;  %v6882_v47 = vld [vmem:[%s11454_s12 + $0x420] sm:$0xf]  ;;  %v7780_v29 = vld [vmem:[%s11454_s12 + $0x350] sm:$0xf0] }
 0x38d   :  { %4539 = vmatpush.bf16.msrb.mxu2 %v6475_v50  ;;  %4525 = vmatpush.bf16.msrb.mxu1 %v6379_v1  ;;  %v6642_v50 = vld [vmem:[%s11454_s12 + $0x240] sm:$0xf]  ;;  %v6883_v57 = vor.u32 %v7807_v48, %v6882_v47  ;;  %v7861_v1 = vld [vmem:[%s11454_s12 + $0x5d8] sm:$0xf0]  ;;  %v7050_v47 = vld [vmem:[%s11454_s12 + $0x570] sm:$0xf] }
 0x38e   :  { %v6643_v60 = vor.u32 %v7747_v51, %v6642_v50  ;;  %v7051_v50 = vor.u32 %v7849_v49, %v7050_v47  ;;  %v6834_v51 = vld [vmem:[%s11454_s12 + $0x3c0] sm:$0xf]  ;;  %v7719_v47 = vld [vmem:[%s11454_s12 + $0x16c] sm:$0xf] }
 0x38f   :  { %v6835_v56 = vor.u32 %v7795_v54, %v6834_v51 }
 0x390   :  { %4550 = vmatpush.bf16.msrb.mxu3 %v6607_v59  ;;  %4564 = vmatpush.bf16.msra.mxu0 %v6703_v32  ;;  %v6547_v59 = vor.u32 %v7723_v42, %v6546_v39  ;;  %v7002_v32 = vld [vmem:[%s11454_s12 + $0x510] sm:$0xf]  ;;  %v6847_v39 = vor.u32 %v7798_v36, %v6846_v35  ;;  %v6428_v35 = vld [vmem:[%s11454_s12 + $0x9c] sm:$0xf0] }
 0x391   :  { %4540 = vmatpush.bf16.msrb.mxu2 %v6463_v0  ;;  %4526 = vmatpush.bf16.msrb.mxu1 %v6367_v10  ;;  %v7098_v0 = vld [vmem:[%s11454_s12 + $0x5d0] sm:$0xf]  ;;  %v7003_v2 = vor.u32 %v7837_v63, %v7002_v32  ;;  %v7038_v32 = vld [vmem:[%s11454_s12 + $0x558] sm:$0xf]  ;;  %v7846_v63 = vld [vmem:[%s11454_s12 + $0x560] sm:$0xf0] }
 0x392   :  { %v7099_v3 = vor.u32 %v7861_v1, %v7098_v0  ;;  %v6762_v42 = vld [vmem:[%s11454_s12 + $0x330] sm:$0xf]  ;;  %v7039_v0 = vor.u32 %v7846_v63, %v7038_v32  ;;  %v6738_v1 = vld [vmem:[%s11454_s12 + $0x300] sm:$0xf]  ;;  %v6416_v32 = vld [vmem:[%s11454_s12 + $0x84] sm:$0xf0] }
 0x394   :  { %4551 = vmatpush.bf16.msrb.mxu3 %v6595_v11  ;;  %4565 = vmatpush.bf16.msra.mxu0 %v6691_v53  ;;  %v6991_v11 = vor.u32 %v7834_v14, %v6990_v4  ;;  %v7831_v53 = vld [vmem:[%s11454_s12 + $0x4e8] sm:$0xf0]  ;;  %v7026_v4 = vld [vmem:[%s11454_s12 + $0x540] sm:$0xf] }
 0x395   :  { %4541 = vmatpush.bf16.msrb.mxu2 %v6451_v9  ;;  %4527 = vmatpush.bf16.msrb.mxu1 %v6355_v23  ;;  %v6979_v6 = vor.u32 %v7831_v53, %v6978_v5  ;;  %v7858_v9 = vld [vmem:[%s11454_s12 + $0x5c0] sm:$0xf0]  ;;  %v7801_v23 = vld [vmem:[%s11454_s12 + $0x3f8] sm:$0xf0]  ;;  %v7843_v14 = vld [vmem:[%s11454_s12 + $0x548] sm:$0xf0] }
 0x396   :  { %6350 = vmatmul.msk.bf16.vlgmr.msra.gmra.mxu3 %vm2704_vm7, %v9810_v7  ;;  %6351 = vmatmul.msk.bf16.vlgmr.msrb.gmra.mxu0 %vm2704_vm7, %v9810_v7  ;;  %v6894_v7 = vld [vmem:[%s11454_s12 + $0x438] sm:$0xf]  ;;  %v7087_v10 = vor.u32 %v7858_v9, %v7086_v34  ;;  %v10221_v5 = vld [vmem:[%s11455_s11] sm:$0xff] }
 0x397   :  { %v6895_v40 = vor.u32 %v7810_v31, %v6894_v7  ;;  %v7062_v7 = vld [vmem:[%s11454_s12 + $0x588] sm:$0xf]  ;;  %v7852_v31 = vld [vmem:[%s11454_s12 + $0x590] sm:$0xf0]  ;;  %v2640_v8 = vperm.slane %v10221_v5, 1  ;;  %v2641_v58 = vperm.slane %v10221_v5, 2 }
 0x398   :  { %4552 = vmatpush.bf16.msrb.mxu3 %v6583_v13  ;;  %4566 = vmatpush.bf16.msra.mxu0 %v6679_v17  ;;  %v6967_v13 = vor.u32 %v7828_v52, %v6966_v46  ;;  %v7783_v17 = vld [vmem:[%s11454_s12 + $0x368] sm:$0xf0]  ;;  %v7063_v33 = vor.u32 %v7852_v31, %v7062_v7  ;;  %v7302_v52 = vld [vmem:[%s11454_s12 + $0x768] sm:$0xf]  ;;  %v2644_v63 = vperm.slane %v10221_v5, 5 }
 0x399   :  { %4590 = vmatpush.bf16.msra.mxu2 %v6919_v15  ;;  %4576 = vmatpush.bf16.msra.mxu1 %v6823_v25  ;;  %v6871_v15 = vor.u32 %v7804_v61, %v6870_v12  ;;  %v6787_v19 = vor.u32 %v7783_v17, %v6786_v16  ;;  %v6859_v25 = vor.u32 %v7801_v23, %v6858_v22  ;;  %v2639_v61 = vperm.slane %v10221_v5, 0 }
 0x39a   :  { %v2642_v16 = vperm.slane %v10221_v5, 3 }
 0x39c   :  { %4553 = vmatpush.bf16.msrb.mxu3 %v6571_v28  ;;  %4567 = vmatpush.bf16.msra.mxu0 %v6667_v30  ;;  %v6774_v28 = vld [vmem:[%s11454_s12 + $0x348] sm:$0xf] }
 0x39d   :  { %4591 = vmatpush.bf16.msra.mxu2 %v6907_v26  ;;  %4577 = vmatpush.bf16.msra.mxu1 %v6811_v37  ;;  %v6954_v26 = vld [vmem:[%s11454_s12 + $0x4b0] sm:$0xf]  ;;  %v6775_v30 = vor.u32 %v7780_v29, %v6774_v28  ;;  %v6942_v37 = vld [vmem:[%s11454_s12 + $0x498] sm:$0xf]  ;;  %v7909_v29 = vld [vmem:[%s11454_s12 + $0x758] sm:$0xf0] }
 0x39e   :  { %v6955_v24 = vor.u32 %v7825_v27, %v6954_v26  ;;  %v7290_v28 = vld [vmem:[%s11454_s12 + $0x750] sm:$0xf] }
 0x3a0   :  { %4554 = vmatpush.bf16.msrb.mxu3 %v6559_v41  ;;  %4568 = vmatpush.bf16.msra.mxu0 %v6655_v45  ;;  %v7777_v45 = vld [vmem:[%s11454_s12 + $0x338] sm:$0xf0] }
 0x3a1   :  { %4592 = vmatpush.bf16.msra.mxu2 %v6895_v40  ;;  %4578 = vmatpush.bf16.msra.mxu1 %v6799_v38  ;;  %v7822_v40 = vld [vmem:[%s11454_s12 + $0x4a0] sm:$0xf0]  ;;  %v6763_v48 = vor.u32 %v7777_v45, %v6762_v42  ;;  %v7291_v45 = vor.u32 %v7909_v29, %v7290_v28 }
 0x3a2   :  { %v6943_v41 = vor.u32 %v7822_v40, %v6942_v37  ;;  %v7888_v40 = vld [vmem:[%s11454_s12 + $0x6b0] sm:$0xf0] }
 0x3a4   :  { %4555 = vmatpush.bf16.msrb.mxu3 %v6547_v59  ;;  %4569 = vmatpush.bf16.msra.mxu0 %v6643_v60  ;;  %v6750_v60 = vld [vmem:[%s11454_s12 + $0x318] sm:$0xf] }
 0x3a5   :  { %4593 = vmatpush.bf16.msra.mxu2 %v6883_v57  ;;  %4579 = vmatpush.bf16.msra.mxu1 %v6787_v19  ;;  %v7819_v57 = vld [vmem:[%s11454_s12 + $0x488] sm:$0xf0]  ;;  %v6440_v19 = vld [vmem:[%s11454_s12 + $0xb4] sm:$0xf0] }
 0x3a6   :  { %v6931_v59 = vor.u32 %v7819_v57, %v6930_v55  ;;  %v7278_v55 = vld [vmem:[%s11454_s12 + $0x738] sm:$0xf] }
 0x3a8   :  { %4604 = vmatpush.bf16.msra.mxu3 %v7015_v44  ;;  %4618 = vmatpush.bf16.msrb.mxu0 %v7111_v62  ;;  %v7774_v44 = vld [vmem:[%s11454_s12 + $0x320] sm:$0xf0] }
 0x3a9   :  { %4594 = vmatpush.bf16.msra.mxu2 %v6871_v15  ;;  %4580 = vmatpush.bf16.msra.mxu1 %v6775_v30  ;;  %v6751_v62 = vor.u32 %v7774_v44, %v6750_v60  ;;  %v7689_v44 = vld [vmem:[%s11454_s12 + $0x7c] sm:$0xf] }
 0x3ac   :  { %4605 = vmatpush.bf16.msra.mxu3 %v7003_v2  ;;  %4619 = vmatpush.bf16.msrb.mxu0 %v7099_v3  ;;  %v7771_v2 = vld [vmem:[%s11454_s12 + $0x308] sm:$0xf0] }
 0x3ad   :  { %4595 = vmatpush.bf16.msra.mxu2 %v6859_v25  ;;  %4581 = vmatpush.bf16.msra.mxu1 %v6763_v48  ;;  %v6739_v3 = vor.u32 %v7771_v2, %v6738_v1  ;;  %v6536_v48 = vld [vmem:[%s11454_s12 + $0x174] sm:$0xf0]  ;;  %v7194_v1 = vld [vmem:[%s11454_s12 + $0x690] sm:$0xf]  ;;  %v7885_v2 = vld [vmem:[%s11454_s12 + $0x698] sm:$0xf0] }
 0x3b0   :  { %4606 = vmatpush.bf16.msra.mxu3 %v6991_v11  ;;  %4620 = vmatpush.bf16.msrb.mxu0 %v7087_v10  ;;  %v7027_v11 = vor.u32 %v7843_v14, %v7026_v4  ;;  %v2645_v4 = vperm.slane %v10221_v5, 6 }
 0x3b1   :  { %4596 = vmatpush.bf16.msra.mxu2 %v6847_v39  ;;  %4582 = vmatpush.bf16.msra.mxu1 %v6751_v62  ;;  %v7206_v39 = vld [vmem:[%s11454_s12 + $0x6a8] sm:$0xf] }
 0x3b2   :  { %v7207_v60 = vor.u32 %v7888_v40, %v7206_v39 }
 0x3b4   :  { %4607 = vmatpush.bf16.msra.mxu3 %v6979_v6  ;;  %4621 = vmatpush.bf16.msrb.mxu0 %v7075_v21 }
 0x3b5   :  { %4597 = vmatpush.bf16.msra.mxu2 %v6835_v56  ;;  %4583 = vmatpush.bf16.msra.mxu1 %v6739_v3  ;;  %v7906_v56 = vld [vmem:[%s11454_s12 + $0x740] sm:$0xf0] }
 0x3b6   :  { %v7279_v14 = vor.u32 %v7906_v56, %v7278_v55 }
 0x3b8   :  { %4608 = vmatpush.bf16.msra.mxu3 %v6967_v13  ;;  %4622 = vmatpush.bf16.msrb.mxu0 %v7063_v33  ;;  %v7912_v13 = vld [vmem:[%s11454_s12 + $0x770] sm:$0xf0] }
 0x3b9   :  { %v7303_v25 = vor.u32 %v7912_v13, %v7302_v52  ;;  %v7692_v33 = vld [vmem:[%s11454_s12 + $0x94] sm:$0xf]  ;;  %v7882_v52 = vld [vmem:[%s11454_s12 + $0x680] sm:$0xf0] }
 0x3ba   :  { %v6431_v54 = vor.u32 %v7692_v33, %v6428_v35 }
 0x3bc   :  { %4609 = vmatpush.bf16.msra.mxu3 %v6955_v24  ;;  %4623 = vmatpush.bf16.msrb.mxu0 %v7051_v50  ;;  %v6443_v24 = vor.u32 %v7695_v18, %v6440_v19  ;;  %v7713_v18 = vld [vmem:[%s11454_s12 + $0x13c] sm:$0xf]  ;;  %v6512_v19 = vld [vmem:[%s11454_s12 + $0x144] sm:$0xf0] }
 0x3c0   :  { %4610 = vmatpush.bf16.msra.mxu3 %v6943_v41  ;;  %4624 = vmatpush.bf16.msrb.mxu0 %v7039_v0  ;;  %v6539_v0 = vor.u32 %v7719_v47, %v6536_v48 }
 0x3c4   :  { %4611 = vmatpush.bf16.msra.mxu3 %v6931_v59  ;;  %4625 = vmatpush.bf16.msrb.mxu0 %v7027_v11  ;;  %v7716_v11 = vld [vmem:[%s11454_s12 + $0x154] sm:$0xf] }
 0x3f3   :  { %v2765_v53 = vpop.f32.mrf.mxu0 }
 0x3f4   :  { %v2779_v6 = vpop.f32.mrf.mxu1  ;;  %v2766_v38 = vadd.f32 %v2765_v53, %v2640_v8  ;;  %v6524_v53 = vld [vmem:[%s11454_s12 + $0x15c] sm:$0xf0] }
 0x3f5   :  { %v2780_v10 = vadd.f32 %v2779_v6, %v2641_v58  ;;  %v6419_v6 = vor.u32 %v7689_v44, %v6416_v32 }
 0x3f6   :  { %v2883_v20 = vmax.f32 %v2766_v38, 0.0  ;;  %v7195_v38 = vor.u32 %v7885_v2, %v7194_v1  ;;  %v7876_v1 = vld [vmem:[%s11454_s12 + $0x650] sm:$0xf0] }
 0x3f7   :  { %v2884_v22 = vmax.f32 %v2780_v10, 0.0  ;;  %v6404_v10 = vld [vmem:[%s11454_s12 + $0x6c] sm:$0xf0] }
 0x3f9   :  { %v2751_v34 = vpop.f32.mrf.mxu3 }
 0x3fa   :  { %v2793_v9 = vpop.f32.mrf.mxu2  ;;  %v2752_v26 = vadd.f32 %v2751_v34, %v2639_v61 }
 0x3fb   :  { %v2767_v12 = vpop.f32.mrf.mxu0  ;;  %v2794_v30 = vadd.f32 %v2793_v9, %v2642_v16  ;;  %v7686_v9 = vld [vmem:[%s11454_s12 + $0x64] sm:$0xf] }
 0x3fc   :  { %v2768_v15 = vadd.f32 %v2767_v12, %v2640_v8  ;;  %v2781_v46 = vpop.f32.mrf.mxu1  ;;  %v2882_v49 = vmax.f32 %v2752_v26, 0.0  ;;  %v7266_v8 = vld [vmem:[%s11454_s12 + $0x720] sm:$0xf]  ;;  %v7900_v26 = vld [vmem:[%s11454_s12 + $0x710] sm:$0xf0] }
 0x3fd   :  { %v2782_v17 = vadd.f32 %v2781_v46, %v2641_v58  ;;  %v2885_v57 = vmax.f32 %v2794_v30, 0.0  ;;  %v7903_v58 = vld [vmem:[%s11454_s12 + $0x728] sm:$0xf0]  ;;  %v7182_v46 = vld [vmem:[%s11454_s12 + $0x678] sm:$0xf] }
 0x3fe   :  { %v2893_v21 = vmax.f32 %v2768_v15, 0.0  ;;  %v6527_v15 = vor.u32 %v7716_v11, %v6524_v53  ;;  %v7183_v29 = vor.u32 %v7882_v52, %v7182_v46  ;;  %v7683_v30 = vld [vmem:[%s11454_s12 + $0x4c] sm:$0xf]  ;;  %v6368_v46 = vld [vmem:[%s11454_s12 + $0x24] sm:$0xf0] }
 0x3ff   :  { %v2894_v23 = vmax.f32 %v2782_v17, 0.0  ;;  %v7267_v17 = vor.u32 %v7903_v58, %v7266_v8  ;;  %v7707_v53 = vld [vmem:[%s11454_s12 + $0x10c] sm:$0xf] }
 0x400   :  { %v10239_v27 = vpack.c.bf16 %v2893_v21, %v2883_v20  ;;  %v2643_v20 = vperm.slane %v10221_v5, 4 }
 0x401   :  { %v10247_v7 = vpack.c.bf16 %v2894_v23, %v2884_v22  ;;  %v2753_v31 = vpop.f32.mrf.mxu3  ;;  %v6407_v23 = vor.u32 %v7686_v9, %v6404_v10  ;;  %v7894_v9 = vld [vmem:[%s11454_s12 + $0x6e0] sm:$0xf0] }
 0x402   :  { %v2754_v36 = vadd.f32 %v2753_v31, %v2639_v61  ;;  %v2795_v37 = vpop.f32.mrf.mxu2  ;;  %4542 = vmatmul.bf16.vlgmr.msrb.gmra.mxu2 %v10239_v27  ;;  %v6392_v31 = vld [vmem:[%s11454_s12 + $0x54] sm:$0xf0] }
 0x403   :  { %v2796_v41 = vadd.f32 %v2795_v37, %v2642_v16  ;;  %4556 = vmatmul.bf16.vlgmr.msrb.gmra.mxu3 %v10247_v7  ;;  %4646 = vmatpush.bf16.msrb.mxu2 %v7303_v25  ;;  %v2821_v42 = vpop.f32.mrf.mxu0  ;;  %v7254_v25 = vld [vmem:[%s11454_s12 + $0x708] sm:$0xf]  ;;  %v7170_v37 = vld [vmem:[%s11454_s12 + $0x660] sm:$0xf] }
 0x404   :  { %v2892_v50 = vmax.f32 %v2754_v36, 0.0  ;;  %4660 = vmatpush.bf16.msrb.mxu3 %v6443_v24  ;;  %v2835_v51 = vpop.f32.mrf.mxu1  ;;  %v2822_v12 = vadd.f32 %v2821_v42, %v2644_v63  ;;  %v2646_v24 = vperm.slane %v10221_v5, 7  ;;  %v6515_v36 = vor.u32 %v7713_v18, %v6512_v19  ;;  %v7879_v5 = vld [vmem:[%s11454_s12 + $0x668] sm:$0xf0]  ;;  %v7710_v42 = vld [vmem:[%s11454_s12 + $0x124] sm:$0xf] }
 0x405   :  { %v2895_v59 = vmax.f32 %v2796_v41, 0.0  ;;  %v2836_v13 = vadd.f32 %v2835_v51, %v2645_v4  ;;  %v7255_v41 = vor.u32 %v7900_v26, %v7254_v25  ;;  %v7897_v51 = vld [vmem:[%s11454_s12 + $0x6f8] sm:$0xf0]  ;;  %v7891_v26 = vld [vmem:[%s11454_s12 + $0x6c8] sm:$0xf0] }
 0x406   :  { %v10281_v62 = vpack.c.bf16 %v2892_v50, %v2882_v49  ;;  %v2887_v33 = vmax.f32 %v2822_v12, 0.0  ;;  %v6395_v49 = vor.u32 %v7683_v30, %v6392_v31  ;;  %v7242_v50 = vld [vmem:[%s11454_s12 + $0x6f0] sm:$0xf]  ;;  %v7873_v18 = vld [vmem:[%s11454_s12 + $0x638] sm:$0xf0] }
 0x407   :  { %v10290_v3 = vpack.c.bf16 %v2895_v59, %v2885_v57  ;;  %4647 = vmatpush.bf16.msrb.mxu2 %v7291_v45  ;;  %v2888_v39 = vmax.f32 %v2836_v13, 0.0  ;;  %v6500_v45 = vld [vmem:[%s11454_s12 + $0x12c] sm:$0xf0]  ;;  %v7171_v57 = vor.u32 %v7879_v5, %v7170_v37  ;;  %v7680_v59 = vld [vmem:[%s11454_s12 + $0x34] sm:$0xf]  ;;  %v7243_v11 = vor.u32 %v7897_v51, %v7242_v50 }
 0x408   :  { %4661 = vmatpush.bf16.msrb.mxu3 %v6431_v54  ;;  %4528 = vmatmul.bf16.vlgmr.msrb.gmra.mxu1 %v10281_v62  ;;  %v7767_v31 = vld [vmem:[%s11454_s12 + $0x2ec] sm:$0xf]  ;;  %v6824_v5 = vld [vmem:[%s11454_s12 + $0x3b4] sm:$0xf0] }
 0x409   :  { %4570 = vmatmul.bf16.vlgmr.msra.gmra.mxu0 %v10290_v3  ;;  %4632 = vmatpush.bf16.msrb.mxu1 %v7207_v60  ;;  %v2807_v34 = vpop.f32.mrf.mxu3  ;;  %v6380_v60 = vld [vmem:[%s11454_s12 + $0x3c] sm:$0xf0] }
 0x40a   :  { %4674 = vmatpush.bf16.msra.mxu0 %v6539_v0  ;;  %v2849_v61 = vpop.f32.mrf.mxu2  ;;  %v2808_v47 = vadd.f32 %v2807_v34, %v2643_v20  ;;  %v7158_v0 = vld [vmem:[%s11454_s12 + $0x648] sm:$0xf]  ;;  %v6383_v34 = vor.u32 %v7680_v59, %v6380_v60 }
 0x40b   :  { %4648 = vmatpush.bf16.msrb.mxu2 %v7279_v14  ;;  %v2823_v16 = vpop.f32.mrf.mxu0  ;;  %v2850_v54 = vadd.f32 %v2849_v61, %v2646_v24  ;;  %v7159_v61 = vor.u32 %v7876_v1, %v7158_v0 }
 0x40c   :  { %4662 = vmatpush.bf16.msrb.mxu3 %v6419_v6  ;;  %v2824_v21 = vadd.f32 %v2823_v16, %v2644_v63  ;;  %v2837_v22 = vpop.f32.mrf.mxu1  ;;  %v6503_v63 = vor.u32 %v7710_v42, %v6500_v45  ;;  %v6488_v6 = vld [vmem:[%s11454_s12 + $0x114] sm:$0xf0]  ;;  %v2886_v8 = vmax.f32 %v2808_v47, 0.0  ;;  %v7701_v45 = vld [vmem:[%s11454_s12 + $0xdc] sm:$0xf] }
 0x40d   :  { %v2838_v28 = vadd.f32 %v2837_v22, %v2645_v4  ;;  %4633 = vmatpush.bf16.msrb.mxu1 %v7195_v38  ;;  %v10378_v4 = vld [vmem:[%s11455_s11 + $0x8] sm:$0x3]  ;;  %v7230_v38 = vld [vmem:[%s11454_s12 + $0x6d8] sm:$0xf]  ;;  %v2889_v10 = vmax.f32 %v2850_v54, 0.0  ;;  %v6491_v16 = vor.u32 %v7707_v53, %v6488_v6 }
 0x40e   :  { %v2897_v35 = vmax.f32 %v2824_v21, 0.0  ;;  %4675 = vmatpush.bf16.msra.mxu0 %v6527_v15  ;;  %v7677_v15 = vld [vmem:[%s11454_s12 + $0x1c] sm:$0xf]  ;;  %v2648_v13 = vperm.slane %v10378_v4, 1  ;;  %v7704_v21 = vld [vmem:[%s11454_s12 + $0xf4] sm:$0xf] }
 0x40f   :  { %v2898_v40 = vmax.f32 %v2838_v28, 0.0  ;;  %4649 = vmatpush.bf16.msrb.mxu2 %v7267_v17  ;;  %v7146_v17 = vld [vmem:[%s11454_s12 + $0x630] sm:$0xf]  ;;  %v6476_v22 = vld [vmem:[%s11454_s12 + $0xfc] sm:$0xf0]  ;;  %v6371_v25 = vor.u32 %v7677_v15, %v6368_v46 }
 0x410   :  { %v10351_v48 = vpack.c.bf16 %v2897_v35, %v2887_v33  ;;  %4663 = vmatpush.bf16.msrb.mxu3 %v6407_v23  ;;  %v7218_v23 = vld [vmem:[%s11454_s12 + $0x6c0] sm:$0xf]  ;;  %v6356_v28 = vld [vmem:[%s11454_s12 + $0xc] sm:$0xf0]  ;;  %v7147_v30 = vor.u32 %v7873_v18, %v7146_v17  ;;  %v6728_v33 = vld [vmem:[%s11454_s12 + $0x2f4] sm:$0xf0]  ;;  %v6479_v37 = vor.u32 %v7704_v21, %v6476_v22 }
 0x411   :  { %v10359_v55 = vpack.c.bf16 %v2898_v40, %v2888_v39  ;;  %4634 = vmatpush.bf16.msrb.mxu1 %v7183_v29  ;;  %v2809_v56 = vpop.f32.mrf.mxu3  ;;  %v7791_v35 = vld [vmem:[%s11454_s12 + $0x3ac] sm:$0xf]  ;;  %v7134_v39 = vld [vmem:[%s11454_s12 + $0x618] sm:$0xf]  ;;  %v7870_v40 = vld [vmem:[%s11454_s12 + $0x620] sm:$0xf0]  ;;  %v7219_v42 = vor.u32 %v7891_v26, %v7218_v23  ;;  %v6731_v54 = vor.u32 %v7767_v31, %v6728_v33 }
 0x412   :  { %4676 = vmatpush.bf16.msra.mxu0 %v6515_v36  ;;  %v2810_v44 = vadd.f32 %v2809_v56, %v2643_v20  ;;  %v2851_v32 = vpop.f32.mrf.mxu2  ;;  %4598 = vmatmul.bf16.vlgmr.msra.gmra.mxu2 %v10351_v48  ;;  %v7231_v20 = vor.u32 %v7894_v9, %v7230_v38  ;;  %v6464_v47 = vld [vmem:[%s11454_s12 + $0xe4] sm:$0xf0]  ;;  %v7764_v56 = vld [vmem:[%s11454_s12 + $0x2d4] sm:$0xf]  ;;  %v6827_v59 = vor.u32 %v7791_v35, %v6824_v5  ;;  %v7743_v53 = vld [vmem:[%s11454_s12 + $0x22c] sm:$0xf] }
 0x413   :  { %v2852_v2 = vadd.f32 %v2851_v32, %v2646_v24  ;;  %4612 = vmatmul.bf16.vlgmr.msra.gmra.mxu3 %v10359_v55  ;;  %4650 = vmatpush.bf16.msrb.mxu2 %v7255_v41  ;;  %v2877_v14 = vpop.f32.mrf.mxu0  ;;  %v7674_v24 = vld [vmem:[%s11454_s12 + $0x4] sm:$0xf]  ;;  %v7135_v60 = vor.u32 %v7870_v40, %v7134_v39  ;;  %v6812_v32 = vld [vmem:[%s11454_s12 + $0x39c] sm:$0xf0]  ;;  %v6632_v6 = vld [vmem:[%s11454_s12 + $0x234] sm:$0xf0] }
 0x414   :  { %v2896_v58 = vmax.f32 %v2810_v44, 0.0  ;;  %4664 = vmatpush.bf16.msrb.mxu3 %v6395_v49  ;;  %v2878_v36 = vadd.f32 %v2877_v14, %v2648_v13  ;;  %v2647_v49 = vperm.slane %v10378_v4, 0  ;;  %v6359_v51 = vor.u32 %v7674_v24, %v6356_v28  ;;  %v7788_v44 = vld [vmem:[%s11454_s12 + $0x394] sm:$0xf]  ;;  %v7867_v4 = vld [vmem:[%s11454_s12 + $0x608] sm:$0xf0] }
 0x415   :  { %v2899_v12 = vmax.f32 %v2852_v2, 0.0  ;;  %4635 = vmatpush.bf16.msrb.mxu1 %v7171_v57  ;;  %v6716_v57 = vld [vmem:[%s11454_s12 + $0x2dc] sm:$0xf0]  ;;  %v6467_v2 = vor.u32 %v7701_v45, %v6464_v47  ;;  %v7698_v14 = vld [vmem:[%s11454_s12 + $0xc4] sm:$0xf]  ;;  %v6635_v17 = vor.u32 %v7743_v53, %v6632_v6 }
 0x416   :  { %v10398_v52 = vpack.c.bf16 %v2896_v58, %v2886_v8  ;;  %4677 = vmatpush.bf16.msra.mxu0 %v6503_v63  ;;  %v7122_v63 = vld [vmem:[%s11454_s12 + $0x600] sm:$0xf]  ;;  %v2891_v0 = vmax.f32 %v2878_v36, 0.0  ;;  %v7815_v38 = vld [vmem:[%s11454_s12 + $0x46c] sm:$0xf] }
 0x417   :  { %v10407_v19 = vpack.c.bf16 %v2899_v12, %v2889_v10  ;;  %4651 = vmatpush.bf16.msrb.mxu2 %v7243_v11  ;;  %v6452_v11 = vld [vmem:[%s11454_s12 + $0xcc] sm:$0xf0]  ;;  %v6920_v9 = vld [vmem:[%s11454_s12 + $0x474] sm:$0xf0]  ;;  %v6815_v12 = vor.u32 %v7788_v44, %v6812_v32  ;;  %v7761_v15 = vld [vmem:[%s11454_s12 + $0x2bc] sm:$0xf] }
 0x418   :  { %4665 = vmatpush.bf16.msrb.mxu3 %v6383_v34  ;;  %4584 = vmatmul.bf16.vlgmr.msra.gmra.mxu1 %v10398_v52  ;;  %v6719_v34 = vor.u32 %v7764_v56, %v6716_v57  ;;  %v6704_v46 = vld [vmem:[%s11454_s12 + $0x2c4] sm:$0xf0]  ;;  %v7785_v18 = vld [vmem:[%s11454_s12 + $0x37c] sm:$0xf]  ;;  %v6923_v21 = vor.u32 %v7815_v38, %v6920_v9  ;;  %v7740_v22 = vld [vmem:[%s11454_s12 + $0x214] sm:$0xf] }
 0x419   :  { %4626 = vmatmul.bf16.vlgmr.msrb.gmra.mxu0 %v10407_v19  ;;  %4636 = vmatpush.bf16.msrb.mxu1 %v7159_v61  ;;  %v2863_v29 = vpop.f32.mrf.mxu3  ;;  %v7123_v61 = vor.u32 %v7867_v4, %v7122_v63  ;;  %v6620_v23 = vld [vmem:[%s11454_s12 + $0x21c] sm:$0xf0]  ;;  %v6707_v24 = vor.u32 %v7761_v15, %v6704_v46  ;;  %v7812_v28 = vld [vmem:[%s11454_s12 + $0x454] sm:$0xf]  ;;  %v7758_v31 = vld [vmem:[%s11454_s12 + $0x2a4] sm:$0xf] }
 0x41a   :  { %4678 = vmatpush.bf16.msra.mxu0 %v6491_v16  ;;  %v2864_v8 = vadd.f32 %v2863_v29, %v2647_v49  ;;  %v6455_v16 = vor.u32 %v7698_v14, %v6452_v11  ;;  %v6908_v29 = vld [vmem:[%s11454_s12 + $0x45c] sm:$0xf0]  ;;  %v6692_v33 = vld [vmem:[%s11454_s12 + $0x2ac] sm:$0xf0]  ;;  %v6623_v36 = vor.u32 %v7740_v22, %v6620_v23  ;;  %v7737_v40 = vld [vmem:[%s11454_s12 + $0x1fc] sm:$0xf] }
 0x41b   :  { %4652 = vmatpush.bf16.msrb.mxu2 %v7231_v20  ;;  %v2879_v41 = vpop.f32.mrf.mxu0  ;;  %v6800_v20 = vld [vmem:[%s11454_s12 + $0x384] sm:$0xf0]  ;;  %v6788_v5 = vld [vmem:[%s11454_s12 + $0x36c] sm:$0xf0]  ;;  %v6911_v39 = vor.u32 %v7812_v28, %v6908_v29  ;;  %v7809_v45 = vld [vmem:[%s11454_s12 + $0x43c] sm:$0xf] }
 0x41c   :  { %4666 = vmatpush.bf16.msrb.mxu3 %v6371_v25  ;;  %v2880_v50 = vadd.f32 %v2879_v41, %v2648_v13  ;;  %v2890_v25 = vmax.f32 %v2864_v8, 0.0  ;;  %v6608_v41 = vld [vmem:[%s11454_s12 + $0x204] sm:$0xf0]  ;;  %v7779_v56 = vld [vmem:[%s11454_s12 + $0x34c] sm:$0xf] }
 0x41d   :  { %4637 = vmatpush.bf16.msrb.mxu1 %v7147_v30  ;;  %v6803_v30 = vor.u32 %v7785_v18, %v6800_v20  ;;  %v6896_v47 = vld [vmem:[%s11454_s12 + $0x444] sm:$0xf0]  ;;  %v6776_v57 = vld [vmem:[%s11454_s12 + $0x354] sm:$0xf0]  ;;  %v6596_v44 = vld [vmem:[%s11454_s12 + $0x1ec] sm:$0xf0] }
 0x41e   :  { %v2901_v1 = vmax.f32 %v2880_v50, 0.0  ;;  %4679 = vmatpush.bf16.msra.mxu0 %v6479_v37  ;;  %v7782_v37 = vld [vmem:[%s11454_s12 + $0x364] sm:$0xf]  ;;  %v7755_v50 = vld [vmem:[%s11454_s12 + $0x28c] sm:$0xf] }
 0x41f   :  { %4653 = vmatpush.bf16.msrb.mxu2 %v7219_v42  ;;  %v6695_v42 = vor.u32 %v7758_v31, %v6692_v33  ;;  %v7806_v63 = vld [vmem:[%s11454_s12 + $0x424] sm:$0xf]  ;;  %v6668_v4 = vld [vmem:[%s11454_s12 + $0x27c] sm:$0xf0]  ;;  %v7776_v11 = vld [vmem:[%s11454_s12 + $0x334] sm:$0xf] }
 0x420   :  { %v10484_v58 = vpack.c.bf16 %v2901_v1, %v2891_v0  ;;  %4667 = vmatpush.bf16.msrb.mxu3 %v6359_v51  ;;  %v6680_v51 = vld [vmem:[%s11454_s12 + $0x294] sm:$0xf0]  ;;  %v6884_v0 = vld [vmem:[%s11454_s12 + $0x42c] sm:$0xf0]  ;;  %v6779_v1 = vor.u32 %v7779_v56, %v6776_v57  ;;  %v6764_v53 = vld [vmem:[%s11454_s12 + $0x33c] sm:$0xf0] }
 0x421   :  { %4638 = vmatpush.bf16.msrb.mxu1 %v7135_v60  ;;  %v2865_v10 = vpop.f32.mrf.mxu3  ;;  %v7734_v60 = vld [vmem:[%s11454_s12 + $0x1e4] sm:$0xf]  ;;  %v6683_v32 = vor.u32 %v7755_v50, %v6680_v51  ;;  %v6887_v6 = vor.u32 %v7806_v63, %v6884_v0  ;;  %v7731_v8 = vld [vmem:[%s11454_s12 + $0x1cc] sm:$0xf]  ;;  %v6656_v15 = vld [vmem:[%s11454_s12 + $0x264] sm:$0xf0] }
 0x422   :  { %4680 = vmatpush.bf16.msra.mxu0 %v6467_v2  ;;  %v2866_v13 = vadd.f32 %v2865_v10, %v2647_v49  ;;  %4654 = vmatmul.bf16.vlgmr.msrb.gmra.mxu2 %v10484_v58  ;;  %v6791_v49 = vor.u32 %v7782_v37, %v6788_v5  ;;  %v7752_v2 = vld [vmem:[%s11454_s12 + $0x274] sm:$0xf]  ;;  %v6599_v14 = vor.u32 %v7734_v60, %v6596_v44  ;;  %v7803_v9 = vld [vmem:[%s11454_s12 + $0x40c] sm:$0xf]  ;;  %v6872_v10 = vld [vmem:[%s11454_s12 + $0x414] sm:$0xf0] }
 0x423   :  { %4702 = vmatpush.bf16.msra.mxu2 %v6731_v54  ;;  %4668 = vmatmul.bf16.vlgmr.msrb.gmra.mxu3 %v10281_v62  ;;  %v6611_v54 = vor.u32 %v7737_v40, %v6608_v41  ;;  %v6671_v38 = vor.u32 %v7752_v2, %v6668_v4  ;;  %v7728_v18 = vld [vmem:[%s11454_s12 + $0x1b4] sm:$0xf]  ;;  %v6572_v20 = vld [vmem:[%s11454_s12 + $0x1bc] sm:$0xf0]  ;;  %v7770_v28 = vld [vmem:[%s11454_s12 + $0x304] sm:$0xf] }
 0x424   :  { %4716 = vmatpush.bf16.msra.mxu3 %v6827_v59  ;;  %v2900_v26 = vmax.f32 %v2866_v13, 0.0  ;;  %v6899_v59 = vor.u32 %v7809_v45, %v6896_v47  ;;  %v7773_v13 = vld [vmem:[%s11454_s12 + $0x31c] sm:$0xf]  ;;  %v7800_v22 = vld [vmem:[%s11454_s12 + $0x3f4] sm:$0xf] }
 0x425   :  { %4639 = vmatpush.bf16.msrb.mxu1 %v7123_v61  ;;  %v7749_v61 = vld [vmem:[%s11454_s12 + $0x25c] sm:$0xf]  ;;  %v6860_v23 = vld [vmem:[%s11454_s12 + $0x3fc] sm:$0xf0]  ;;  %v6740_v29 = vld [vmem:[%s11454_s12 + $0x30c] sm:$0xf0] }
 0x426   :  { %v10524_v35 = vpack.c.bf16 %v2900_v26, %v2890_v25  ;;  %4681 = vmatpush.bf16.msra.mxu0 %v6455_v16  ;;  %v6752_v16 = vld [vmem:[%s11454_s12 + $0x324] sm:$0xf0]  ;;  %v7746_v25 = vld [vmem:[%s11454_s12 + $0x244] sm:$0xf]  ;;  %v7863_v31 = vld [vmem:[%s11454_s12 + $0x5ec] sm:$0xf]  ;;  %v6863_v37 = vor.u32 %v7800_v22, %v6860_v23  ;;  %v6743_v47 = vor.u32 %v7770_v28, %v6740_v29 }
 0x427   :  { %4703 = vmatpush.bf16.msra.mxu2 %v6719_v34  ;;  %v6584_v34 = vld [vmem:[%s11454_s12 + $0x1d4] sm:$0xf0]  ;;  %v6755_v26 = vor.u32 %v7773_v13, %v6752_v16  ;;  %v6560_v40 = vld [vmem:[%s11454_s12 + $0x1a4] sm:$0xf0]  ;;  %v7860_v50 = vld [vmem:[%s11454_s12 + $0x5d4] sm:$0xf] }
 0x428   :  { %4717 = vmatpush.bf16.msra.mxu3 %v6815_v12  ;;  %4640 = vmatmul.bf16.vlgmr.msrb.gmra.mxu1 %v10524_v35  ;;  %v6767_v12 = vor.u32 %v7776_v11, %v6764_v53  ;;  %v6587_v46 = vor.u32 %v7731_v8, %v6584_v34  ;;  %v7112_v33 = vld [vmem:[%s11454_s12 + $0x5f4] sm:$0xf0]  ;;  %v6848_v45 = vld [vmem:[%s11454_s12 + $0x3e4] sm:$0xf0]  ;;  %v7100_v56 = vld [vmem:[%s11454_s12 + $0x5dc] sm:$0xf0] }
 0x429   :  { %4688 = vmatpush.bf16.msra.mxu1 %v6635_v17  ;;  %4682 = vmatmul.bf16.vlgmr.msra.gmra.mxu0 %v10239_v27  ;;  %v6875_v17 = vor.u32 %v7803_v9, %v6872_v10  ;;  %v7208_v5 = vld [vmem:[%s11454_s12 + $0x6b4] sm:$0xf0]  ;;  %v7884_v57 = vld [vmem:[%s11454_s12 + $0x694] sm:$0xf]  ;;  %v7722_v44 = vld [vmem:[%s11454_s12 + $0x184] sm:$0xf]  ;;  %v7103_v4 = vor.u32 %v7860_v50, %v7100_v56 }
 0x42a   :  { %4730 = vmatpush.bf16.msrb.mxu0 %v6923_v21  ;;  %v6659_v21 = vor.u32 %v7749_v61, %v6656_v15  ;;  %v7794_v63 = vld [vmem:[%s11454_s12 + $0x3c4] sm:$0xf]  ;;  %v6836_v0 = vld [vmem:[%s11454_s12 + $0x3cc] sm:$0xf0]  ;;  %v7016_v2 = vld [vmem:[%s11454_s12 + $0x534] sm:$0xf0] }
 0x42b   :  { %4704 = vmatpush.bf16.msra.mxu2 %v6707_v24  ;;  %v6644_v24 = vld [vmem:[%s11454_s12 + $0x24c] sm:$0xf0]  ;;  %v7304_v11 = vld [vmem:[%s11454_s12 + $0x774] sm:$0xf0]  ;;  %v7857_v8 = vld [vmem:[%s11454_s12 + $0x5bc] sm:$0xf] }
 0x42c   :  { %4718 = vmatpush.bf16.msra.mxu3 %v6803_v30  ;;  %v6575_v30 = vor.u32 %v7728_v18, %v6572_v20  ;;  %v6647_v41 = vor.u32 %v7746_v25, %v6644_v24  ;;  %v7088_v34 = vld [vmem:[%s11454_s12 + $0x5c4] sm:$0xf0]  ;;  %v7881_v10 = vld [vmem:[%s11454_s12 + $0x67c] sm:$0xf]  ;;  %v7836_v15 = vld [vmem:[%s11454_s12 + $0x514] sm:$0xf] }
 0x42d   :  { %4689 = vmatpush.bf16.msra.mxu1 %v6623_v36  ;;  %v7887_v36 = vld [vmem:[%s11454_s12 + $0x6ac] sm:$0xf]  ;;  %v7091_v13 = vor.u32 %v7857_v8, %v7088_v34  ;;  %v7908_v16 = vld [vmem:[%s11454_s12 + $0x754] sm:$0xf]  ;;  %v7854_v20 = vld [vmem:[%s11454_s12 + $0x5a4] sm:$0xf] }
 0x42e   :  { %4731 = vmatpush.bf16.msrb.mxu0 %v6911_v39  ;;  %v7725_v39 = vld [vmem:[%s11454_s12 + $0x19c] sm:$0xf]  ;;  %v7211_v51 = vor.u32 %v7887_v36, %v7208_v5  ;;  %v7878_v23 = vld [vmem:[%s11454_s12 + $0x664] sm:$0xf]  ;;  %v7172_v25 = vld [vmem:[%s11454_s12 + $0x66c] sm:$0xf0] }
 0x42f   :  { %4705 = vmatpush.bf16.msra.mxu2 %v6695_v42  ;;  %v7797_v42 = vld [vmem:[%s11454_s12 + $0x3dc] sm:$0xf]  ;;  %v6992_v28 = vld [vmem:[%s11454_s12 + $0x504] sm:$0xf0]  ;;  %v7851_v36 = vld [vmem:[%s11454_s12 + $0x58c] sm:$0xf] }
 0x430   :  { %4719 = vmatpush.bf16.msra.mxu3 %v6791_v49  ;;  %v7115_v49 = vor.u32 %v7863_v31, %v7112_v33  ;;  %v6851_v60 = vor.u32 %v7797_v42, %v6848_v45  ;;  %v7833_v24 = vld [vmem:[%s11454_s12 + $0x4fc] sm:$0xf]  ;;  %v7280_v31 = vld [vmem:[%s11454_s12 + $0x744] sm:$0xf0]  ;;  %v7175_v33 = vor.u32 %v7878_v23, %v7172_v25  ;;  %v7830_v42 = vld [vmem:[%s11454_s12 + $0x4e4] sm:$0xf] }
 0x431   :  { %4690 = vmatpush.bf16.msra.mxu1 %v6611_v54  ;;  %v6563_v54 = vor.u32 %v7725_v39, %v6560_v40  ;;  %v6995_v5 = vor.u32 %v7833_v24, %v6992_v28  ;;  %v7875_v39 = vld [vmem:[%s11454_s12 + $0x64c] sm:$0xf]  ;;  %v7160_v40 = vld [vmem:[%s11454_s12 + $0x654] sm:$0xf0]  ;;  %v6980_v45 = vld [vmem:[%s11454_s12 + $0x4ec] sm:$0xf0] }
 0x432   :  { %4732 = vmatpush.bf16.msrb.mxu0 %v6899_v59  ;;  %v7196_v59 = vld [vmem:[%s11454_s12 + $0x69c] sm:$0xf0]  ;;  %v7268_v50 = vld [vmem:[%s11454_s12 + $0x72c] sm:$0xf0]  ;;  %v7136_v8 = vld [vmem:[%s11454_s12 + $0x624] sm:$0xf0] }
 0x433   :  { %4706 = vmatpush.bf16.msra.mxu2 %v6683_v32  ;;  %v6548_v32 = vld [vmem:[%s11454_s12 + $0x18c] sm:$0xf0]  ;;  %v7199_v53 = vor.u32 %v7884_v57, %v7196_v59  ;;  %v7052_v56 = vld [vmem:[%s11454_s12 + $0x57c] sm:$0xf0]  ;;  %v6983_v57 = vor.u32 %v7830_v42, %v6980_v45  ;;  %v7872_v59 = vld [vmem:[%s11454_s12 + $0x634] sm:$0xf] }
 0x434   :  { %4720 = vmatpush.bf16.msra.mxu3 %v6779_v1  ;;  %v7839_v1 = vld [vmem:[%s11454_s12 + $0x52c] sm:$0xf]  ;;  %v7745_v25 = vld [vmem:[%s11454_s12 + $0x238] sm:$0xf0]  ;;  %v6944_v24 = vld [vmem:[%s11454_s12 + $0x4a4] sm:$0xf0] }
 0x435   :  { %4691 = vmatpush.bf16.msra.mxu1 %v6599_v14  ;;  %v7911_v14 = vld [vmem:[%s11454_s12 + $0x76c] sm:$0xf]  ;;  %v7019_v9 = vor.u32 %v7839_v1, %v7016_v2  ;;  %v7256_v2 = vld [vmem:[%s11454_s12 + $0x714] sm:$0xf0]  ;;  %v7818_v45 = vld [vmem:[%s11454_s12 + $0x484] sm:$0xf] }
 0x436   :  { %4733 = vmatpush.bf16.msrb.mxu0 %v6887_v6  ;;  %v6551_v6 = vor.u32 %v7722_v44, %v6548_v32  ;;  %v7307_v61 = vor.u32 %v7911_v14, %v7304_v11  ;;  %v7827_v32 = vld [vmem:[%s11454_s12 + $0x4cc] sm:$0xf]  ;;  %v7845_v14 = vld [vmem:[%s11454_s12 + $0x55c] sm:$0xf]  ;;  %v7040_v11 = vld [vmem:[%s11454_s12 + $0x564] sm:$0xf0] }
 0x437   :  { %4707 = vmatpush.bf16.msra.mxu2 %v6671_v38  ;;  %v6839_v38 = vor.u32 %v7794_v63, %v6836_v0  ;;  %v6968_v63 = vld [vmem:[%s11454_s12 + $0x4d4] sm:$0xf0]  ;;  %v7899_v1 = vld [vmem:[%s11454_s12 + $0x70c] sm:$0xf] }
 0x438   :  { %4721 = vmatpush.bf16.msra.mxu3 %v6767_v12  ;;  %v7184_v12 = vld [vmem:[%s11454_s12 + $0x684] sm:$0xf0]  ;;  %v7259_v34 = vor.u32 %v7899_v1, %v7256_v2  ;;  %v6614_v2 = vld [vmem:[%s11454_s12 + $0x200] sm:$0xf] }
 0x439   :  { %4692 = vmatpush.bf16.msra.mxu1 %v6587_v46  ;;  %v7004_v46 = vld [vmem:[%s11454_s12 + $0x51c] sm:$0xf0]  ;;  %v7187_v18 = vor.u32 %v7881_v10, %v7184_v12  ;;  %v7043_v10 = vor.u32 %v7845_v14, %v7040_v11  ;;  %v7896_v12 = vld [vmem:[%s11454_s12 + $0x6f4] sm:$0xf]  ;;  %v6434_v11 = vld [vmem:[%s11454_s12 + $0x98] sm:$0xf] }
 0x43a   :  { %4734 = vmatpush.bf16.msrb.mxu0 %v6875_v17  ;;  %v7292_v17 = vld [vmem:[%s11454_s12 + $0x75c] sm:$0xf0]  ;;  %v7007_v22 = vor.u32 %v7836_v15, %v7004_v46  ;;  %v7842_v15 = vld [vmem:[%s11454_s12 + $0x544] sm:$0xf] }
 0x43b   :  { %4708 = vmatpush.bf16.msra.mxu2 %v6659_v21  ;;  %v7076_v21 = vld [vmem:[%s11454_s12 + $0x5ac] sm:$0xf0] }
 0x43c   :  { %4722 = vmatpush.bf16.msra.mxu3 %v6755_v26  ;;  %v7295_v26 = vor.u32 %v7908_v16, %v7292_v17  ;;  %v7079_v29 = vor.u32 %v7854_v20, %v7076_v21  ;;  %v7866_v16 = vld [vmem:[%s11454_s12 + $0x604] sm:$0xf]  ;;  %v7124_v17 = vld [vmem:[%s11454_s12 + $0x60c] sm:$0xf0]  ;;  %v7721_v21 = vld [vmem:[%s11454_s12 + $0x178] sm:$0xf0] }
 0x43d   :  { %4693 = vmatpush.bf16.msra.mxu1 %v6575_v30  ;;  %v7905_v30 = vld [vmem:[%s11454_s12 + $0x73c] sm:$0xf]  ;;  %v6542_v20 = vld [vmem:[%s11454_s12 + $0x170] sm:$0xf] }
 0x43e   :  { %4735 = vmatpush.bf16.msrb.mxu0 %v6863_v37  ;;  %v7064_v37 = vld [vmem:[%s11454_s12 + $0x594] sm:$0xf0] }
 0x43f   :  { %4709 = vmatpush.bf16.msra.mxu2 %v6647_v41  ;;  %v7283_v41 = vor.u32 %v7905_v30, %v7280_v31  ;;  %v7232_v30 = vld [vmem:[%s11454_s12 + $0x6e4] sm:$0xf0]  ;;  %v7127_v31 = vor.u32 %v7866_v16, %v7124_v17  ;;  %v7691_v16 = vld [vmem:[%s11454_s12 + $0x88] sm:$0xf0] }
 0x440   :  { %4723 = vmatpush.bf16.msra.mxu3 %v6743_v47  ;;  %v7067_v47 = vor.u32 %v7851_v36, %v7064_v37  ;;  %v6530_v36 = vld [vmem:[%s11454_s12 + $0x158] sm:$0xf] }
 0x441   :  { %4694 = vmatpush.bf16.msra.mxu1 %v6563_v54  ;;  %v7848_v54 = vld [vmem:[%s11454_s12 + $0x574] sm:$0xf] }
 0x442   :  { %4736 = vmatpush.bf16.msrb.mxu0 %v6851_v60  ;;  %4710 = vmatmul.bf16.vlgmr.msra.gmra.mxu2 %v10290_v3  ;;  %v7148_v60 = vld [vmem:[%s11454_s12 + $0x63c] sm:$0xf0]  ;;  %v7055_v0 = vor.u32 %v7848_v54, %v7052_v56  ;;  %v7697_v54 = vld [vmem:[%s11454_s12 + $0xb8] sm:$0xf0] }
 0x443   :  { %4758 = vmatpush.bf16.msrb.mxu2 %v7115_v49  ;;  %4724 = vmatmul.bf16.vlgmr.msra.gmra.mxu3 %v10398_v52  ;;  %v7902_v49 = vld [vmem:[%s11454_s12 + $0x724] sm:$0xf] }
 0x444   :  { %4772 = vmatpush.bf16.msrb.mxu3 %v7211_v51  ;;  %v7163_v51 = vor.u32 %v7875_v39, %v7160_v40  ;;  %v7271_v44 = vor.u32 %v7902_v49, %v7268_v50  ;;  %v7718_v39 = vld [vmem:[%s11454_s12 + $0x160] sm:$0xf0]  ;;  %v6626_v40 = vld [vmem:[%s11454_s12 + $0x218] sm:$0xf]  ;;  %v7220_v50 = vld [vmem:[%s11454_s12 + $0x6cc] sm:$0xf0] }
 0x445   :  { %4695 = vmatpush.bf16.msra.mxu1 %v6551_v6  ;;  %v7869_v6 = vld [vmem:[%s11454_s12 + $0x61c] sm:$0xf]  ;;  %v7890_v49 = vld [vmem:[%s11454_s12 + $0x6c4] sm:$0xf]  ;;  %v6531_v56 = vor.u32 %v7718_v39, %v6530_v36  ;;  %v7760_v36 = vld [vmem:[%s11454_s12 + $0x2b0] sm:$0xf0] }
 0x446   :  { %4737 = vmatpush.bf16.msrb.mxu0 %v6839_v38  ;;  %v7824_v38 = vld [vmem:[%s11454_s12 + $0x4b4] sm:$0xf]  ;;  %v7139_v46 = vor.u32 %v7869_v6, %v7136_v8  ;;  %v6722_v8 = vld [vmem:[%s11454_s12 + $0x2d8] sm:$0xf]  ;;  %v7706_v39 = vld [vmem:[%s11454_s12 + $0x100] sm:$0xf0] }
 0x447   :  { %4759 = vmatpush.bf16.msrb.mxu2 %v7103_v4  ;;  %v7151_v4 = vor.u32 %v7872_v59, %v7148_v60  ;;  %v7769_v59 = vld [vmem:[%s11454_s12 + $0x2f8] sm:$0xf0] }
 0x448   :  { %4773 = vmatpush.bf16.msrb.mxu3 %v7199_v53  ;;  %4696 = vmatmul.bf16.vlgmr.msra.gmra.mxu1 %v10247_v7  ;;  %v6971_v53 = vor.u32 %v7827_v32, %v6968_v63  ;;  %v6518_v32 = vld [vmem:[%s11454_s12 + $0x140] sm:$0xf]  ;;  %v7715_v63 = vld [vmem:[%s11454_s12 + $0x148] sm:$0xf0] }
 0x449   :  { %4744 = vmatpush.bf16.msrb.mxu1 %v7019_v9  ;;  %4738 = vmatmul.bf16.vlgmr.msrb.gmra.mxu0 %v10351_v48  ;;  %v6956_v9 = vld [vmem:[%s11454_s12 + $0x4bc] sm:$0xf0]  ;;  %v6519_v6 = vor.u32 %v7715_v63, %v6518_v32  ;;  %v7727_v32 = vld [vmem:[%s11454_s12 + $0x1a8] sm:$0xf0] }
 0x44a   :  { %4786 = vmatpush.bf16.msra.mxu0 %v7307_v61  ;;  %v7244_v61 = vld [vmem:[%s11454_s12 + $0x6fc] sm:$0xf0] }
 0x44b   :  { %4760 = vmatpush.bf16.msrb.mxu2 %v7091_v13  ;;  %v7028_v13 = vld [vmem:[%s11454_s12 + $0x54c] sm:$0xf0]  ;;  %v7247_v23 = vor.u32 %v7896_v12, %v7244_v61  ;;  %v6602_v61 = vld [vmem:[%s11454_s12 + $0x1e8] sm:$0xf] }
 0x44c   :  { %4774 = vmatpush.bf16.msrb.mxu3 %v7187_v18  ;;  %v6959_v18 = vor.u32 %v7824_v38, %v6956_v9  ;;  %v7031_v28 = vor.u32 %v7842_v15, %v7028_v13  ;;  %v6506_v9 = vld [vmem:[%s11454_s12 + $0x128] sm:$0xf]  ;;  %v7736_v15 = vld [vmem:[%s11454_s12 + $0x1f0] sm:$0xf0]  ;;  %v6422_v13 = vld [vmem:[%s11454_s12 + $0x80] sm:$0xf] }
 0x44d   :  { %4745 = vmatpush.bf16.msrb.mxu1 %v7007_v22  ;;  %v6638_v22 = vld [vmem:[%s11454_s12 + $0x230] sm:$0xf] }
 0x44e   :  { %4787 = vmatpush.bf16.msra.mxu0 %v7295_v26  ;;  %v7821_v26 = vld [vmem:[%s11454_s12 + $0x49c] sm:$0xf]  ;;  %v6639_v37 = vor.u32 %v7745_v25, %v6638_v22  ;;  %v6494_v22 = vld [vmem:[%s11454_s12 + $0x110] sm:$0xf]  ;;  %v6423_v25 = vor.u32 %v7691_v16, %v6422_v13  ;;  %v7679_v13 = vld [vmem:[%s11454_s12 + $0x28] sm:$0xf0] }
 0x44f   :  { %4761 = vmatpush.bf16.msrb.mxu2 %v7079_v29  ;;  %v7893_v29 = vld [vmem:[%s11454_s12 + $0x6dc] sm:$0xf] }
 0x450   :  { %4775 = vmatpush.bf16.msrb.mxu3 %v7175_v33  ;;  %v6543_v33 = vor.u32 %v7721_v21, %v6542_v20  ;;  %v7235_v42 = vor.u32 %v7893_v29, %v7232_v30  ;;  %v7763_v20 = vld [vmem:[%s11454_s12 + $0x2c8] sm:$0xf0]  ;;  %v6603_v21 = vor.u32 %v7736_v15, %v6602_v61  ;;  %v6410_v29 = vld [vmem:[%s11454_s12 + $0x68] sm:$0xf]  ;;  %v7688_v30 = vld [vmem:[%s11454_s12 + $0x70] sm:$0xf0] }
 0x451   :  { %4746 = vmatpush.bf16.msrb.mxu1 %v6995_v5  ;;  %v6947_v5 = vor.u32 %v7821_v26, %v6944_v24  ;;  %v6590_v26 = vld [vmem:[%s11454_s12 + $0x1d0] sm:$0xf]  ;;  %v7733_v24 = vld [vmem:[%s11454_s12 + $0x1d8] sm:$0xf0] }
 0x452   :  { %4788 = vmatpush.bf16.msra.mxu0 %v7283_v41  ;;  %v7742_v41 = vld [vmem:[%s11454_s12 + $0x220] sm:$0xf0]  ;;  %v7841_v15 = vld [vmem:[%s11454_s12 + $0x538] sm:$0xf0] }
 0x453   :  { %4762 = vmatpush.bf16.msrb.mxu2 %v7067_v47  ;;  %v6932_v47 = vld [vmem:[%s11454_s12 + $0x48c] sm:$0xf0]  ;;  %v6627_v60 = vor.u32 %v7742_v41, %v6626_v40  ;;  %v6411_v40 = vor.u32 %v7688_v30, %v6410_v29  ;;  %v6578_v41 = vld [vmem:[%s11454_s12 + $0x1b8] sm:$0xf]  ;;  %v6362_v30 = vld [vmem:[%s11454_s12 + $0x8] sm:$0xf] }
 0x454   :  { %4776 = vmatpush.bf16.msrb.mxu3 %v7163_v51  ;;  %v6446_v51 = vld [vmem:[%s11454_s12 + $0xb0] sm:$0xf] }
 0x455   :  { %4747 = vmatpush.bf16.msrb.mxu1 %v6983_v57  ;;  %v6734_v57 = vld [vmem:[%s11454_s12 + $0x2f0] sm:$0xf]  ;;  %v6447_v1 = vor.u32 %v7697_v54, %v6446_v51  ;;  %v7757_v54 = vld [vmem:[%s11454_s12 + $0x298] sm:$0xf0] }
 0x456   :  { %4789 = vmatpush.bf16.msra.mxu0 %v7271_v44  ;;  %v6935_v44 = vor.u32 %v7818_v45, %v6932_v47  ;;  %v6735_v14 = vor.u32 %v7769_v59, %v6734_v57  ;;  %v6398_v47 = vld [vmem:[%s11454_s12 + $0x50] sm:$0xf]  ;;  %v6470_v57 = vld [vmem:[%s11454_s12 + $0xe0] sm:$0xf]  ;;  %v7703_v59 = vld [vmem:[%s11454_s12 + $0xe8] sm:$0xf0] }
 0x457   :  { %4763 = vmatpush.bf16.msrb.mxu2 %v7055_v0  ;;  %v7223_v0 = vor.u32 %v7890_v49, %v7220_v50  ;;  %v7685_v49 = vld [vmem:[%s11454_s12 + $0x58] sm:$0xf0]  ;;  %v6686_v51 = vld [vmem:[%s11454_s12 + $0x290] sm:$0xf] }
 0x458   :  { %4777 = vmatpush.bf16.msrb.mxu3 %v7151_v4  ;;  %v7739_v4 = vld [vmem:[%s11454_s12 + $0x208] sm:$0xf0]  ;;  %v6687_v63 = vor.u32 %v7757_v54, %v6686_v51  ;;  %v6998_v54 = vld [vmem:[%s11454_s12 + $0x500] sm:$0xf] }
 0x459   :  { %4748 = vmatpush.bf16.msrb.mxu1 %v6971_v53  ;;  %v7694_v53 = vld [vmem:[%s11454_s12 + $0xa0] sm:$0xf0]  ;;  %v6615_v38 = vor.u32 %v7739_v4, %v6614_v2  ;;  %v6471_v2 = vor.u32 %v7703_v59, %v6470_v57  ;;  %v6674_v4 = vld [vmem:[%s11454_s12 + $0x278] sm:$0xf] }
 0x45a   :  { %4790 = vmatpush.bf16.msra.mxu0 %v7259_v34  ;;  %v7766_v34 = vld [vmem:[%s11454_s12 + $0x2e0] sm:$0xf0]  ;;  %v6435_v12 = vor.u32 %v7694_v53, %v6434_v11  ;;  %v6458_v11 = vld [vmem:[%s11454_s12 + $0xc8] sm:$0xf]  ;;  %v6818_v59 = vld [vmem:[%s11454_s12 + $0x398] sm:$0xf] }
 0x45b   :  { %4764 = vmatpush.bf16.msrb.mxu2 %v7043_v10  ;;  %v7712_v10 = vld [vmem:[%s11454_s12 + $0x130] sm:$0xf0] }
 0x45c   :  { %4778 = vmatpush.bf16.msrb.mxu3 %v7139_v46  ;;  %v6723_v46 = vor.u32 %v7766_v34, %v6722_v8  ;;  %v6507_v17 = vor.u32 %v7712_v10, %v6506_v9  ;;  %v6554_v8 = vld [vmem:[%s11454_s12 + $0x188] sm:$0xf]  ;;  %v7724_v34 = vld [vmem:[%s11454_s12 + $0x190] sm:$0xf0]  ;;  %v6926_v9 = vld [vmem:[%s11454_s12 + $0x470] sm:$0xf] }
 0x45d   :  { %4749 = vmatpush.bf16.msrb.mxu1 %v6959_v18  ;;  %v6710_v18 = vld [vmem:[%s11454_s12 + $0x2c0] sm:$0xf]  ;;  %v7817_v10 = vld [vmem:[%s11454_s12 + $0x478] sm:$0xf0] }
 0x45e   :  { %4791 = vmatpush.bf16.msra.mxu0 %v7247_v23  ;;  %v7709_v23 = vld [vmem:[%s11454_s12 + $0x118] sm:$0xf0] }
 0x45f   :  { %4765 = vmatpush.bf16.msrb.mxu2 %v7031_v28  ;;  %v6711_v28 = vor.u32 %v7763_v20, %v6710_v18  ;;  %v7751_v18 = vld [vmem:[%s11454_s12 + $0x268] sm:$0xf0]  ;;  %v6555_v20 = vor.u32 %v7724_v34, %v6554_v8  ;;  %v7094_v8 = vld [vmem:[%s11454_s12 + $0x5c0] sm:$0xf] }
 0x460   :  { %4779 = vmatpush.bf16.msrb.mxu3 %v7127_v31  ;;  %v6495_v31 = vor.u32 %v7709_v23, %v6494_v22  ;;  %v6914_v22 = vld [vmem:[%s11454_s12 + $0x458] sm:$0xf]  ;;  %v7859_v34 = vld [vmem:[%s11454_s12 + $0x5c8] sm:$0xf0] }
 0x461   :  { %4750 = vmatpush.bf16.msrb.mxu1 %v6947_v5  ;;  %v6482_v5 = vld [vmem:[%s11454_s12 + $0xf8] sm:$0xf] }
 0x462   :  { %4792 = vmatpush.bf16.msra.mxu0 %v7235_v42  ;;  %4766 = vmatmul.bf16.vlgmr.msrb.gmra.mxu2 %v10407_v19  ;;  %v7730_v42 = vld [vmem:[%s11454_s12 + $0x1c0] sm:$0xf0]  ;;  %v6483_v50 = vor.u32 %v7706_v39, %v6482_v5  ;;  %v7793_v5 = vld [vmem:[%s11454_s12 + $0x3b8] sm:$0xf0] }
 0x463   :  { %4814 = vmatpush.bf16.msra.mxu2 %v6543_v33  ;;  %4780 = vmatmul.bf16.vlgmr.msrb.gmra.mxu3 %v10524_v35  ;;  %v6698_v33 = vld [vmem:[%s11454_s12 + $0x2a8] sm:$0xf] }
 0x464   :  { %4828 = vmatpush.bf16.msra.mxu3 %v6639_v37  ;;  %v6591_v37 = vor.u32 %v7733_v24, %v6590_v26  ;;  %v6699_v45 = vor.u32 %v7760_v36, %v6698_v33  ;;  %v7814_v26 = vld [vmem:[%s11454_s12 + $0x460] sm:$0xf0]  ;;  %v7010_v24 = vld [vmem:[%s11454_s12 + $0x518] sm:$0xf]  ;;  %v6650_v33 = vld [vmem:[%s11454_s12 + $0x248] sm:$0xf] }
 0x465   :  { %4751 = vmatpush.bf16.msrb.mxu1 %v6935_v44  ;;  %v6566_v44 = vld [vmem:[%s11454_s12 + $0x1a0] sm:$0xf]  ;;  %v7748_v36 = vld [vmem:[%s11454_s12 + $0x250] sm:$0xf0]  ;;  %v6915_v39 = vor.u32 %v7814_v26, %v6914_v22  ;;  %v6962_v26 = vld [vmem:[%s11454_s12 + $0x4b8] sm:$0xf] }
 0x466   :  { %4793 = vmatpush.bf16.msra.mxu0 %v7223_v0  ;;  %v6386_v0 = vld [vmem:[%s11454_s12 + $0x38] sm:$0xf]  ;;  %v6567_v53 = vor.u32 %v7727_v32, %v6566_v44  ;;  %v7862_v32 = vld [vmem:[%s11454_s12 + $0x5e0] sm:$0xf0] }
 0x467   :  { %4815 = vmatpush.bf16.msra.mxu2 %v6531_v56  ;;  %v6579_v56 = vor.u32 %v7730_v42, %v6578_v41  ;;  %v7865_v41 = vld [vmem:[%s11454_s12 + $0x5f8] sm:$0xf0]  ;;  %v7106_v44 = vld [vmem:[%s11454_s12 + $0x5d8] sm:$0xf] }
 0x468   :  { %4829 = vmatpush.bf16.msra.mxu3 %v6627_v60  ;;  %4752 = vmatmul.bf16.vlgmr.msrb.gmra.mxu1 %v10359_v55  ;;  %v6399_v60 = vor.u32 %v7685_v49, %v6398_v47  ;;  %v6902_v47 = vld [vmem:[%s11454_s12 + $0x440] sm:$0xf]  ;;  %v7811_v49 = vld [vmem:[%s11454_s12 + $0x448] sm:$0xf0] }
 0x469   :  { %4800 = vmatpush.bf16.msra.mxu1 %v6447_v1  ;;  %4794 = vmatmul.bf16.vlgmr.msra.gmra.mxu0 %v10484_v58  ;;  %v7682_v1 = vld [vmem:[%s11454_s12 + $0x40] sm:$0xf0] }
 0x46a   :  { %4842 = vmatpush.bf16.msrb.mxu0 %v6735_v14  ;;  %v7754_v14 = vld [vmem:[%s11454_s12 + $0x280] sm:$0xf0] }
 0x46b   :  { %4816 = vmatpush.bf16.msra.mxu2 %v6519_v6  ;;  %v7700_v6 = vld [vmem:[%s11454_s12 + $0xd0] sm:$0xf0]  ;;  %v6675_v61 = vor.u32 %v7754_v14, %v6674_v4  ;;  %v7107_v14 = vor.u32 %v7862_v32, %v7106_v44  ;;  %v6842_v44 = vld [vmem:[%s11454_s12 + $0x3c8] sm:$0xf] }
 0x46c   :  { %4830 = vmatpush.bf16.msra.mxu3 %v6615_v38  ;;  %v6387_v38 = vor.u32 %v7682_v1, %v6386_v0  ;;  %v6459_v16 = vor.u32 %v7700_v6, %v6458_v11  ;;  %v7808_v0 = vld [vmem:[%s11454_s12 + $0x430] sm:$0xf0]  ;;  %v6806_v11 = vld [vmem:[%s11454_s12 + $0x380] sm:$0xf] }
 0x46d   :  { %4801 = vmatpush.bf16.msra.mxu1 %v6435_v12  ;;  %v7022_v12 = vld [vmem:[%s11454_s12 + $0x530] sm:$0xf]  ;;  %v7832_v4 = vld [vmem:[%s11454_s12 + $0x4f0] sm:$0xf0] }
 0x46e   :  { %4843 = vmatpush.bf16.msrb.mxu0 %v6723_v46  ;;  %v6374_v46 = vld [vmem:[%s11454_s12 + $0x20] sm:$0xf]  ;;  %v7023_v23 = vor.u32 %v7841_v15, %v7022_v12  ;;  %v6974_v12 = vld [vmem:[%s11454_s12 + $0x4d0] sm:$0xf]  ;;  %v6794_v15 = vld [vmem:[%s11454_s12 + $0x368] sm:$0xf] }
 0x46f   :  { %4817 = vmatpush.bf16.msra.mxu2 %v6507_v17  ;;  %v6662_v17 = vld [vmem:[%s11454_s12 + $0x260] sm:$0xf]  ;;  %v7796_v32 = vld [vmem:[%s11454_s12 + $0x3d0] sm:$0xf0] }
 0x470   :  { %4831 = vmatpush.bf16.msra.mxu3 %v6603_v21  ;;  %v6927_v21 = vor.u32 %v7817_v10, %v6926_v9  ;;  %v6663_v29 = vor.u32 %v7751_v18, %v6662_v17  ;;  %v6878_v9 = vld [vmem:[%s11454_s12 + $0x410] sm:$0xf]  ;;  %v7856_v17 = vld [vmem:[%s11454_s12 + $0x5b0] sm:$0xf0] }
 0x471   :  { %4802 = vmatpush.bf16.msra.mxu1 %v6423_v25  ;;  %v6375_v25 = vor.u32 %v7679_v13, %v6374_v46  ;;  %v7784_v46 = vld [vmem:[%s11454_s12 + $0x370] sm:$0xf0] }
 0x472   :  { %4844 = vmatpush.bf16.msrb.mxu0 %v6711_v28  ;;  %v7838_v28 = vld [vmem:[%s11454_s12 + $0x520] sm:$0xf0] }
 0x473   :  { %4818 = vmatpush.bf16.msra.mxu2 %v6495_v31  ;;  %v7676_v31 = vld [vmem:[%s11454_s12 + $0x10] sm:$0xf0]  ;;  %v7011_v42 = vor.u32 %v7838_v28, %v7010_v24  ;;  %v7826_v24 = vld [vmem:[%s11454_s12 + $0x4c0] sm:$0xf0] }
 0x474   :  { %4832 = vmatpush.bf16.msra.mxu3 %v6591_v37  ;;  %v6830_v37 = vld [vmem:[%s11454_s12 + $0x3b0] sm:$0xf] }
 0x475   :  { %4803 = vmatpush.bf16.msra.mxu1 %v6411_v40  ;;  %v7118_v40 = vld [vmem:[%s11454_s12 + $0x5f0] sm:$0xf]  ;;  %v6831_v51 = vor.u32 %v7793_v5, %v6830_v37  ;;  %v7853_v37 = vld [vmem:[%s11454_s12 + $0x598] sm:$0xf0] }
 0x476   :  { %4845 = vmatpush.bf16.msrb.mxu0 %v6699_v45  ;;  %v6363_v45 = vor.u32 %v7676_v31, %v6362_v30  ;;  %v7119_v57 = vor.u32 %v7865_v41, %v7118_v40  ;;  %v7781_v30 = vld [vmem:[%s11454_s12 + $0x358] sm:$0xf0]  ;;  %v11181_v31 = vld [vmem:[%s11456_s13] sm:$0x7]  ;;  %v7799_v41 = vld [vmem:[%s11454_s12 + $0x3e8] sm:$0xf0] }
 0x477   :  { %4819 = vmatpush.bf16.msra.mxu2 %v6483_v50  ;;  %v6651_v50 = vor.u32 %v7748_v36, %v6650_v33  ;;  %v7070_v36 = vld [vmem:[%s11454_s12 + $0x590] sm:$0xf]  ;;  %v6854_v40 = vld [vmem:[%s11454_s12 + $0x3e0] sm:$0xf] }
 0x478   :  { %4833 = vmatpush.bf16.msra.mxu3 %v6579_v56  ;;  %v7835_v56 = vld [vmem:[%s11454_s12 + $0x508] sm:$0xf0] }
 0x479   :  { %4804 = vmatpush.bf16.msra.mxu1 %v6399_v60  ;;  %v6903_v60 = vor.u32 %v7811_v49, %v6902_v47  ;;  %v7823_v47 = vld [vmem:[%s11454_s12 + $0x4a8] sm:$0xf0]  ;;  %v3234_v49 = vperm.slane %v11181_v31, 0 }
 0x47a   :  { %4846 = vmatpush.bf16.msrb.mxu0 %v6687_v63  ;;  %v6890_v63 = vld [vmem:[%s11454_s12 + $0x428] sm:$0xf] }
 0x47b   :  { %4820 = vmatpush.bf16.msra.mxu2 %v6471_v2  ;;  %v6986_v2 = vld [vmem:[%s11454_s12 + $0x4e8] sm:$0xf]  ;;  %v6891_v6 = vor.u32 %v7808_v0, %v6890_v63 }
 0x47c   :  { %4834 = vmatpush.bf16.msra.mxu3 %v6567_v53  ;;  %v7787_v53 = vld [vmem:[%s11454_s12 + $0x388] sm:$0xf0] }
 0x47d   :  { %4805 = vmatpush.bf16.msra.mxu1 %v6387_v38  ;;  %v6987_v38 = vor.u32 %v7832_v4, %v6986_v2  ;;  %v6807_v10 = vor.u32 %v7787_v53, %v6806_v11  ;;  %v7820_v2 = vld [vmem:[%s11454_s12 + $0x490] sm:$0xf0]  ;;  %v7310_v4 = vld [vmem:[%s11454_s12 + $0x770] sm:$0xf] }
 0x47e   :  { %4847 = vmatpush.bf16.msrb.mxu0 %v6675_v61  ;;  %v7095_v61 = vor.u32 %v7859_v34, %v7094_v8  ;;  %v7775_v8 = vld [vmem:[%s11454_s12 + $0x328] sm:$0xf0]  ;;  %v6843_v34 = vor.u32 %v7796_v32, %v6842_v44 }
 0x47f   :  { %4821 = vmatpush.bf16.msra.mxu2 %v6459_v16  ;;  %v7082_v16 = vld [vmem:[%s11454_s12 + $0x5a8] sm:$0xf] }
 0x480   :  { %4835 = vmatpush.bf16.msra.mxu3 %v6555_v20  ;;  %v6866_v20 = vld [vmem:[%s11454_s12 + $0x3f8] sm:$0xf]  ;;  %v7083_v28 = vor.u32 %v7856_v17, %v7082_v16 }
 0x481   :  { %4806 = vmatpush.bf16.msra.mxu1 %v6375_v25  ;;  %v6795_v25 = vor.u32 %v7784_v46, %v6794_v15  ;;  %v7921_v15 = vld [vmem:[%s11457_s14 + $0x38] sm:$0xff]  ;;  %v6746_v46 = vld [vmem:[%s11454_s12 + $0x308] sm:$0xf] }
 0x482   :  { %4848 = vmatpush.bf16.msrb.mxu0 %v6663_v29  ;;  %4822 = vmatmul.bf16.vlgmr.msra.gmra.mxu2 %v10239_v27  ;;  %v7790_v27 = vld [vmem:[%s11454_s12 + $0x3a0] sm:$0xf0]  ;;  %v6782_v29 = vld [vmem:[%s11454_s12 + $0x350] sm:$0xf] }
 0x483   :  { %4870 = vmatpush.bf16.msrb.mxu2 %v6927_v21  ;;  %4836 = vmatmul.bf16.vlgmr.msra.gmra.mxu3 %v10247_v7  ;;  %v6999_v7 = vor.u32 %v7835_v56, %v6998_v54  ;;  %v6819_v1 = vor.u32 %v7790_v27, %v6818_v59  ;;  %v7802_v21 = vld [vmem:[%s11454_s12 + $0x400] sm:$0xf0]  ;;  %v6855_v56 = vor.u32 %v7799_v41, %v6854_v40 }
 0x484   :  { %4884 = vmatpush.bf16.msrb.mxu3 %v7023_v23  ;;  %v6867_v33 = vor.u32 %v7802_v21, %v6866_v20  ;;  %v7778_v54 = vld [vmem:[%s11454_s12 + $0x340] sm:$0xf0]  ;;  %v7772_v20 = vld [vmem:[%s11454_s12 + $0x310] sm:$0xf0]  ;;  %v7034_v21 = vld [vmem:[%s11454_s12 + $0x548] sm:$0xf] }
 0x485   :  { %4807 = vmatpush.bf16.msra.mxu1 %v6363_v45  ;;  %v4529_v22 = vpop.f32.mrf.mxu1  ;;  %v11164_v23 = vpop.f32.mrf.mxu2  ;;  %v6950_v45 = vld [vmem:[%s11454_s12 + $0x4a0] sm:$0xf]  ;;  %v7850_v59 = vld [vmem:[%s11454_s12 + $0x580] sm:$0xf0] }
 0x486   :  { %4849 = vmatpush.bf16.msrb.mxu0 %v6651_v50  ;;  %v11189_v5 = vpop.f32.mrf.mxu3  ;;  %v7071_v50 = vor.u32 %v7853_v37, %v7070_v36  ;;  %v11216_v27 = vpop.f32.mrf.mxu0  ;;  %v4530_v11 = vadd.f32 %v4529_v22, %v3234_v49  ;;  %v7844_v22 = vld [vmem:[%s11454_s12 + $0x550] sm:$0xf0]  ;;  %v7907_v36 = vld [vmem:[%s11454_s12 + $0x748] sm:$0xf0] }
 0x487   :  { %4871 = vmatpush.bf16.msrb.mxu2 %v6915_v39  ;;  %v6963_v39 = vor.u32 %v7826_v24, %v6962_v26  ;;  %v7920_v37 = vld [vmem:[%s11457_s14 + $0x30] sm:$0xff] }
 0x488   :  { %4885 = vmatpush.bf16.msrb.mxu3 %v7011_v42  ;;  %4808 = vmatmul.bf16.vlgmr.msra.gmra.mxu1 %v10281_v62  ;;  %v7805_v62 = vld [vmem:[%s11454_s12 + $0x418] sm:$0xf0]  ;;  %v6783_v42 = vor.u32 %v7781_v30, %v6782_v29  ;;  %v6747_v29 = vor.u32 %v7772_v20, %v6746_v46  ;;  %v7035_v30 = vor.u32 %v7844_v22, %v7034_v21  ;;  %v7238_v46 = vld [vmem:[%s11454_s12 + $0x6e0] sm:$0xf]  ;;  %v7154_v20 = vld [vmem:[%s11454_s12 + $0x638] sm:$0xf] }
 0x489   :  { %4856 = vmatpush.bf16.msrb.mxu1 %v6831_v51  ;;  %4850 = vmatmul.bf16.vlgmr.msrb.gmra.mxu0 %v10290_v3  ;;  %v7829_v3 = vld [vmem:[%s11454_s12 + $0x4d8] sm:$0xf0]  ;;  %v6879_v13 = vor.u32 %v7805_v62, %v6878_v9  ;;  %v6770_v51 = vld [vmem:[%s11454_s12 + $0x338] sm:$0xf]  ;;  %v7847_v9 = vld [vmem:[%s11454_s12 + $0x568] sm:$0xf0] }
 0x48a   :  { %4898 = vmatpush.bf16.msra.mxu0 %v7119_v57  ;;  %v6975_v18 = vor.u32 %v7829_v3, %v6974_v12  ;;  %v7058_v57 = vld [vmem:[%s11454_s12 + $0x578] sm:$0xf]  ;;  %v7874_v21 = vld [vmem:[%s11454_s12 + $0x640] sm:$0xf0] }
 0x48b   :  { %4872 = vmatpush.bf16.msrb.mxu2 %v6903_v60  ;;  %v6951_v60 = vor.u32 %v7823_v47, %v6950_v45  ;;  %v7059_v53 = vor.u32 %v7850_v59, %v7058_v57  ;;  %v7298_v12 = vld [vmem:[%s11454_s12 + $0x758] sm:$0xf]  ;;  %v7886_v47 = vld [vmem:[%s11454_s12 + $0x6a0] sm:$0xf0]  ;;  %v7883_v57 = vld [vmem:[%s11454_s12 + $0x688] sm:$0xf0] }
 0x48c   :  { %4886 = vmatpush.bf16.msrb.mxu3 %v6999_v7  ;;  %v6938_v7 = vld [vmem:[%s11454_s12 + $0x488] sm:$0xf]  ;;  %v7202_v45 = vld [vmem:[%s11454_s12 + $0x698] sm:$0xf] }
 0x48d   :  { %4857 = vmatpush.bf16.msrb.mxu1 %v6819_v1  ;;  %v4531_v63 = vpop.f32.mrf.mxu1  ;;  %v4545_v0 = vpop.f32.mrf.mxu2  ;;  %v6771_v1 = vor.u32 %v7778_v54, %v6770_v51  ;;  %v6939_v62 = vor.u32 %v7820_v2, %v6938_v7  ;;  %v7203_v54 = vor.u32 %v7886_v47, %v7202_v45  ;;  %v7262_v7 = vld [vmem:[%s11454_s12 + $0x710] sm:$0xf]  ;;  %v7880_v2 = vld [vmem:[%s11454_s12 + $0x670] sm:$0xf0] }
 0x48e   :  { %4899 = vmatpush.bf16.msra.mxu0 %v7107_v14  ;;  %v7913_v14 = vld [vmem:[%s11454_s12 + $0x778] sm:$0xf0]  ;;  %v4532_v16 = vadd.f32 %v4531_v63, %v3234_v49  ;;  %v4559_v17 = vpop.f32.mrf.mxu3 }
 0x48f   :  { %4873 = vmatpush.bf16.msrb.mxu2 %v6891_v6  ;;  %v6758_v6 = vld [vmem:[%s11454_s12 + $0x320] sm:$0xf]  ;;  %v7901_v63 = vld [vmem:[%s11454_s12 + $0x718] sm:$0xf0] }
 0x490   :  { %4887 = vmatpush.bf16.msrb.mxu3 %v6987_v38  ;;  %v7046_v38 = vld [vmem:[%s11454_s12 + $0x560] sm:$0xf]  ;;  %v6759_v3 = vor.u32 %v7775_v8, %v6758_v6  ;;  %v4546_v40 = vadd.f32 %v4545_v0, %v4532_v16  ;;  %v7250_v6 = vld [vmem:[%s11454_s12 + $0x6f8] sm:$0xf]  ;;  %v7898_v8 = vld [vmem:[%s11454_s12 + $0x700] sm:$0xf0] }
 0x491   :  { %4858 = vmatpush.bf16.msrb.mxu1 %v6807_v10  ;;  %v7311_v10 = vor.u32 %v7913_v14, %v7310_v4  ;;  %v7918_v0 = vld [vmem:[%s11457_s14 + $0x20] sm:$0xff]  ;;  %v7916_v16 = vld [vmem:[%s11457_s14 + $0x10] sm:$0xff] }
 0x492   :  { %4900 = vmatpush.bf16.msra.mxu0 %v7095_v61  ;;  %v7910_v61 = vld [vmem:[%s11454_s12 + $0x760] sm:$0xf0]  ;;  %v4560_v51 = vadd.f32 %v4559_v17, %v4546_v40 }
 0x493   :  { %4874 = vmatpush.bf16.msrb.mxu2 %v6879_v13  ;;  %v4544_v13 = vadd.f32 %v11164_v23, %v4530_v11  ;;  %v7214_v23 = vld [vmem:[%s11454_s12 + $0x6b0] sm:$0xf]  ;;  %v7299_v26 = vor.u32 %v7910_v61, %v7298_v12  ;;  %v7263_v11 = vor.u32 %v7901_v63, %v7262_v7  ;;  %v7925_v7 = vld [vmem:[%s11457_s14 + $0x58] sm:$0xff] }
 0x494   :  { %4888 = vmatpush.bf16.msrb.mxu3 %v6975_v18  ;;  %v7047_v18 = vor.u32 %v7847_v9, %v7046_v38  ;;  %v7166_v9 = vld [vmem:[%s11454_s12 + $0x650] sm:$0xf] }
 0x495   :  { %4859 = vmatpush.bf16.msrb.mxu1 %v6795_v25  ;;  %v7889_v25 = vld [vmem:[%s11454_s12 + $0x6b8] sm:$0xf0]  ;;  %v4585_v24 = vpop.f32.mrf.mxu1 }
 0x496   :  { %4901 = vmatpush.bf16.msra.mxu0 %v7083_v28  ;;  %v4599_v28 = vpop.f32.mrf.mxu2  ;;  %v7215_v41 = vor.u32 %v7889_v25, %v7214_v23 }
 0x497   :  { %4875 = vmatpush.bf16.msrb.mxu2 %v6867_v33  ;;  %v7286_v33 = vld [vmem:[%s11454_s12 + $0x740] sm:$0xf] }
 0x498   :  { %4889 = vmatpush.bf16.msrb.mxu3 %v6963_v39  ;;  %v4558_v39 = vadd.f32 %v11189_v5, %v4544_v13  ;;  %v7287_v49 = vor.u32 %v7907_v36, %v7286_v33  ;;  %v7919_v5 = vld [vmem:[%s11457_s14 + $0x28] sm:$0xff]  ;;  %v7142_v36 = vld [vmem:[%s11454_s12 + $0x620] sm:$0xf] }
 0x499   :  { %4860 = vmatpush.bf16.msrb.mxu1 %v6783_v42  ;;  %v4573_v42 = vpop.f32.mrf.mxu0  ;;  %v7895_v13 = vld [vmem:[%s11454_s12 + $0x6e8] sm:$0xf0] }
 0x49a   :  { %4902 = vmatpush.bf16.msra.mxu0 %v7071_v50  ;;  %v4572_v50 = vadd.f32 %v11216_v27, %v4558_v39  ;;  %v7239_v25 = vor.u32 %v7895_v13, %v7238_v46 }
 0x49b   :  { %4876 = vmatpush.bf16.msrb.mxu2 %v6855_v56  ;;  %v7190_v56 = vld [vmem:[%s11454_s12 + $0x680] sm:$0xf] }
 0x49c   :  { %4890 = vmatpush.bf16.msrb.mxu3 %v6951_v60  ;;  %v4586_v59 = vadd.f32 %v4585_v24, %v4572_v50  ;;  %v4613_v60 = vpop.f32.mrf.mxu3  ;;  %v7892_v24 = vld [vmem:[%s11454_s12 + $0x6d0] sm:$0xf0] }
 0x49d   :  { %4861 = vmatpush.bf16.msrb.mxu1 %v6771_v1  ;;  %v4587_v27 = vpop.f32.mrf.mxu1  ;;  %v7191_v1 = vor.u32 %v7883_v57, %v7190_v56 }
 0x49e   :  { %4903 = vmatpush.bf16.msra.mxu0 %v7059_v53  ;;  %v4601_v32 = vpop.f32.mrf.mxu2  ;;  %v4600_v4 = vadd.f32 %v4599_v28, %v4586_v59  ;;  %v7915_v28 = vld [vmem:[%s11457_s14 + $0x8] sm:$0xff]  ;;  %v7928_v59 = vld [vmem:[%s11457_s14 + $0x70] sm:$0xff] }
 0x49f   :  { %4877 = vmatpush.bf16.msrb.mxu2 %v6843_v34  ;;  %v7917_v34 = vld [vmem:[%s11457_s14 + $0x18] sm:$0xff] }
 0x4a0   :  { %4891 = vmatpush.bf16.msrb.mxu3 %v6939_v62  ;;  %v7877_v62 = vld [vmem:[%s11454_s12 + $0x658] sm:$0xf0] }
 0x4a1   :  { %4862 = vmatpush.bf16.msrb.mxu1 %v6759_v3  ;;  %v4627_v53 = vpop.f32.mrf.mxu0  ;;  %v7251_v3 = vor.u32 %v7898_v8, %v7250_v6  ;;  %v7167_v17 = vor.u32 %v7877_v62, %v7166_v9 }
 0x4a2   :  { %4904 = vmatpush.bf16.msra.mxu0 %v7047_v18  ;;  %4878 = vmatmul.bf16.vlgmr.msrb.gmra.mxu2 %v10351_v48  ;;  %v7274_v48 = vld [vmem:[%s11454_s12 + $0x728] sm:$0xf] }
 0x4a3   :  { %4926 = vmatpush.bf16.msra.mxu2 %v7311_v10  ;;  %4892 = vmatmul.bf16.vlgmr.msrb.gmra.mxu3 %v10359_v55  ;;  %v7904_v55 = vld [vmem:[%s11454_s12 + $0x730] sm:$0xf0]  ;;  %v4614_v10 = vadd.f32 %v4613_v60, %v4600_v4 }
 0x4a4   :  { %5116 = vmatpush.bf16.msra.mxu3 %v7921_v15  ;;  %v7275_v44 = vor.u32 %v7904_v55, %v7274_v48  ;;  %v4615_v18 = vpop.f32.mrf.mxu3  ;;  %v7130_v55 = vld [vmem:[%s11454_s12 + $0x608] sm:$0xf] }
 0x4a5   :  { %4863 = vmatpush.bf16.msrb.mxu1 %v6747_v29  ;;  %v4641_v61 = vpop.f32.mrf.mxu1  ;;  %v4628_v22 = vadd.f32 %v4627_v53, %v4614_v10  ;;  %v7922_v53 = vld [vmem:[%s11457_s14 + $0x40] sm:$0xff] }
 0x4a6   :  { %4905 = vmatpush.bf16.msra.mxu0 %v7035_v30  ;;  %v4655_v15 = vpop.f32.mrf.mxu2  ;;  %v7155_v30 = vor.u32 %v7874_v21, %v7154_v20 }
 0x4a7   :  { %4927 = vmatpush.bf16.msra.mxu2 %v7299_v26  ;;  %v7226_v26 = vld [vmem:[%s11454_s12 + $0x6c8] sm:$0xf]  ;;  %v4642_v29 = vadd.f32 %v4641_v61, %v4628_v22 }
 0x4a8   :  { %5117 = vmatpush.bf16.msra.mxu3 %v7920_v37  ;;  %4864 = vmatmul.bf16.vlgmr.msrb.gmra.mxu1 %v10398_v52  ;;  %v4574_v52 = vadd.f32 %v4573_v42, %v4560_v51  ;;  %v7871_v37 = vld [vmem:[%s11454_s12 + $0x628] sm:$0xf0]  ;;  %v7227_v40 = vor.u32 %v7892_v24, %v7226_v26  ;;  %v7914_v42 = vld [vmem:[%s11457_s14] sm:$0xff]  ;;  %v7929_v51 = vld [vmem:[%s11457_s14 + $0x78] sm:$0xff] }
 0x4a9   :  { %4912 = vmatpush.bf16.msra.mxu1 %v7215_v41  ;;  %4906 = vmatmul.bf16.vlgmr.msra.gmra.mxu0 %v10407_v19  ;;  %v7178_v19 = vld [vmem:[%s11454_s12 + $0x668] sm:$0xf]  ;;  %v4629_v33 = vpop.f32.mrf.mxu0  ;;  %v4656_v45 = vadd.f32 %v4655_v15, %v4642_v29 }
 0x4aa   :  { %v4588_v14 = vadd.f32 %v4587_v27, %v4574_v52  ;;  %v7179_v38 = vor.u32 %v7880_v2, %v7178_v19  ;;  %5130 = vmatpush.bf16.msrb.mxu0 %v7929_v51  ;;  %v7923_v19 = vld [vmem:[%s11457_s14 + $0x48] sm:$0xff] }
 0x4ab   :  { %4928 = vmatpush.bf16.msra.mxu2 %v7287_v49  ;;  %v7143_v49 = vor.u32 %v7871_v37, %v7142_v36 }
 0x4ac   :  { %5118 = vmatpush.bf16.msra.mxu3 %v7919_v5  ;;  %v4602_v12 = vadd.f32 %v4601_v32, %v4588_v14  ;;  %v7868_v5 = vld [vmem:[%s11454_s12 + $0x610] sm:$0xf0]  ;;  %v4669_v27 = vpop.f32.mrf.mxu3 }
 0x4ad   :  { %4913 = vmatpush.bf16.msra.mxu1 %v7203_v54  ;;  %v4643_v41 = vpop.f32.mrf.mxu1  ;;  %v4940_v54 = vmax.f32 %v4656_v45, 0.0  ;;  %v7131_v57 = vor.u32 %v7868_v5, %v7130_v55  ;;  %v3236_v55 = vperm.slane %v11181_v31, 2 }
 0x4ae   :  { %v4616_v23 = vadd.f32 %v4615_v18, %v4602_v12  ;;  %v4657_v48 = vpop.f32.mrf.mxu2  ;;  %5131 = vmatpush.bf16.msrb.mxu0 %v7928_v59 }
 0x4af   :  { %4929 = vmatpush.bf16.msra.mxu2 %v7275_v44  ;;  %v7927_v44 = vld [vmem:[%s11457_s14 + $0x68] sm:$0xff] }
 0x4b0   :  { %5119 = vmatpush.bf16.msra.mxu3 %v7918_v0  ;;  %v4630_v39 = vadd.f32 %v4629_v33, %v4616_v23  ;;  %v3235_v0 = vperm.slane %v11181_v31, 1  ;;  %v7930_v31 = vld [vmem:[%s11457_s14 + $0x80] sm:$0xff] }
 0x4b1   :  { %4914 = vmatpush.bf16.msra.mxu1 %v7191_v1  ;;  %v4683_v32 = vpop.f32.mrf.mxu0 }
 0x4b2   :  { %v4644_v47 = vadd.f32 %v4643_v41, %v4630_v39  ;;  %5132 = vmatpush.bf16.msrb.mxu0 %v7927_v44  ;;  %v4670_v1 = vadd.f32 %v4669_v27, %v3235_v0 }
 0x4b3   :  { %4930 = vmatpush.bf16.msra.mxu2 %v7263_v11 }
 0x4b4   :  { %5120 = vmatpush.bf16.msra.mxu3 %v7917_v34  ;;  %v4658_v50 = vadd.f32 %v4657_v48, %v4644_v47  ;;  %v4671_v63 = vpop.f32.mrf.mxu3  ;;  %v4684_v11 = vadd.f32 %v4683_v32, %v4670_v1  ;;  %v7933_v48 = vld [vmem:[%s11457_s14 + $0x98] sm:$0xff] }
 0x4b5   :  { %4915 = vmatpush.bf16.msra.mxu1 %v7179_v38  ;;  %v4672_v34 = vadd.f32 %v4671_v63, %v3235_v0 }
 0x4b6   :  { %v4943_v56 = vmax.f32 %v4658_v50, 0.0  ;;  %v7932_v50 = vld [vmem:[%s11457_s14 + $0x90] sm:$0xff] }
 0x4b7   :  { %4931 = vmatpush.bf16.msra.mxu2 %v7251_v3 }
 0x4b8   :  { %5121 = vmatpush.bf16.msra.mxu3 %v7916_v16  ;;  %v4946_v60 = vpack.c.bf16 %v4943_v56, %v4940_v54 }
 0x4b9   :  { %4916 = vmatpush.bf16.msra.mxu1 %v7167_v17  ;;  %v4685_v52 = vpop.f32.mrf.mxu0 }
 0x4ba   :  { %v4686_v10 = vadd.f32 %v4685_v52, %v4672_v34 }
 0x4bb   :  { %4932 = vmatpush.bf16.msra.mxu2 %v7239_v25 }
 0x4bc   :  { %5122 = vmatpush.bf16.msra.mxu3 %v7915_v28 }
 0x4bd   :  { %4917 = vmatpush.bf16.msra.mxu1 %v7155_v30 }
 0x4bf   :  { %4933 = vmatpush.bf16.msra.mxu2 %v7227_v40 }
 0x4c0   :  { %5123 = vmatpush.bf16.msra.mxu3 %v7914_v42 }
 0x4c1   :  { %4918 = vmatpush.bf16.msra.mxu1 %v7143_v49 }
 0x4c2   :  { %4934 = vmatmul.bf16.vlgmr.msra.gmra.mxu2 %v10484_v58  ;;  %v7926_v58 = vld [vmem:[%s11457_s14 + $0x60] sm:$0xff] }
 0x4c3   :  { %5124 = vmatmul.bf16.vlgmr.msra.gmra.mxu3 %v4946_v60  ;;  %5133 = vmatpush.bf16.msrb.mxu0 %v7926_v58 }
 0x4c5   :  { %4919 = vmatpush.bf16.msra.mxu1 %v7131_v57  ;;  %v4697_v2 = vpop.f32.mrf.mxu1  ;;  %v4711_v4 = vpop.f32.mrf.mxu2  ;;  %v7931_v57 = vld [vmem:[%s11457_s14 + $0x88] sm:$0xff] }
 0x4c6   :  { %v4725_v14 = vpop.f32.mrf.mxu3  ;;  %v4739_v6 = vpop.f32.mrf.mxu0  ;;  %v4698_v8 = vadd.f32 %v4697_v2, %v4684_v11 }
 0x4c7   :  { %5134 = vmatpush.bf16.msrb.mxu0 %v7925_v7 }
 0x4c8   :  { %4920 = vmatmul.bf16.vlgmr.msra.gmra.mxu1 %v10524_v35  ;;  %v7924_v35 = vld [vmem:[%s11457_s14 + $0x50] sm:$0xff]  ;;  %v4712_v38 = vadd.f32 %v4711_v4, %v4698_v8 }
 0x4c9   :  { %5148 = vmatpush.bf16.msrb.mxu1 %v7933_v48 }
 0x4ca   :  { %v4726_v3 = vadd.f32 %v4725_v14, %v4712_v38 }
 0x4cb   :  { %5135 = vmatpush.bf16.msrb.mxu0 %v7924_v35 }
 0x4cc   :  { %v4740_v46 = vadd.f32 %v4739_v6, %v4726_v3 }
 0x4cd   :  { %v4699_v9 = vpop.f32.mrf.mxu1  ;;  %v4713_v62 = vpop.f32.mrf.mxu2  ;;  %5149 = vmatpush.bf16.msrb.mxu1 %v7932_v50 }
 0x4ce   :  { %v4727_v12 = vpop.f32.mrf.mxu3  ;;  %v4700_v61 = vadd.f32 %v4699_v9, %v4686_v10  ;;  %v4741_v15 = vpop.f32.mrf.mxu0 }
 0x4cf   :  { %5136 = vmatpush.bf16.msrb.mxu0 %v7923_v19 }
 0x4d0   :  { %v4714_v13 = vadd.f32 %v4713_v62, %v4700_v61 }
 0x4d1   :  { %5150 = vmatpush.bf16.msrb.mxu1 %v7931_v57 }
 0x4d2   :  { %v4728_v21 = vadd.f32 %v4727_v12, %v4714_v13 }
 0x4d3   :  { %5137 = vmatpush.bf16.msrb.mxu0 %v7922_v53 }
 0x4d4   :  { %v4742_v25 = vadd.f32 %v4741_v15, %v4728_v21 }
 0x4d5   :  { %5151 = vmatpush.bf16.msrb.mxu1 %v7930_v31 }
 0x4e5   :  { %v4753_v16 = vpop.f32.mrf.mxu1  ;;  %v4767_v17 = vpop.f32.mrf.mxu2 }
 0x4e6   :  { %v4754_v18 = vadd.f32 %v4753_v16, %v4740_v46  ;;  %v4781_v20 = vpop.f32.mrf.mxu3  ;;  %v4795_v22 = vpop.f32.mrf.mxu0 }
 0x4e8   :  { %v4768_v23 = vadd.f32 %v4767_v17, %v4754_v18 }
 0x4ea   :  { %v4782_v24 = vadd.f32 %v4781_v20, %v4768_v23  ;;  %v25_v23 = vstv %s11460_s17 }
 0x4eb   :  { %26 = vst [vmem:[#allocation3] sm:$0x1] %v25_v23 }
 0x4ec   :  { %v4796_v36 = vadd.f32 %v4795_v22, %v4782_v24 }
 0x4ed   :  { %v4755_v26 = vpop.f32.mrf.mxu1  ;;  %v4769_v29 = vpop.f32.mrf.mxu2 }
 0x4ee   :  { %v4756_v28 = vadd.f32 %v4755_v26, %v4742_v25  ;;  %v4783_v33 = vpop.f32.mrf.mxu3  ;;  %v4797_v39 = vpop.f32.mrf.mxu0  ;;  %v4941_v41 = vmax.f32 %v4796_v36, 0.0  ;;  %v7943_v26 = vld [vmem:[%s11458_s15] ss:$0 sm:$0xff] }
 0x4ef   :  { %v7944_v36 = vld [vmem:[%s11459_s16] ss:$0 sm:$0xff] }
 0x4f0   :  { %v4770_v30 = vadd.f32 %v4769_v29, %v4756_v28 }
 0x4f2   :  { %v4784_v37 = vadd.f32 %v4783_v33, %v4770_v30 }
 0x4f4   :  { %v4798_v40 = vadd.f32 %v4797_v39, %v4784_v37 }
 0x4f6   :  { %v4944_v42 = vmax.f32 %v4798_v40, 0.0 }
 0x4f8   :  { %v4947_v45 = vpack.c.bf16 %v4944_v42, %v4941_v41 }
 0x4fa   :  { %5138 = vmatmul.bf16.vlgmr.msrb.gmra.mxu0 %v4947_v45 }
 0x505   :  { %v4809_v47 = vpop.f32.mrf.mxu1  ;;  %v4823_v49 = vpop.f32.mrf.mxu2 }
 0x506   :  { %v4837_v5 = vpop.f32.mrf.mxu3  ;;  %v4810_v56 = vadd.f32 %v4809_v47, %v3236_v55  ;;  %v4851_v59 = vpop.f32.mrf.mxu0 }
 0x508   :  { %v4824_v60 = vadd.f32 %v4823_v49, %v4810_v56 }
 0x50a   :  { %v4838_v7 = vadd.f32 %v4837_v5, %v4824_v60  ;;  %v5181_v60 = vpop.permute.xlu0 %5180 }
 0x50c   :  { %v4852_v35 = vadd.f32 %v4851_v59, %v4838_v7 }
 0x50d   :  { %v4811_v51 = vpop.f32.mrf.mxu1  ;;  %v4825_v54 = vpop.f32.mrf.mxu2 }
 0x50e   :  { %v4812_v44 = vadd.f32 %v4811_v51, %v3236_v55  ;;  %v4839_v58 = vpop.f32.mrf.mxu3  ;;  %v4853_v0 = vpop.f32.mrf.mxu0  ;;  %v7945_v51 = vld [vmem:[#allocation3] ss:$0 sm:$0xff] }
 0x510   :  { %v4826_v63 = vadd.f32 %v4825_v54, %v4812_v44 }
 0x512   :  { %v4840_v52 = vadd.f32 %v4839_v58, %v4826_v63 }
 0x514   :  { %v4854_v14 = vadd.f32 %v4853_v0, %v4840_v52 }
 0x525   :  { %v4865_v27 = vpop.f32.mrf.mxu1  ;;  %v4879_v32 = vpop.f32.mrf.mxu2 }
 0x526   :  { %v4866_v1 = vadd.f32 %v4865_v27, %v4852_v35  ;;  %v4893_v19 = vpop.f32.mrf.mxu3  ;;  %v4907_v6 = vpop.f32.mrf.mxu0 }
 0x527   :  { %v5186_v27 = vpop.permute.xlu1 %5185 }
 0x528   :  { %v4880_v11 = vadd.f32 %v4879_v32, %v4866_v1 }
 0x52a   :  { %v4894_v8 = vadd.f32 %v4893_v19, %v4880_v11 }
 0x52c   :  { %v4908_v10 = vadd.f32 %v4907_v6, %v4894_v8 }
 0x52d   :  { %v4867_v2 = vpop.f32.mrf.mxu1  ;;  %v4881_v4 = vpop.f32.mrf.mxu2 }
 0x52e   :  { %v4868_v53 = vadd.f32 %v4867_v2, %v4854_v14  ;;  %v4895_v62 = vpop.f32.mrf.mxu3  ;;  %v4909_v61 = vpop.f32.mrf.mxu0 }
 0x530   :  { %v4882_v34 = vadd.f32 %v4881_v4, %v4868_v53 }
 0x532   :  { %v4896_v12 = vadd.f32 %v4895_v62, %v4882_v34 }
 0x534   :  { %v4910_v15 = vadd.f32 %v4909_v61, %v4896_v12 }
 0x545   :  { %v4921_v38 = vpop.f32.mrf.mxu1  ;;  %v4935_v9 = vpop.f32.mrf.mxu2 }
 0x546   :  { %v4922_v3 = vadd.f32 %v4921_v38, %v4908_v10  ;;  %v5125_v25 = vpop.f32.mrf.mxu3 }
 0x547   :  { %v5126_v28 = vadd.f32 %v7943_v26, %v5125_v25 }
 0x548   :  { %v4936_v13 = vadd.f32 %v4935_v9, %v4922_v3 }
 0x54a   :  { %v4942_v20 = vmax.f32 %v4936_v13, 0.0 }
 0x54d   :  { %v4923_v46 = vpop.f32.mrf.mxu1  ;;  %v4937_v17 = vpop.f32.mrf.mxu2 }
 0x54e   :  { %v4924_v16 = vadd.f32 %v4923_v46, %v4910_v15  ;;  %v5127_v37 = vpop.f32.mrf.mxu3 }
 0x54f   :  { %v5128_v41 = vadd.f32 %v7943_v26, %v5127_v37 }
 0x550   :  { %v4938_v18 = vadd.f32 %v4937_v17, %v4924_v16 }
 0x552   :  { %v4945_v21 = vmax.f32 %v4938_v18, 0.0 }
 0x554   :  { %v4948_v22 = vpack.c.bf16 %v4945_v21, %v4942_v20 }
 0x556   :  { %7392 = vmatmul.msk.bf16.vlgmr.msrb.gmra.mxu1 %vm2530_vm1, %v4948_v22 }
 0x577   :  { %v5139_v24 = vpop.f32.mrf.mxu0 }
 0x578   :  { %v5140_v29 = vadd.f32 %v5139_v24, %v5126_v28 }
 0x57f   :  { %v5141_v40 = vpop.f32.mrf.mxu0 }
 0x580   :  { %v5142_v45 = vadd.f32 %v5141_v40, %v5128_v41 }
 0x5d3   :  { %v5153_v30 = vpop.f32.mrf.mxu1 }
 0x5d4   :  { %v5154_v33 = vadd.f32 %v5153_v30, %v5140_v29 }
 0x5d6   :  { %v5158_v39 = vmax.f32 %v5154_v33, 0.0 }
 0x5d8   :  { %v5164_v42 = vmul.f32 %v7944_v36, %v5158_v39 }
 0x5da   :  { %v5166_v47 = vsel %vm2584_vm2, %v5164_v42, 0.0 }
 0x5db   :  { %v5155_v49 = vpop.f32.mrf.mxu1  ;;  %5167 = vadd.xlane.f32.xlu2 %v5166_v47 }
 0x5dc   :  { %v5156_v48 = vadd.f32 %v5155_v49, %v5142_v45 }
 0x5de   :  { %v5159_v55 = vmax.f32 %v5156_v48, 0.0 }
 0x5e0   :  { %v5165_v5 = vmul.f32 %v7944_v36, %v5159_v55 }
 0x5e2   :  { %v5169_v50 = vsel %vm2584_vm2, %v5165_v5, 0.0 }
 0x5e3   :  { %5170 = vadd.xlane.f32.xlu2 %v5169_v50 }
 0x64e   :  { %v5168_v54 = vpop.xlane.xlu2 %5167 }
 0x64f   :  { %v5176_v56 = vadd.f32 %v7945_v51, %v5168_v54 }
 0x651   :  { %5190 = vperm.xlu2 %7939, %v5176_v56  }
 0x656   :  { %v5171_v57 = vpop.xlane.xlu2 %5170 }
 0x657   :  { %v5177_v59 = vadd.f32 %v7945_v51, %v5171_v57 }
 0x659   :  { %5195 = vperm.xlu1 %7937, %v5177_v59  }
 0x6ab   :  { %v5191_v44 = vpop.permute.xlu2 %5190 }
 0x6ac   :  { %v5198_v31 = vsel %vm2601_vm5, %v5181_v60, %v5191_v44 }
 0x6ad   :  { %5201 = vst.msk [vmem:[%s11461_s18] sm:$0xff] %vm5200_vm8, %v5198_v31 }
 0x6cb   :  { %v5196_v32 = vpop.permute.xlu1 %5195 }
 0x6cc   :  { %v5199_v58 = vsel %vm2601_vm5, %v5186_v27, %v5196_v32 }
 0x6cd   :  { %5202 = vst.msk [vmem:[%s11461_s18 + $0x8] sm:$0xff] %vm5200_vm8, %v5199_v58 }

</bundles_post_ra>
